<compile_context>
chip_gen: v6e
topology: v6e:2x2x1
jax: 0.10.0
libtpu: 0.0.40
codegen_flags: <defaults>
</compile_context>

<pallas_src>
import math

import jax
import jax.numpy as jnp
from jax import lax
from jax.experimental import pallas as pl
from jax.experimental.pallas import tpu as pltpu


LANE = 128  # TPU lane width; the 32-wide / 1-wide classifier layers are padded to this.


# ----------------------------------------------------------------------------
# Fused kernel: encoder layer -> CLS -> classifier MLP -> sigmoid
# ----------------------------------------------------------------------------
def fused_forward_kernel(x_ref, maskb_ref, feat_ref,
                         wattn_ref, battn_ref, ln1_ref,
                         wff1_ref, bff1_ref, wff2_ref, bff2_ref, ln2_ref,
                         w1a_ref, w1b_ref, b1_ref,
                         w2_ref, b2_ref, w3_ref, b3_ref,
                         w4_ref, b4_ref, w5_ref, b5_ref,
                         out_ref):
    x = x_ref[0]                        # [Bb, S, H] f32 token+pos embeddings
    maskb = maskb_ref[0]                # [Bb, 1, S] additive mask bias (0 / -1e9)
    Bb, S, H = x.shape

    xf = x.reshape(Bb * S, H)           # flatten batch*seq for all projections
    xb = xf.astype(jnp.bfloat16)

    # ---- self-attention (single-head stand-in); 1/sqrt(H) pre-folded into Wq/bq ----
    q = jnp.dot(xb, wattn_ref[0], preferred_element_type=jnp.float32) + battn_ref[0:1, :]
    k = jnp.dot(xb, wattn_ref[1], preferred_element_type=jnp.float32) + battn_ref[1:2, :]
    v = jnp.dot(xb, wattn_ref[2], preferred_element_type=jnp.float32) + battn_ref[2:3, :]

    q3 = q.reshape(Bb, S, H).astype(jnp.bfloat16)
    k3 = k.reshape(Bb, S, H).astype(jnp.bfloat16)
    v3 = v.reshape(Bb, S, H).astype(jnp.bfloat16)

    scores = jnp.einsum("bqd,bkd->bqk", q3, k3,
                        preferred_element_type=jnp.float32)    # [Bb, S, S]
    scores = scores + maskb
    scores = scores - jnp.max(scores, axis=-1, keepdims=True)
    e = jnp.exp(scores)
    attn = e / jnp.sum(e, axis=-1, keepdims=True)               # f32 softmax

    ctx = jnp.einsum("bqk,bkd->bqd", attn.astype(jnp.bfloat16), v3,
                     preferred_element_type=jnp.float32)
    ctxb = ctx.reshape(Bb * S, H).astype(jnp.bfloat16)
    attn_out = jnp.dot(ctxb, wattn_ref[3],
                       preferred_element_type=jnp.float32) + battn_ref[3:4, :]

    def _ln(t, gb_ref):                 # LayerNorm over the hidden axis, f32 math
        g = gb_ref[0:1, :]
        b = gb_ref[1:2, :]
        mu = jnp.mean(t, axis=-1, keepdims=True)
        var = jnp.mean((t - mu) ** 2, axis=-1, keepdims=True)
        return (t - mu) * lax.rsqrt(var + 1e-12) * g + b

    h1 = _ln(xf + attn_out, ln1_ref)    # [Bb*S, H]

    # ---- feed-forward ----
    ff_in = jnp.dot(h1.astype(jnp.bfloat16), wff1_ref[...],
                    preferred_element_type=jnp.float32) + bff1_ref[...]
    # TODO(synk): HF BERT uses exact-erf GELU; tanh approximation kept for Mosaic safety.
    gelu = jax.nn.gelu(ff_in, approximate=True).astype(jnp.bfloat16)
    ff = jnp.dot(gelu, wff2_ref[...],
                 preferred_element_type=jnp.float32) + bff2_ref[...]
    h2 = _ln(h1 + ff, ln2_ref)          # [Bb*S, H] == last_hidden_state (flat)

    # ---- CLS extraction via one-hot selection matmul (MXU; avoids strided sublane gather) ----
    rows = lax.broadcasted_iota(jnp.int32, (Bb, Bb * S), 0)
    cols = lax.broadcasted_iota(jnp.int32, (Bb, Bb * S), 1)
    sel = (cols == rows * S).astype(jnp.bfloat16)               # [Bb, Bb*S] one-hot
    cls = jnp.dot(sel, h2.astype(jnp.bfloat16),
                  preferred_element_type=jnp.float32)           # [Bb, H]

    # ---- classifier MLP (dropout = identity; all BatchNorms pre-folded into W/b) ----
    fb = feat_ref[0].astype(jnp.bfloat16)       # raw features; feature-BN folded into W1b/b1
    h = (jnp.dot(cls.astype(jnp.bfloat16), w1a_ref[...],
                 preferred_element_type=jnp.float32)
         + jnp.dot(fb, w1b_ref[...], preferred_element_type=jnp.float32)
         + b1_ref[...])
    h = jnp.maximum(h, 0.0)
    h = jnp.maximum(jnp.dot(h.astype(jnp.bfloat16), w2_ref[...],
                            preferred_element_type=jnp.float32) + b2_ref[...], 0.0)
    h = jnp.maximum(jnp.dot(h.astype(jnp.bfloat16), w3_ref[...],
                            preferred_element_type=jnp.float32) + b3_ref[...], 0.0)
    h = jnp.maximum(jnp.dot(h.astype(jnp.bfloat16), w4_ref[...],
                            preferred_element_type=jnp.float32) + b4_ref[...], 0.0)
    logits = jnp.dot(h.astype(jnp.bfloat16), w5_ref[...],
                     preferred_element_type=jnp.float32) + b5_ref[...]
    out_ref[0] = jax.nn.sigmoid(logits)         # [Bb, 128]; only column 0 is real


# ----------------------------------------------------------------------------
# Parameter preparation: fold BatchNorms, fold attention scale, pad, cast bf16
# ----------------------------------------------------------------------------
def pack_weights(p, bn_eps=1e-5):
    H = p["w_attn"].shape[-1]

    # hoist the 1/sqrt(H) attention scale into the Q projection (weights AND bias)
    scale = jnp.array([1.0 / math.sqrt(H), 1.0, 1.0, 1.0], jnp.float32)
    w_attn = p["w_attn"] * scale[:, None, None]
    b_attn = p["b_attn"] * scale[:, None]

    def bn_scale_shift(bn):   # rows: gamma, beta, running_mean, running_var
        g, beta, m, v = bn[0], bn[1], bn[2], bn[3]
        s = g * lax.rsqrt(v + bn_eps)
        return s, beta - m * s

    # feature BatchNorm folded into the feature half of W1
    s_f, t_f = bn_scale_shift(p["fbn"])
    w1a = p["w1"][:H]
    w1b = p["w1"][H:] * s_f[:, None]
    b1 = p["b1"] + (t_f @ p["w1"][H:])[None, :]

    # BN1 folded onto both halves of W1
    s1, t1 = bn_scale_shift(p["bn1"])
    w1a = w1a * s1[None, :]
    w1b = w1b * s1[None, :]
    b1 = b1 * s1[None, :] + t1[None, :]

    def fold(w, b, bn):
        s, t = bn_scale_shift(bn)
        return w * s[None, :], b * s[None, :] + t[None, :]

    w2, b2 = fold(p["w2"], p["b2"], p["bn2"])
    w3, b3 = fold(p["w3"], p["b3"], p["bn3"])
    w4, b4 = fold(p["w4"], p["b4"], p["bn4"])
    w5, b5 = p["w5"], p["b5"]

    # lane-dense zero-padding for the 32-wide and 1-wide layers
    c4 = w4.shape[1]     # 32
    w4p = jnp.zeros((w4.shape[0], LANE), jnp.float32).at[:, :c4].set(w4)
    b4p = jnp.zeros((1, LANE), jnp.float32).at[:, :c4].set(b4)
    w5p = jnp.zeros((LANE, LANE), jnp.float32).at[:c4, :1].set(w5)
    b5p = jnp.zeros((1, LANE), jnp.float32).at[:, :1].set(b5)

    bf = lambda a: a.astype(jnp.bfloat16)
    f32 = lambda a: a.astype(jnp.float32)
    return dict(
        w_attn=bf(w_attn), b_attn=f32(b_attn), ln1=f32(p["ln1"]), ln2=f32(p["ln2"]),
        w_ff1=bf(p["w_ff1"]), b_ff1=f32(p["b_ff1"]),
        w_ff2=bf(p["w_ff2"]), b_ff2=f32(p["b_ff2"]),
        w1a=bf(w1a), w1b=bf(w1b), b1=f32(b1),
        w2=bf(w2), b2=f32(b2), w3=bf(w3), b3=f32(b3),
        w4=bf(w4p), b4=f32(b4p), w5=bf(w5p), b5=f32(b5p),
    )


# ----------------------------------------------------------------------------
# Parameter init (deterministic) + full forward
# ----------------------------------------------------------------------------
def init_params(key, vocab, seq, hidden, ff, num_features):
    ks = jax.random.split(key, 16)

    def nrm(k, shape, scale=0.02):
        return (scale * jax.random.normal(k, shape)).astype(jnp.float32)

    p = {}
    # stand-in BERT
    p["tok_emb"] = nrm(ks[0], (vocab, hidden))
    p["pos_emb"] = nrm(ks[1], (seq, hidden))
    p["w_attn"] = nrm(ks[2], (4, hidden, hidden))        # q, k, v, o
    p["b_attn"] = jnp.zeros((4, hidden), jnp.float32)
    p["ln1"] = jnp.stack([jnp.ones(hidden), jnp.zeros(hidden)]).astype(jnp.float32)
    p["ln2"] = jnp.stack([jnp.ones(hidden), jnp.zeros(hidden)]).astype(jnp.float32)
    p["w_ff1"] = nrm(ks[3], (hidden, ff))
    p["b_ff1"] = jnp.zeros((1, ff), jnp.float32)
    p["w_ff2"] = nrm(ks[4], (ff, hidden))
    p["b_ff2"] = jnp.zeros((1, hidden), jnp.float32)

    # classifier head (dims fixed by the module: 768 -> 384 -> 128 -> 32 -> 1)
    dims = [hidden + num_features, 768, 384, 128, 32, 1]
    for i in range(5):
        bound = 1.0 / math.sqrt(dims[i])
        p[f"w{i + 1}"] = jax.random.uniform(
            ks[5 + 2 * i], (dims[i], dims[i + 1]),
            minval=-bound, maxval=bound).astype(jnp.float32)
        p[f"b{i + 1}"] = jax.random.uniform(
            ks[6 + 2 * i], (1, dims[i + 1]),
            minval=-bound, maxval=bound).astype(jnp.float32)

    def bn_params(c):  # PyTorch BatchNorm1d defaults: gamma=1, beta=0, mean=0, var=1
        return jnp.stack([jnp.ones(c), jnp.zeros(c),
                          jnp.zeros(c), jnp.ones(c)]).astype(jnp.float32)

    p["fbn"] = bn_params(num_features)
    p["bn1"] = bn_params(768)
    p["bn2"] = bn_params(384)
    p["bn3"] = bn_params(128)
    p["bn4"] = bn_params(32)
    return p


def enhanced_bert_classifier_forward(p, input_ids, attention_mask, features):
    B, S = input_ids.shape
    H = p["tok_emb"].shape[1]
    NF = features.shape[-1]

    kw = pack_weights(p)

    # embedding lookup + positional embeddings (glue)
    # TODO(synk): could be pulled in-kernel via scalar-prefetched ids + row-gather BlockSpec.
    x_emb = (p["tok_emb"][input_ids] + p["pos_emb"][None, :S, :]).astype(jnp.float32)
    mask_bias = ((attention_mask.astype(jnp.float32) - 1.0) * 1e9).reshape(B, 1, S)
    feats = features.astype(jnp.float32)

    # split the batch into 2 grid blocks so v7x's 2 TensorCores each take half;
    # on v5e/v6e (1 TC) this is a cheap 2-step sequential grid.
    NB = 2 if (B % 2 == 0 and B >= 2) else 1
    Bb = B // NB

    x_b = x_emb.reshape(NB, Bb, S, H)
    m_b = mask_bias.reshape(NB, Bb, 1, S)
    f_b = feats.reshape(NB, Bb, NF)

    weights = (kw["w_attn"], kw["b_attn"], kw["ln1"],
               kw["w_ff1"], kw["b_ff1"], kw["w_ff2"], kw["b_ff2"], kw["ln2"],
               kw["w1a"], kw["w1b"], kw["b1"],
               kw["w2"], kw["b2"], kw["w3"], kw["b3"],
               kw["w4"], kw["b4"], kw["w5"], kw["b5"])

    def full_spec(arr):
        nd = arr.ndim
        return pl.BlockSpec(arr.shape, lambda i, nd=nd: (0,) * nd)

    out = pl.pallas_call(
        fused_forward_kernel,
        out_shape=jax.ShapeDtypeStruct((NB, Bb, LANE), jnp.float32),
        grid=(NB,),
        in_specs=[
            pl.BlockSpec((1, Bb, S, H), lambda i: (i, 0, 0, 0)),
            pl.BlockSpec((1, Bb, 1, S), lambda i: (i, 0, 0, 0)),
            pl.BlockSpec((1, Bb, NF), lambda i: (i, 0, 0)),
        ] + [full_spec(w) for w in weights],
        out_specs=pl.BlockSpec((1, Bb, LANE), lambda i: (i, 0, 0)),
        compiler_params=pltpu.CompilerParams(
            dimension_semantics=("parallel",)),
    )(x_b, m_b, f_b, *weights)

    # lane-dense (B, 128) slab -> real (B, 1) probability column
    return out.reshape(B, LANE)[:, 0:1]


if __name__ == "__main__":
    B, S, V, H, FF, NF = 8, 8, 64, 128, 256, 16

    key = jax.random.PRNGKey(0)
    k_param, k_ids, k_feat = jax.random.split(key, 3)

    params = init_params(k_param, V, S, H, FF, NF)

    input_ids = jax.random.randint(k_ids, (B, S), 0, V, dtype=jnp.int32)
    lengths = jnp.array([8, 6, 8, 5, 8, 7, 8, 4], dtype=jnp.int32)
    attention_mask = (jnp.arange(S)[None, :] < lengths[:, None]).astype(jnp.float32)
    features = jax.random.normal(k_feat, (B, NF), dtype=jnp.float32)

    probs = enhanced_bert_classifier_forward(params, input_ids, attention_mask, features)
    probs = jax.block_until_ready(probs)

    assert probs.shape == (B, 1)
    assert bool(jnp.all(jnp.isfinite(probs)))
    assert bool(jnp.all((probs > 0.0) & (probs < 1.0)))
    print("KERNEL_OK")
</pallas_src>

<mosaic_0001>
module attributes {stable_mosaic.version = 11 : i64} {
  func.func @fused_forward_kernel(%arg0: i32, %arg1: memref<1x4x8x128xf32, #tpu.memory_space<vmem>>, %arg2: memref<1x4x1x8xf32, #tpu.memory_space<vmem>>, %arg3: memref<1x4x16xf32, #tpu.memory_space<vmem>>, %arg4: memref<4x128x128xbf16, #tpu.memory_space<vmem>>, %arg5: memref<4x128xf32, #tpu.memory_space<vmem>>, %arg6: memref<2x128xf32, #tpu.memory_space<vmem>>, %arg7: memref<128x256xbf16, #tpu.memory_space<vmem>>, %arg8: memref<1x256xf32, #tpu.memory_space<vmem>>, %arg9: memref<256x128xbf16, #tpu.memory_space<vmem>>, %arg10: memref<1x128xf32, #tpu.memory_space<vmem>>, %arg11: memref<2x128xf32, #tpu.memory_space<vmem>>, %arg12: memref<128x768xbf16, #tpu.memory_space<vmem>>, %arg13: memref<16x768xbf16, #tpu.memory_space<vmem>>, %arg14: memref<1x768xf32, #tpu.memory_space<vmem>>, %arg15: memref<768x384xbf16, #tpu.memory_space<vmem>>, %arg16: memref<1x384xf32, #tpu.memory_space<vmem>>, %arg17: memref<384x128xbf16, #tpu.memory_space<vmem>>, %arg18: memref<1x128xf32, #tpu.memory_space<vmem>>, %arg19: memref<128x128xbf16, #tpu.memory_space<vmem>>, %arg20: memref<1x128xf32, #tpu.memory_space<vmem>>, %arg21: memref<128x128xbf16, #tpu.memory_space<vmem>>, %arg22: memref<1x128xf32, #tpu.memory_space<vmem>>, %arg23: memref<1x4x128xf32, #tpu.memory_space<vmem>>) attributes {dimension_semantics = [#tpu.dimension_semantics<parallel>], iteration_bounds = array<i64: 2>, scalar_prefetch = 0 : i64, scratch_operands = 0 : i64, tpu.core_type = #tpu.core_type<tc>, window_params = [{transform_indices = @transform_0, window_bounds = array<i64: 1, 4, 8, 128>}, {transform_indices = @transform_1, window_bounds = array<i64: 1, 4, 1, 8>}, {transform_indices = @transform_2, window_bounds = array<i64: 1, 4, 16>}, {pipeline_mode = #tpu.pipeline_mode<synchronous>, transform_indices = @transform_3, window_bounds = array<i64: 4, 128, 128>}, {pipeline_mode = #tpu.pipeline_mode<synchronous>, transform_indices = @transform_4, window_bounds = array<i64: 4, 128>}, {pipeline_mode = #tpu.pipeline_mode<synchronous>, transform_indices = @transform_5, window_bounds = array<i64: 2, 128>}, {pipeline_mode = #tpu.pipeline_mode<synchronous>, transform_indices = @transform_6, window_bounds = array<i64: 128, 256>}, {pipeline_mode = #tpu.pipeline_mode<synchronous>, transform_indices = @transform_7, window_bounds = array<i64: 1, 256>}, {pipeline_mode = #tpu.pipeline_mode<synchronous>, transform_indices = @transform_8, window_bounds = array<i64: 256, 128>}, {pipeline_mode = #tpu.pipeline_mode<synchronous>, transform_indices = @transform_9, window_bounds = array<i64: 1, 128>}, {pipeline_mode = #tpu.pipeline_mode<synchronous>, transform_indices = @transform_10, window_bounds = array<i64: 2, 128>}, {pipeline_mode = #tpu.pipeline_mode<synchronous>, transform_indices = @transform_11, window_bounds = array<i64: 128, 768>}, {pipeline_mode = #tpu.pipeline_mode<synchronous>, transform_indices = @transform_12, window_bounds = array<i64: 16, 768>}, {pipeline_mode = #tpu.pipeline_mode<synchronous>, transform_indices = @transform_13, window_bounds = array<i64: 1, 768>}, {pipeline_mode = #tpu.pipeline_mode<synchronous>, transform_indices = @transform_14, window_bounds = array<i64: 768, 384>}, {pipeline_mode = #tpu.pipeline_mode<synchronous>, transform_indices = @transform_15, window_bounds = array<i64: 1, 384>}, {pipeline_mode = #tpu.pipeline_mode<synchronous>, transform_indices = @transform_16, window_bounds = array<i64: 384, 128>}, {pipeline_mode = #tpu.pipeline_mode<synchronous>, transform_indices = @transform_17, window_bounds = array<i64: 1, 128>}, {pipeline_mode = #tpu.pipeline_mode<synchronous>, transform_indices = @transform_18, window_bounds = array<i64: 128, 128>}, {pipeline_mode = #tpu.pipeline_mode<synchronous>, transform_indices = @transform_19, window_bounds = array<i64: 1, 128>}, {pipeline_mode = #tpu.pipeline_mode<synchronous>, transform_indices = @transform_20, window_bounds = array<i64: 128, 128>}, {pipeline_mode = #tpu.pipeline_mode<synchronous>, transform_indices = @transform_21, window_bounds = array<i64: 1, 128>}, {transform_indices = @transform_22, window_bounds = array<i64: 1, 4, 128>}]} {
    %c0 = arith.constant 0 : index
    %c0_0 = arith.constant 0 : index
    %c0_1 = arith.constant 0 : index
    %c0_2 = arith.constant 0 : index
    %0 = vector.load %arg1[%c0, %c0_0, %c0_1, %c0_2] : memref<1x4x8x128xf32, #tpu.memory_space<vmem>>, vector<1x4x8x128xf32>
    %1 = vector.shape_cast %0 : vector<1x4x8x128xf32> to vector<4x8x128xf32>
    %c0_3 = arith.constant 0 : index
    %c0_4 = arith.constant 0 : index
    %c0_5 = arith.constant 0 : index
    %c0_6 = arith.constant 0 : index
    %2 = vector.load %arg2[%c0_3, %c0_4, %c0_5, %c0_6] : memref<1x4x1x8xf32, #tpu.memory_space<vmem>>, vector<1x4x1x8xf32>
    %3 = vector.shape_cast %2 : vector<1x4x1x8xf32> to vector<4x1x8xf32>
    %4 = vector.shape_cast %1 : vector<4x8x128xf32> to vector<32x128xf32>
    %5 = arith.truncf %4 : vector<32x128xf32> to vector<32x128xbf16>
    %c0_7 = arith.constant 0 : index
    %c0_8 = arith.constant 0 : index
    %c0_9 = arith.constant 0 : index
    %6 = vector.load %arg4[%c0_7, %c0_8, %c0_9] : memref<4x128x128xbf16, #tpu.memory_space<vmem>>, vector<1x128x128xbf16>
    %7 = vector.shape_cast %6 : vector<1x128x128xbf16> to vector<128x128xbf16>
    %cst = arith.constant dense<0.000000e+00> : vector<32x128xf32>
    %8 = tpu.matmul %5, %7, %cst {dimension_numbers = #tpu.dot_dimension_numbers<[1], [0], [0], [1], [0, 0, 1, 1], [], []>} : vector<32x128xbf16>, vector<128x128xbf16>, vector<32x128xf32> -> vector<32x128xf32>
    %c0_10 = arith.constant 0 : index
    %c0_11 = arith.constant 0 : index
    %9 = vector.load %arg5[%c0_10, %c0_11] : memref<4x128xf32, #tpu.memory_space<vmem>>, vector<1x128xf32>
    %10 = vector.broadcast %9 : vector<1x128xf32> to vector<32x128xf32>
    %11 = arith.addf %8, %10 : vector<32x128xf32>
    %c1 = arith.constant 1 : index
    %c0_12 = arith.constant 0 : index
    %c0_13 = arith.constant 0 : index
    %12 = vector.load %arg4[%c1, %c0_12, %c0_13] : memref<4x128x128xbf16, #tpu.memory_space<vmem>>, vector<1x128x128xbf16>
    %13 = vector.shape_cast %12 : vector<1x128x128xbf16> to vector<128x128xbf16>
    %cst_14 = arith.constant dense<0.000000e+00> : vector<32x128xf32>
    %14 = tpu.matmul %5, %13, %cst_14 {dimension_numbers = #tpu.dot_dimension_numbers<[1], [0], [0], [1], [0, 0, 1, 1], [], []>} : vector<32x128xbf16>, vector<128x128xbf16>, vector<32x128xf32> -> vector<32x128xf32>
    %c1_15 = arith.constant 1 : index
    %c0_16 = arith.constant 0 : index
    %15 = vector.load %arg5[%c1_15, %c0_16] : memref<4x128xf32, #tpu.memory_space<vmem>>, vector<1x128xf32>
    %16 = vector.broadcast %15 : vector<1x128xf32> to vector<32x128xf32>
    %17 = arith.addf %14, %16 : vector<32x128xf32>
    %c2 = arith.constant 2 : index
    %c0_17 = arith.constant 0 : index
    %c0_18 = arith.constant 0 : index
    %18 = vector.load %arg4[%c2, %c0_17, %c0_18] : memref<4x128x128xbf16, #tpu.memory_space<vmem>>, vector<1x128x128xbf16>
    %19 = vector.shape_cast %18 : vector<1x128x128xbf16> to vector<128x128xbf16>
    %cst_19 = arith.constant dense<0.000000e+00> : vector<32x128xf32>
    %20 = tpu.matmul %5, %19, %cst_19 {dimension_numbers = #tpu.dot_dimension_numbers<[1], [0], [0], [1], [0, 0, 1, 1], [], []>} : vector<32x128xbf16>, vector<128x128xbf16>, vector<32x128xf32> -> vector<32x128xf32>
    %c2_20 = arith.constant 2 : index
    %c0_21 = arith.constant 0 : index
    %21 = vector.load %arg5[%c2_20, %c0_21] : memref<4x128xf32, #tpu.memory_space<vmem>>, vector<1x128xf32>
    %22 = vector.broadcast %21 : vector<1x128xf32> to vector<32x128xf32>
    %23 = arith.addf %20, %22 : vector<32x128xf32>
    %24 = vector.shape_cast %11 : vector<32x128xf32> to vector<4x8x128xf32>
    %25 = arith.truncf %24 : vector<4x8x128xf32> to vector<4x8x128xbf16>
    %26 = vector.shape_cast %17 : vector<32x128xf32> to vector<4x8x128xf32>
    %27 = arith.truncf %26 : vector<4x8x128xf32> to vector<4x8x128xbf16>
    %28 = vector.shape_cast %23 : vector<32x128xf32> to vector<4x8x128xf32>
    %29 = arith.truncf %28 : vector<4x8x128xf32> to vector<4x8x128xbf16>
    "tpu.trace_start"() <{level = 10 : i32, message = "bqd,bkd->bqk"}> : () -> ()
    %cst_22 = arith.constant dense<0.000000e+00> : vector<4x8x8xf32>
    %30 = tpu.matmul %25, %27, %cst_22 {dimension_numbers = #tpu.dot_dimension_numbers<[2], [2], [1], [1], [0, 0, 0, 1, 1, 1], [0], [0]>} : vector<4x8x128xbf16>, vector<4x8x128xbf16>, vector<4x8x8xf32> -> vector<4x8x8xf32>
    "tpu.trace_stop"() : () -> ()
    %31 = vector.broadcast %3 : vector<4x1x8xf32> to vector<4x8x8xf32>
    %32 = arith.addf %30, %31 : vector<4x8x8xf32>
    %cst_23 = arith.constant dense<0xFF800000> : vector<4x8xf32>
    %33 = vector.multi_reduction <maximumf>, %32, %cst_23 [2] : vector<4x8x8xf32> to vector<4x8xf32>
    %34 = vector.shape_cast %33 : vector<4x8xf32> to vector<4x8x1xf32>
    %35 = vector.broadcast %34 : vector<4x8x1xf32> to vector<4x8x8xf32>
    %36 = arith.subf %32, %35 : vector<4x8x8xf32>
    %37 = math.exp %36 : vector<4x8x8xf32>
    %cst_24 = arith.constant dense<0.000000e+00> : vector<4x8xf32>
    %38 = vector.multi_reduction <add>, %37, %cst_24 [2] : vector<4x8x8xf32> to vector<4x8xf32>
    %39 = vector.shape_cast %38 : vector<4x8xf32> to vector<4x8x1xf32>
    %40 = vector.broadcast %39 : vector<4x8x1xf32> to vector<4x8x8xf32>
    %41 = arith.divf %37, %40 : vector<4x8x8xf32>
    %42 = arith.truncf %41 : vector<4x8x8xf32> to vector<4x8x8xbf16>
    "tpu.trace_start"() <{level = 10 : i32, message = "bqk,bkd->bqd"}> : () -> ()
    %cst_25 = arith.constant dense<0.000000e+00> : vector<4x8x128xf32>
    %43 = tpu.matmul %42, %29, %cst_25 {dimension_numbers = #tpu.dot_dimension_numbers<[2], [1], [1], [2], [0, 0, 0, 1, 1, 2], [0], [0]>} : vector<4x8x8xbf16>, vector<4x8x128xbf16>, vector<4x8x128xf32> -> vector<4x8x128xf32>
    "tpu.trace_stop"() : () -> ()
    %44 = vector.shape_cast %43 : vector<4x8x128xf32> to vector<32x128xf32>
    %45 = arith.truncf %44 : vector<32x128xf32> to vector<32x128xbf16>
    %c3 = arith.constant 3 : index
    %c0_26 = arith.constant 0 : index
    %c0_27 = arith.constant 0 : index
    %46 = vector.load %arg4[%c3, %c0_26, %c0_27] : memref<4x128x128xbf16, #tpu.memory_space<vmem>>, vector<1x128x128xbf16>
    %47 = vector.shape_cast %46 : vector<1x128x128xbf16> to vector<128x128xbf16>
    %cst_28 = arith.constant dense<0.000000e+00> : vector<32x128xf32>
    %48 = tpu.matmul %45, %47, %cst_28 {dimension_numbers = #tpu.dot_dimension_numbers<[1], [0], [0], [1], [0, 0, 1, 1], [], []>} : vector<32x128xbf16>, vector<128x128xbf16>, vector<32x128xf32> -> vector<32x128xf32>
    %c3_29 = arith.constant 3 : index
    %c0_30 = arith.constant 0 : index
    %49 = vector.load %arg5[%c3_29, %c0_30] : memref<4x128xf32, #tpu.memory_space<vmem>>, vector<1x128xf32>
    %50 = vector.broadcast %49 : vector<1x128xf32> to vector<32x128xf32>
    %51 = arith.addf %48, %50 : vector<32x128xf32>
    %52 = arith.addf %4, %51 : vector<32x128xf32>
    %c0_31 = arith.constant 0 : index
    %c0_32 = arith.constant 0 : index
    %53 = vector.load %arg6[%c0_31, %c0_32] : memref<2x128xf32, #tpu.memory_space<vmem>>, vector<1x128xf32>
    %c1_33 = arith.constant 1 : index
    %c0_34 = arith.constant 0 : index
    %54 = vector.load %arg6[%c1_33, %c0_34] : memref<2x128xf32, #tpu.memory_space<vmem>>, vector<1x128xf32>
    %cst_35 = arith.constant dense<0.000000e+00> : vector<32xf32>
    %55 = vector.multi_reduction <add>, %52, %cst_35 [1] : vector<32x128xf32> to vector<32xf32>
    %56 = vector.shape_cast %55 : vector<32xf32> to vector<32x1xf32>
    %cst_36 = arith.constant 1.280000e+02 : f32
    %57 = vector.broadcast %cst_36 : f32 to vector<32x1xf32>
    %58 = arith.divf %56, %57 : vector<32x1xf32>
    %59 = vector.broadcast %58 : vector<32x1xf32> to vector<32x128xf32>
    %60 = arith.subf %52, %59 : vector<32x128xf32>
    %61 = arith.mulf %60, %60 : vector<32x128xf32>
    %cst_37 = arith.constant dense<0.000000e+00> : vector<32xf32>
    %62 = vector.multi_reduction <add>, %61, %cst_37 [1] : vector<32x128xf32> to vector<32xf32>
    %63 = vector.shape_cast %62 : vector<32xf32> to vector<32x1xf32>
    %cst_38 = arith.constant 1.280000e+02 : f32
    %64 = vector.broadcast %cst_38 : f32 to vector<32x1xf32>
    %65 = arith.divf %63, %64 : vector<32x1xf32>
    %66 = vector.broadcast %58 : vector<32x1xf32> to vector<32x128xf32>
    %67 = arith.subf %52, %66 : vector<32x128xf32>
    %cst_39 = arith.constant 9.99999996E-13 : f32
    %68 = vector.broadcast %cst_39 : f32 to vector<32x1xf32>
    %69 = arith.addf %65, %68 : vector<32x1xf32>
    %70 = math.rsqrt %69 : vector<32x1xf32>
    %71 = vector.broadcast %70 : vector<32x1xf32> to vector<32x128xf32>
    %72 = arith.mulf %67, %71 : vector<32x128xf32>
    %73 = vector.broadcast %53 : vector<1x128xf32> to vector<32x128xf32>
    %74 = arith.mulf %72, %73 : vector<32x128xf32>
    %75 = vector.broadcast %54 : vector<1x128xf32> to vector<32x128xf32>
    %76 = arith.addf %74, %75 : vector<32x128xf32>
    %77 = arith.truncf %76 : vector<32x128xf32> to vector<32x128xbf16>
    %c0_40 = arith.constant 0 : index
    %c0_41 = arith.constant 0 : index
    %78 = vector.load %arg7[%c0_40, %c0_41] : memref<128x256xbf16, #tpu.memory_space<vmem>>, vector<128x256xbf16>
    %cst_42 = arith.constant dense<0.000000e+00> : vector<32x256xf32>
    %79 = tpu.matmul %77, %78, %cst_42 {dimension_numbers = #tpu.dot_dimension_numbers<[1], [0], [0], [1], [0, 0, 1, 1], [], []>} : vector<32x128xbf16>, vector<128x256xbf16>, vector<32x256xf32> -> vector<32x256xf32>
    %c0_43 = arith.constant 0 : index
    %c0_44 = arith.constant 0 : index
    %80 = vector.load %arg8[%c0_43, %c0_44] : memref<1x256xf32, #tpu.memory_space<vmem>>, vector<1x256xf32>
    %81 = vector.broadcast %80 : vector<1x256xf32> to vector<32x256xf32>
    %82 = arith.addf %79, %81 : vector<32x256xf32>
    %83 = arith.mulf %82, %82 : vector<32x256xf32>
    %84 = arith.mulf %82, %83 : vector<32x256xf32>
    %cst_45 = arith.constant 4.471500e-02 : f32
    %85 = vector.broadcast %cst_45 : f32 to vector<32x256xf32>
    %86 = arith.mulf %85, %84 : vector<32x256xf32>
    %87 = arith.addf %82, %86 : vector<32x256xf32>
    %cst_46 = arith.constant 0.797884583 : f32
    %88 = vector.broadcast %cst_46 : f32 to vector<32x256xf32>
    %89 = arith.mulf %88, %87 : vector<32x256xf32>
    %90 = math.tanh %89 : vector<32x256xf32>
    %cst_47 = arith.constant 1.000000e+00 : f32
    %91 = vector.broadcast %cst_47 : f32 to vector<32x256xf32>
    %92 = arith.addf %91, %90 : vector<32x256xf32>
    %cst_48 = arith.constant 5.000000e-01 : f32
    %93 = vector.broadcast %cst_48 : f32 to vector<32x256xf32>
    %94 = arith.mulf %93, %92 : vector<32x256xf32>
    %95 = arith.mulf %82, %94 : vector<32x256xf32>
    %96 = arith.truncf %95 : vector<32x256xf32> to vector<32x256xbf16>
    %c0_49 = arith.constant 0 : index
    %c0_50 = arith.constant 0 : index
    %97 = vector.load %arg9[%c0_49, %c0_50] : memref<256x128xbf16, #tpu.memory_space<vmem>>, vector<256x128xbf16>
    %cst_51 = arith.constant dense<0.000000e+00> : vector<32x128xf32>
    %98 = tpu.matmul %96, %97, %cst_51 {dimension_numbers = #tpu.dot_dimension_numbers<[1], [0], [0], [1], [0, 0, 1, 1], [], []>} : vector<32x256xbf16>, vector<256x128xbf16>, vector<32x128xf32> -> vector<32x128xf32>
    %c0_52 = arith.constant 0 : index
    %c0_53 = arith.constant 0 : index
    %99 = vector.load %arg10[%c0_52, %c0_53] : memref<1x128xf32, #tpu.memory_space<vmem>>, vector<1x128xf32>
    %100 = vector.broadcast %99 : vector<1x128xf32> to vector<32x128xf32>
    %101 = arith.addf %98, %100 : vector<32x128xf32>
    %102 = arith.addf %76, %101 : vector<32x128xf32>
    %c0_54 = arith.constant 0 : index
    %c0_55 = arith.constant 0 : index
    %103 = vector.load %arg11[%c0_54, %c0_55] : memref<2x128xf32, #tpu.memory_space<vmem>>, vector<1x128xf32>
    %c1_56 = arith.constant 1 : index
    %c0_57 = arith.constant 0 : index
    %104 = vector.load %arg11[%c1_56, %c0_57] : memref<2x128xf32, #tpu.memory_space<vmem>>, vector<1x128xf32>
    %cst_58 = arith.constant dense<0.000000e+00> : vector<32xf32>
    %105 = vector.multi_reduction <add>, %102, %cst_58 [1] : vector<32x128xf32> to vector<32xf32>
    %106 = vector.shape_cast %105 : vector<32xf32> to vector<32x1xf32>
    %cst_59 = arith.constant 1.280000e+02 : f32
    %107 = vector.broadcast %cst_59 : f32 to vector<32x1xf32>
    %108 = arith.divf %106, %107 : vector<32x1xf32>
    %109 = vector.broadcast %108 : vector<32x1xf32> to vector<32x128xf32>
    %110 = arith.subf %102, %109 : vector<32x128xf32>
    %111 = arith.mulf %110, %110 : vector<32x128xf32>
    %cst_60 = arith.constant dense<0.000000e+00> : vector<32xf32>
    %112 = vector.multi_reduction <add>, %111, %cst_60 [1] : vector<32x128xf32> to vector<32xf32>
    %113 = vector.shape_cast %112 : vector<32xf32> to vector<32x1xf32>
    %cst_61 = arith.constant 1.280000e+02 : f32
    %114 = vector.broadcast %cst_61 : f32 to vector<32x1xf32>
    %115 = arith.divf %113, %114 : vector<32x1xf32>
    %116 = vector.broadcast %108 : vector<32x1xf32> to vector<32x128xf32>
    %117 = arith.subf %102, %116 : vector<32x128xf32>
    %cst_62 = arith.constant 9.99999996E-13 : f32
    %118 = vector.broadcast %cst_62 : f32 to vector<32x1xf32>
    %119 = arith.addf %115, %118 : vector<32x1xf32>
    %120 = math.rsqrt %119 : vector<32x1xf32>
    %121 = vector.broadcast %120 : vector<32x1xf32> to vector<32x128xf32>
    %122 = arith.mulf %117, %121 : vector<32x128xf32>
    %123 = vector.broadcast %103 : vector<1x128xf32> to vector<32x128xf32>
    %124 = arith.mulf %122, %123 : vector<32x128xf32>
    %125 = vector.broadcast %104 : vector<1x128xf32> to vector<32x128xf32>
    %126 = arith.addf %124, %125 : vector<32x128xf32>
    %127 = tpu.iota {dimensions = array<i32: 0>} : vector<4x32xi32>
    %128 = tpu.iota {dimensions = array<i32: 1>} : vector<4x32xi32>
    %c8_i32 = arith.constant 8 : i32
    %129 = vector.broadcast %c8_i32 : i32 to vector<4x32xi32>
    %130 = arith.muli %127, %129 : vector<4x32xi32>
    %131 = arith.cmpi eq, %128, %130 : vector<4x32xi32>
    %132 = arith.extui %131 : vector<4x32xi1> to vector<4x32xi32>
    %133 = arith.sitofp %132 : vector<4x32xi32> to vector<4x32xf32>
    %134 = arith.truncf %133 : vector<4x32xf32> to vector<4x32xbf16>
    %135 = arith.truncf %126 : vector<32x128xf32> to vector<32x128xbf16>
    %cst_63 = arith.constant dense<0.000000e+00> : vector<4x128xf32>
    %136 = tpu.matmul %134, %135, %cst_63 {dimension_numbers = #tpu.dot_dimension_numbers<[1], [0], [0], [1], [0, 0, 1, 1], [], []>} : vector<4x32xbf16>, vector<32x128xbf16>, vector<4x128xf32> -> vector<4x128xf32>
    %c0_64 = arith.constant 0 : index
    %c0_65 = arith.constant 0 : index
    %c0_66 = arith.constant 0 : index
    %137 = vector.load %arg3[%c0_64, %c0_65, %c0_66] : memref<1x4x16xf32, #tpu.memory_space<vmem>>, vector<1x4x16xf32>
    %138 = vector.shape_cast %137 : vector<1x4x16xf32> to vector<4x16xf32>
    %139 = arith.truncf %138 : vector<4x16xf32> to vector<4x16xbf16>
    %140 = arith.truncf %136 : vector<4x128xf32> to vector<4x128xbf16>
    %c0_67 = arith.constant 0 : index
    %c0_68 = arith.constant 0 : index
    %141 = vector.load %arg12[%c0_67, %c0_68] : memref<128x768xbf16, #tpu.memory_space<vmem>>, vector<128x768xbf16>
    %cst_69 = arith.constant dense<0.000000e+00> : vector<4x768xf32>
    %142 = tpu.matmul %140, %141, %cst_69 {dimension_numbers = #tpu.dot_dimension_numbers<[1], [0], [0], [1], [0, 0, 1, 1], [], []>} : vector<4x128xbf16>, vector<128x768xbf16>, vector<4x768xf32> -> vector<4x768xf32>
    %c0_70 = arith.constant 0 : index
    %c0_71 = arith.constant 0 : index
    %143 = vector.load %arg13[%c0_70, %c0_71] : memref<16x768xbf16, #tpu.memory_space<vmem>>, vector<16x768xbf16>
    %cst_72 = arith.constant dense<0.000000e+00> : vector<4x768xf32>
    %144 = tpu.matmul %139, %143, %cst_72 {dimension_numbers = #tpu.dot_dimension_numbers<[1], [0], [0], [1], [0, 0, 1, 1], [], []>} : vector<4x16xbf16>, vector<16x768xbf16>, vector<4x768xf32> -> vector<4x768xf32>
    %145 = arith.addf %142, %144 : vector<4x768xf32>
    %c0_73 = arith.constant 0 : index
    %c0_74 = arith.constant 0 : index
    %146 = vector.load %arg14[%c0_73, %c0_74] : memref<1x768xf32, #tpu.memory_space<vmem>>, vector<1x768xf32>
    %147 = vector.broadcast %146 : vector<1x768xf32> to vector<4x768xf32>
    %148 = arith.addf %145, %147 : vector<4x768xf32>
    %cst_75 = arith.constant 0.000000e+00 : f32
    %149 = vector.broadcast %cst_75 : f32 to vector<4x768xf32>
    %150 = arith.maximumf %148, %149 : vector<4x768xf32>
    %151 = arith.truncf %150 : vector<4x768xf32> to vector<4x768xbf16>
    %c0_76 = arith.constant 0 : index
    %c0_77 = arith.constant 0 : index
    %152 = vector.load %arg15[%c0_76, %c0_77] : memref<768x384xbf16, #tpu.memory_space<vmem>>, vector<768x384xbf16>
    %cst_78 = arith.constant dense<0.000000e+00> : vector<4x384xf32>
    %153 = tpu.matmul %151, %152, %cst_78 {dimension_numbers = #tpu.dot_dimension_numbers<[1], [0], [0], [1], [0, 0, 1, 1], [], []>} : vector<4x768xbf16>, vector<768x384xbf16>, vector<4x384xf32> -> vector<4x384xf32>
    %c0_79 = arith.constant 0 : index
    %c0_80 = arith.constant 0 : index
    %154 = vector.load %arg16[%c0_79, %c0_80] : memref<1x384xf32, #tpu.memory_space<vmem>>, vector<1x384xf32>
    %155 = vector.broadcast %154 : vector<1x384xf32> to vector<4x384xf32>
    %156 = arith.addf %153, %155 : vector<4x384xf32>
    %cst_81 = arith.constant 0.000000e+00 : f32
    %157 = vector.broadcast %cst_81 : f32 to vector<4x384xf32>
    %158 = arith.maximumf %156, %157 : vector<4x384xf32>
    %159 = arith.truncf %158 : vector<4x384xf32> to vector<4x384xbf16>
    %c0_82 = arith.constant 0 : index
    %c0_83 = arith.constant 0 : index
    %160 = vector.load %arg17[%c0_82, %c0_83] : memref<384x128xbf16, #tpu.memory_space<vmem>>, vector<384x128xbf16>
    %cst_84 = arith.constant dense<0.000000e+00> : vector<4x128xf32>
    %161 = tpu.matmul %159, %160, %cst_84 {dimension_numbers = #tpu.dot_dimension_numbers<[1], [0], [0], [1], [0, 0, 1, 1], [], []>} : vector<4x384xbf16>, vector<384x128xbf16>, vector<4x128xf32> -> vector<4x128xf32>
    %c0_85 = arith.constant 0 : index
    %c0_86 = arith.constant 0 : index
    %162 = vector.load %arg18[%c0_85, %c0_86] : memref<1x128xf32, #tpu.memory_space<vmem>>, vector<1x128xf32>
    %163 = vector.broadcast %162 : vector<1x128xf32> to vector<4x128xf32>
    %164 = arith.addf %161, %163 : vector<4x128xf32>
    %cst_87 = arith.constant 0.000000e+00 : f32
    %165 = vector.broadcast %cst_87 : f32 to vector<4x128xf32>
    %166 = arith.maximumf %164, %165 : vector<4x128xf32>
    %167 = arith.truncf %166 : vector<4x128xf32> to vector<4x128xbf16>
    %c0_88 = arith.constant 0 : index
    %c0_89 = arith.constant 0 : index
    %168 = vector.load %arg19[%c0_88, %c0_89] : memref<128x128xbf16, #tpu.memory_space<vmem>>, vector<128x128xbf16>
    %cst_90 = arith.constant dense<0.000000e+00> : vector<4x128xf32>
    %169 = tpu.matmul %167, %168, %cst_90 {dimension_numbers = #tpu.dot_dimension_numbers<[1], [0], [0], [1], [0, 0, 1, 1], [], []>} : vector<4x128xbf16>, vector<128x128xbf16>, vector<4x128xf32> -> vector<4x128xf32>
    %c0_91 = arith.constant 0 : index
    %c0_92 = arith.constant 0 : index
    %170 = vector.load %arg20[%c0_91, %c0_92] : memref<1x128xf32, #tpu.memory_space<vmem>>, vector<1x128xf32>
    %171 = vector.broadcast %170 : vector<1x128xf32> to vector<4x128xf32>
    %172 = arith.addf %169, %171 : vector<4x128xf32>
    %cst_93 = arith.constant 0.000000e+00 : f32
    %173 = vector.broadcast %cst_93 : f32 to vector<4x128xf32>
    %174 = arith.maximumf %172, %173 : vector<4x128xf32>
    %175 = arith.truncf %174 : vector<4x128xf32> to vector<4x128xbf16>
    %c0_94 = arith.constant 0 : index
    %c0_95 = arith.constant 0 : index
    %176 = vector.load %arg21[%c0_94, %c0_95] : memref<128x128xbf16, #tpu.memory_space<vmem>>, vector<128x128xbf16>
    %cst_96 = arith.constant dense<0.000000e+00> : vector<4x128xf32>
    %177 = tpu.matmul %175, %176, %cst_96 {dimension_numbers = #tpu.dot_dimension_numbers<[1], [0], [0], [1], [0, 0, 1, 1], [], []>} : vector<4x128xbf16>, vector<128x128xbf16>, vector<4x128xf32> -> vector<4x128xf32>
    %c0_97 = arith.constant 0 : index
    %c0_98 = arith.constant 0 : index
    %178 = vector.load %arg22[%c0_97, %c0_98] : memref<1x128xf32, #tpu.memory_space<vmem>>, vector<1x128xf32>
    %179 = vector.broadcast %178 : vector<1x128xf32> to vector<4x128xf32>
    %180 = arith.addf %177, %179 : vector<4x128xf32>
    %181 = arith.negf %180 : vector<4x128xf32>
    %182 = math.exp %181 : vector<4x128xf32>
    %cst_99 = arith.constant 1.000000e+00 : f32
    %183 = vector.broadcast %cst_99 : f32 to vector<4x128xf32>
    %184 = arith.addf %183, %182 : vector<4x128xf32>
    %185 = arith.divf %183, %184 : vector<4x128xf32>
    %c0_100 = arith.constant 0 : index
    %c0_101 = arith.constant 0 : index
    %c0_102 = arith.constant 0 : index
    %186 = vector.load %arg23[%c0_100, %c0_101, %c0_102] : memref<1x4x128xf32, #tpu.memory_space<vmem>>, vector<1x4x128xf32>
    %187 = vector.shape_cast %186 : vector<1x4x128xf32> to vector<4x128xf32>
    %188 = vector.shape_cast %185 : vector<4x128xf32> to vector<1x4x128xf32>
    tpu.vector_store %arg23[%c0_100, %c0_101, %c0_102], %188 {strides = array<i32>} : memref<1x4x128xf32, #tpu.memory_space<vmem>>, vector<1x4x128xf32>,
    return
  }
  func.func @transform_0(%arg0: i32) -> (i32, i32, i32, i32) {
    %c0_i32 = arith.constant 0 : i32
    %c0_i32_0 = arith.constant 0 : i32
    %c0_i32_1 = arith.constant 0 : i32
    %c0_i32_2 = arith.constant 0 : i32
    return %arg0, %c0_i32, %c0_i32_0, %c0_i32_1 : i32, i32, i32, i32
  }
  func.func @transform_1(%arg0: i32) -> (i32, i32, i32, i32) {
    %c0_i32 = arith.constant 0 : i32
    %c0_i32_0 = arith.constant 0 : i32
    %c0_i32_1 = arith.constant 0 : i32
    %c0_i32_2 = arith.constant 0 : i32
    return %arg0, %c0_i32, %c0_i32_0, %c0_i32_1 : i32, i32, i32, i32
  }
  func.func @transform_2(%arg0: i32) -> (i32, i32, i32) {
    %c0_i32 = arith.constant 0 : i32
    %c0_i32_0 = arith.constant 0 : i32
    %c0_i32_1 = arith.constant 0 : i32
    return %arg0, %c0_i32, %c0_i32_0 : i32, i32, i32
  }
  func.func @transform_3(%arg0: i32) -> (i32, i32, i32) {
    %c0_i32 = arith.constant 0 : i32
    %c0_i32_0 = arith.constant 0 : i32
    %c0_i32_1 = arith.constant 0 : i32
    %c0_i32_2 = arith.constant 0 : i32
    return %c0_i32, %c0_i32_0, %c0_i32_1 : i32, i32, i32
  }
  func.func @transform_4(%arg0: i32) -> (i32, i32) {
    %c0_i32 = arith.constant 0 : i32
    %c0_i32_0 = arith.constant 0 : i32
    %c0_i32_1 = arith.constant 0 : i32
    return %c0_i32, %c0_i32_0 : i32, i32
  }
  func.func @transform_5(%arg0: i32) -> (i32, i32) {
    %c0_i32 = arith.constant 0 : i32
    %c0_i32_0 = arith.constant 0 : i32
    %c0_i32_1 = arith.constant 0 : i32
    return %c0_i32, %c0_i32_0 : i32, i32
  }
  func.func @transform_6(%arg0: i32) -> (i32, i32) {
    %c0_i32 = arith.constant 0 : i32
    %c0_i32_0 = arith.constant 0 : i32
    %c0_i32_1 = arith.constant 0 : i32
    return %c0_i32, %c0_i32_0 : i32, i32
  }
  func.func @transform_7(%arg0: i32) -> (i32, i32) {
    %c0_i32 = arith.constant 0 : i32
    %c0_i32_0 = arith.constant 0 : i32
    %c0_i32_1 = arith.constant 0 : i32
    return %c0_i32, %c0_i32_0 : i32, i32
  }
  func.func @transform_8(%arg0: i32) -> (i32, i32) {
    %c0_i32 = arith.constant 0 : i32
    %c0_i32_0 = arith.constant 0 : i32
    %c0_i32_1 = arith.constant 0 : i32
    return %c0_i32, %c0_i32_0 : i32, i32
  }
  func.func @transform_9(%arg0: i32) -> (i32, i32) {
    %c0_i32 = arith.constant 0 : i32
    %c0_i32_0 = arith.constant 0 : i32
    %c0_i32_1 = arith.constant 0 : i32
    return %c0_i32, %c0_i32_0 : i32, i32
  }
  func.func @transform_10(%arg0: i32) -> (i32, i32) {
    %c0_i32 = arith.constant 0 : i32
    %c0_i32_0 = arith.constant 0 : i32
    %c0_i32_1 = arith.constant 0 : i32
    return %c0_i32, %c0_i32_0 : i32, i32
  }
  func.func @transform_11(%arg0: i32) -> (i32, i32) {
    %c0_i32 = arith.constant 0 : i32
    %c0_i32_0 = arith.constant 0 : i32
    %c0_i32_1 = arith.constant 0 : i32
    return %c0_i32, %c0_i32_0 : i32, i32
  }
  func.func @transform_12(%arg0: i32) -> (i32, i32) {
    %c0_i32 = arith.constant 0 : i32
    %c0_i32_0 = arith.constant 0 : i32
    %c0_i32_1 = arith.constant 0 : i32
    return %c0_i32, %c0_i32_0 : i32, i32
  }
  func.func @transform_13(%arg0: i32) -> (i32, i32) {
    %c0_i32 = arith.constant 0 : i32
    %c0_i32_0 = arith.constant 0 : i32
    %c0_i32_1 = arith.constant 0 : i32
    return %c0_i32, %c0_i32_0 : i32, i32
  }
  func.func @transform_14(%arg0: i32) -> (i32, i32) {
    %c0_i32 = arith.constant 0 : i32
    %c0_i32_0 = arith.constant 0 : i32
    %c0_i32_1 = arith.constant 0 : i32
    return %c0_i32, %c0_i32_0 : i32, i32
  }
  func.func @transform_15(%arg0: i32) -> (i32, i32) {
    %c0_i32 = arith.constant 0 : i32
    %c0_i32_0 = arith.constant 0 : i32
    %c0_i32_1 = arith.constant 0 : i32
    return %c0_i32, %c0_i32_0 : i32, i32
  }
  func.func @transform_16(%arg0: i32) -> (i32, i32) {
    %c0_i32 = arith.constant 0 : i32
    %c0_i32_0 = arith.constant 0 : i32
    %c0_i32_1 = arith.constant 0 : i32
    return %c0_i32, %c0_i32_0 : i32, i32
  }
  func.func @transform_17(%arg0: i32) -> (i32, i32) {
    %c0_i32 = arith.constant 0 : i32
    %c0_i32_0 = arith.constant 0 : i32
    %c0_i32_1 = arith.constant 0 : i32
    return %c0_i32, %c0_i32_0 : i32, i32
  }
  func.func @transform_18(%arg0: i32) -> (i32, i32) {
    %c0_i32 = arith.constant 0 : i32
    %c0_i32_0 = arith.constant 0 : i32
    %c0_i32_1 = arith.constant 0 : i32
    return %c0_i32, %c0_i32_0 : i32, i32
  }
  func.func @transform_19(%arg0: i32) -> (i32, i32) {
    %c0_i32 = arith.constant 0 : i32
    %c0_i32_0 = arith.constant 0 : i32
    %c0_i32_1 = arith.constant 0 : i32
    return %c0_i32, %c0_i32_0 : i32, i32
  }
  func.func @transform_20(%arg0: i32) -> (i32, i32) {
    %c0_i32 = arith.constant 0 : i32
    %c0_i32_0 = arith.constant 0 : i32
    %c0_i32_1 = arith.constant 0 : i32
    return %c0_i32, %c0_i32_0 : i32, i32
  }
  func.func @transform_21(%arg0: i32) -> (i32, i32) {
    %c0_i32 = arith.constant 0 : i32
    %c0_i32_0 = arith.constant 0 : i32
    %c0_i32_1 = arith.constant 0 : i32
    return %c0_i32, %c0_i32_0 : i32, i32
  }
  func.func @transform_22(%arg0: i32) -> (i32, i32, i32) {
    %c0_i32 = arith.constant 0 : i32
    %c0_i32_0 = arith.constant 0 : i32
    %c0_i32_1 = arith.constant 0 : i32
    return %arg0, %c0_i32, %c0_i32_0 : i32, i32, i32
  }
}

</mosaic_0001>

<bundles_post_ra>
// kernel: tpu_custom_call.1
= control target key start
LH: loop header
LB: loop body
LE: loop exit
PB: predicated region body
PF: predicated region fallthrough
CT: control target
= control target key end

     0   :  { %s7754_s0 = inlined_call_operand.hbm [shape: f32[2,4,8,128], index: 0, kind: input, shape index: {}]   ;;  %s7755_s1 = inlined_call_operand.hbm [shape: f32[2,4,1,8], index: 1, kind: input, shape index: {}]   ;;  %s7756_s2 = inlined_call_operand.hbm [shape: f32[2,4,16], index: 2, kind: input, shape index: {}]   ;;  %s7757_s3 = inlined_call_operand.hbm [shape: bf16[4,128,128], index: 3, kind: input, shape index: {}]   ;;  %s7758_s4 = inlined_call_operand.vmem [shape: f32[4,128], index: 4, kind: input, shape index: {}]   ;;  %s7759_s5 = inlined_call_operand.hbm [shape: f32[2,128], index: 5, kind: input, shape index: {}]   ;;  %s7760_s6 = inlined_call_operand.hbm [shape: bf16[128,256], index: 6, kind: input, shape index: {}]   ;;  %s7761_s7 = inlined_call_operand.hbm [shape: f32[1,256], index: 7, kind: input, shape index: {}]   ;;  %s7762_s8 = inlined_call_operand.hbm [shape: bf16[256,128], index: 8, kind: input, shape index: {}]   ;;  %s7763_s9 = inlined_call_operand.vmem [shape: f32[1,128], index: 9, kind: input, shape index: {}]   ;;  %s7764_s10 = inlined_call_operand.vmem [shape: f32[2,128], index: 10, kind: input, shape index: {}]   ;;  %s7765_s11 = inlined_call_operand.hbm [shape: bf16[128,768], index: 11, kind: input, shape index: {}]   ;;  %s7766_s12 = inlined_call_operand.hbm [shape: bf16[16,768], index: 12, kind: input, shape index: {}]   ;;  %s7767_s13 = inlined_call_operand.vmem [shape: f32[1,768], index: 13, kind: input, shape index: {}]   ;;  %s7768_s14 = inlined_call_operand.hbm [shape: bf16[768,384], index: 14, kind: input, shape index: {}]   ;;  %s7769_s15 = inlined_call_operand.vmem [shape: f32[1,384], index: 15, kind: input, shape index: {}]   ;;  %s7770_s16 = inlined_call_operand.hbm [shape: bf16[384,128], index: 16, kind: input, shape index: {}]   ;;  %s7771_s17 = inlined_call_operand.vmem [shape: f32[1,128], index: 17, kind: input, shape index: {}]   ;;  %s7772_s18 = inlined_call_operand.hbm [shape: bf16[128,128], index: 18, kind: input, shape index: {}]   ;;  %s7773_s19 = inlined_call_operand.vmem [shape: f32[1,128], index: 19, kind: input, shape index: {}]   ;;  %s7774_s20 = inlined_call_operand.hbm [shape: bf16[128,128], index: 20, kind: input, shape index: {}]   ;;  %s7775_s21 = inlined_call_operand.vmem [shape: f32[1,128], index: 21, kind: input, shape index: {}]   ;;  %s7776_s22 = inlined_call_operand.hbm [shape: f32[2,4,128], index: 22, kind: output, shape index: {}]  }
   0x1   :  { %7813 = sst [smem:[#allocation41_spill]] %s7754_s0 }
   0x2   :  { %7814 = sst [smem:[#allocation42_spill]] %s7755_s1 }
   0x3   :  { %7815 = sst [smem:[#allocation43_spill]] %s7756_s2 }
   0x4   :  { %7816 = sst [smem:[#allocation44_spill]] %s7757_s3 }
   0x5   :  { %7817 = sst [smem:[#allocation45_spill]] %s7758_s4 }
   0x6   :  { %7818 = sst [smem:[#allocation46_spill]] %s7759_s5 }
   0x7   :  { %7819 = sst [smem:[#allocation47_spill]] %s7760_s6 }
   0x8   :  { %7820 = sst [smem:[#allocation48_spill]] %s7761_s7 }
   0x9   :  { %7821 = sst [smem:[#allocation49_spill]] %s7762_s8 }
   0xa   :  { %7822 = sst [smem:[#allocation50_spill]] %s7765_s11 }
   0xb   :  { %7823 = sst [smem:[#allocation51_spill]] %s7766_s12 }
   0xc   :  { %7824 = sst [smem:[#allocation52_spill]] %s7769_s15 }
   0xd   :  { %7825 = sst [smem:[#allocation53_spill]] %s7770_s16 }
   0xe   :  { %7826 = sst [smem:[#allocation54_spill]] %s7771_s17 }
   0xf   :  { %7827 = sst [smem:[#allocation55_spill]] %s7773_s19 }
  0x10   :  { %7828 = sst [smem:[#allocation56_spill]] %s7775_s21 }
  0x11   :  { %7829 = sst [smem:[#allocation57_spill]] %s7776_s22 }
  0x12   :  { %27 = vsyncpa [#allocation3], 0 }
  0x13   :  { %29 = vsyncpa [#allocation3 + $0x1], 0 }
  0x14   :  { %30 = vsyncpa [#allocation6], 0 }
  0x15   :  { %32 = vsyncpa [#allocation6 + $0x1], 0 }
  0x16   :  { %33 = vsyncpa [#allocation9], 0 }
  0x17   :  { %34 = vsyncpa [#allocation12], 0 }
  0x18   :  { %35 = vsyncpa [#allocation15], 0 }
  0x19   :  { %36 = vsyncpa [#allocation18], 0 }
  0x1a   :  { %37 = vsyncpa [#allocation21], 0 }
  0x1b   :  { %38 = vsyncpa [#allocation24], 0 }
  0x1c   :  { %39 = vsyncpa [#allocation4], 0 }
  0x1d   :  { %41 = vsyncpa [#allocation4 + $0x1], 0  ;;  %s7056_s3 = smov 0   ;;  %s7058_s28 = smov 0  }
  0x1e   :  { %s7060_s29 = smov 0   ;;  %s7062_s30 = smov 0  }
  0x1f LB: > { %7830 = sst [smem:[#allocation35_spill]] %s6899_s3  ;;  %s6913_s4 = smov [#allocation8]   ;;  %s6911_s30 = sphi %s7062_s30, %s7893_s30   ;;  %s6907_s29 = sphi %s7060_s29, %s7895_s29   ;;  %s6903_s28 = sphi %s7058_s28, %s7897_s28   ;;  %s6899_s3 = sphi %s7056_s3, %s7896_s3  }
  0x20   : > { %7831 = sst [smem:[#allocation36_spill]] %s6907_s29  ;;  %s567_s0 = sshll.u32 %s6913_s4, 4  ;;  %s568_s0 = int_to_ptr.vmem [resolvable:$true] %s567_s0 }
  0x21   : > { %s7077_s23 = sadd.s32 4294967295, %s6911_s30   ;;  %p5059_p0 = scmp.ge.s32.totalorder %s6911_s30, 1 }
  0x22   : > { %p7797_p1 = scmp.eq.s32.totalorder %s7077_s23, 0  ;;  %p555_p2 = scmp.lt.s32.totalorder %s6911_s30, 3 }
  0x23   : > { %s6914_s5 = smov [#allocation11]   ;;  %s6915_s25 = smov [#allocation14]  }
  0x24   : > { %p7082_p3 = pnand %p5059_p0, %p555_p2  ;;  %s594_s24 = sshll.u32 %s6914_s5, 4  ;;  %s7095_s24 = int_to_ptr.vmem [resolvable:$true] %s594_s24 }
  0x25   : > { %s7097_s26 = sshll.u32 %s6915_s25, 4  ;;  %s6460_s27 = scalar_lea.vmem %s568_s0, 4096  ;;  %s619_s26 = int_to_ptr.vmem [resolvable:$true] %s7097_s26 }
  0x26   : > { %s7832_s1 = scalar_select %p7082_p3, 1, 0 }
  0x27   : > { %p5880_p5 = pneg %p7082_p3  ;;  %p6461_p8 = scmp.ne.s32.totalorder %s568_s0, %s6460_s27 }
  0x28   : > { %p6468_p11 = scmp.lt.s32.totalorder %s568_s0, %s568_s0  ;;  %p6469_p12 = scmp.lt.s32.totalorder %s6460_s27, %s6460_s27 }
  0x29   : > { %p7091_p6 = pnand %p5880_p5, %p7797_p1 }
  0x2a   : > { %p6470_p13 = por %p6469_p12, %p6468_p11 }
  0x2b   : > { %s7833_s6 = scalar_select %p7091_p6, 1, 0 }
  0x2c   : > { %p7101_p7 = pneg %p7091_p6 }
  0x2e   : > { %s7834_s2 = scalar_select %p7101_p7, 1, 0 }
  0x2f   : > { %p6463_p9 = pnand %p6461_p8, %p7101_p7 }
  0x31   : > { %p6464_p10 = pneg %p6463_p9 }
  0x33   : > { %p6471_p0 = pnand %p6470_p13, %p6464_p10 }
  0x35   : > { %6474 = shalt.err (!%p6471_p0)
}
  0x36   : > { %s7785_s4 = smov 64   ;;  %s7787_s5 = smov 4  }
  0x37   : > { %s7835_s21 = sld [smem:[#allocation44_spill]]  ;;  %s6486_s19 = scalar_lea.vmem %s7095_s24, 2048 }
  0x38   : > { %p6487_p2 = scmp.ne.s32.totalorder %s7095_s24, %s6486_s19  ;;  %p6494_p9 = scmp.lt.s32.totalorder %s7095_s24, %s7095_s24 }
  0x39   : > { %p6495_p10 = scmp.lt.s32.totalorder %s6486_s19, %s6486_s19 }
  0x3a   : > { %p6489_p5 = pnand %p6487_p2, %p7101_p7 }
  0x3b   : > { %p6496_p11 = por %p6495_p10, %p6494_p9 }
  0x3c   : > { %p6490_p8 = pneg %p6489_p5 }
  0x3d   : > { %5883 = dma.hbm_to_vmem [thread:$0]  (!%p7091_p6), %s7835_s21, 4096, %s568_s0, [#allocation9], %s7785_s4, %s7785_s4, %s7787_s5  }
  0x3e   : > { %p6497_p12 = pnand %p6496_p11, %p6490_p8 }
  0x40   : > { %6500 = shalt.err (!%p6497_p12)
}
  0x41   : > { %s7782_s27 = smov 128   ;;  %s7783_s17 = smov 8  }
  0x42   : > { %s7836_s0 = sld [smem:[#allocation47_spill]]  ;;  %s6512_s25 = scalar_lea.vmem %s619_s26, 2048 }
  0x43   : > { %p6513_p13 = scmp.ne.s32.totalorder %s619_s26, %s6512_s25  ;;  %p6520_p5 = scmp.lt.s32.totalorder %s619_s26, %s619_s26 }
  0x44   : > { %p6521_p8 = scmp.lt.s32.totalorder %s6512_s25, %s6512_s25 }
  0x45   : > { %p6515_p0 = pnand %p6513_p13, %p7101_p7 }
  0x46   : > { %p6522_p9 = por %p6521_p8, %p6520_p5 }
  0x47   : > { %p6516_p2 = pneg %p6515_p0 }
  0x48   : > { %5889 = dma.hbm_to_vmem [thread:$0]  (!%p7091_p6), %s7836_s0, 2048, %s7095_s24, [#allocation12], %s7782_s27, %s7782_s27, %s7783_s17  }
  0x49   : > { %p6523_p10 = pnand %p6522_p9, %p6516_p2 }
  0x4b   : > { %6526 = shalt.err (!%p6523_p10)
}
  0x4c   : > { %s7837_s8 = sld [smem:[#allocation49_spill]]  ;;  %s6920_s24 = smov [#allocation17]  }
  0x4d   : > { %s650_s21 = sshll.u32 %s6920_s24, 4  ;;  %s6921_s22 = smov [#allocation20]   ;;  %s651_s21 = int_to_ptr.vmem [resolvable:$true] %s650_s21 }
  0x4e   : > { %s682_s0 = sshll.u32 %s6921_s22, 4  ;;  %s6538_s27 = scalar_lea.vmem %s651_s21, 768  ;;  %s683_s0 = int_to_ptr.vmem [resolvable:$true] %s682_s0 }
  0x4f   : > { %p6539_p11 = scmp.ne.s32.totalorder %s651_s21, %s6538_s27  ;;  %p6546_p0 = scmp.lt.s32.totalorder %s651_s21, %s651_s21 }
  0x50   : > { %p6547_p2 = scmp.lt.s32.totalorder %s6538_s27, %s6538_s27 }
  0x51   : > { %p6541_p12 = pnand %p6539_p11, %p7101_p7 }
  0x52   : > { %5895 = dma.hbm_to_vmem [thread:$0]  (!%p7091_p6), %s7837_s8, 2048, %s619_s26, [#allocation15], %s7785_s4, %s7785_s4, %s7787_s5  }
  0x53   : > { %p6542_p13 = pneg %p6541_p12  ;;  %p6548_p5 = por %p6547_p2, %p6546_p0 }
  0x55   : > { %p6549_p8 = pnand %p6548_p5, %p6542_p13 }
  0x57   : > { %6552 = shalt.err (!%p6549_p8)
}
  0x58   : > { %s7789_s25 = smov 384   ;;  %s7790_s15 = smov 24  }
  0x59   : > { %s7838_s12 = sld [smem:[#allocation51_spill]]  ;;  %s6564_s24 = scalar_lea.vmem %s683_s0, 3072 }
  0x5a   : > { %p6565_p9 = scmp.ne.s32.totalorder %s683_s0, %s6564_s24  ;;  %p6572_p12 = scmp.lt.s32.totalorder %s683_s0, %s683_s0 }
  0x5b   : > { %p6573_p13 = scmp.lt.s32.totalorder %s6564_s24, %s6564_s24 }
  0x5c   : > { %p6567_p10 = pnand %p6565_p9, %p7101_p7 }
  0x5d   : > { %p6574_p0 = por %p6573_p13, %p6572_p12 }
  0x5e   : > { %p6568_p11 = pneg %p6567_p10 }
  0x5f   : > { %5901 = dma.hbm_to_vmem [thread:$0]  (!%p7091_p6), %s7838_s12, 768, %s651_s21, [#allocation18], %s7789_s25, %s7789_s25, %s7790_s15  }
  0x60   : > { %p6575_p2 = pnand %p6574_p0, %p6568_p11 }
  0x62   : > { %6578 = shalt.err (!%p6575_p2)
}
  0x63   : > { %s7839_s16 = sld [smem:[#allocation53_spill]]  ;;  %s5058_s21 = sadd.s32 4294967294, %s6911_s30  }
  0x64   : > { %s7163_s26 = sadd.s32 1, %s6911_s30   ;;  %s54_s19 = sadd.s32 1, %s6907_s29 }
  0x65   : > { %7840 = sst [smem:[#allocation37_spill]] %s7163_s26  ;;  %s51_s24 = ssub.s32 %s6911_s30, %s7163_s26 }
  0x66   : > { %p61_p5 = scmp.ne.s32.totalorder %s6907_s29, %s6903_s28  ;;  %p52_p8 = scmp.eq.s32.totalorder %s51_s24, 0 }
  0x67   : > { %p62_p9 = scmp.eq.s32.totalorder %s6911_s30, 0  ;;  %p67_p10 = scmp.ne.s32.totalorder %s6903_s28, %s6899_s3 }
  0x68   : > { %p542_p11 = scmp.eq.s32.totalorder %s7077_s23, 1  ;;  %p548_p2 = scmp.eq.s32.totalorder %s5058_s21, 1 }
  0x69   : > { %5907 = dma.hbm_to_vmem [thread:$0]  (!%p7091_p6), %s7839_s16, 3072, %s683_s0, [#allocation21], %s7785_s4, %s7785_s4, %s7787_s5  }
  0x6a   : > { %s7175_s27 = scalar_select %p52_p8, %s6907_s29, %s54_s19  }
  0x6b   : > { %p63_p12 = por %p62_p9, %p61_p5  ;;  %p7179_p13 = por %p7797_p1, %p67_p10 }
  0x6c   : > { %7841 = sst [smem:[#allocation38_spill]] %s7175_s27  ;;  %p7183_p0 = por %p542_p11, %p61_p5 }
  0x6d   : > { %s7842_s0 = scalar_select %p7179_p13, 1, 0 }
  0x6e   : > { %s7843_s22 = scalar_select %p7183_p0, 1, 0 }
  0x6f   : > { %p5939_p4 = scmp.lt.s32.totalorder %s6911_s30, 2  ;;  %s7189_s17 = sand.u32 1, %s6907_s29  }
  0x70   : > { %7844 = sst [smem:[#allocation39_spill]] %s7843_s22  ;;  %p7191_p3 = por %p548_p2, %p67_p10 }
  0x71   : > { %s752_s19 = sand.u32 1, %s6911_s30   ;;  %p7196_p8 = pnand %p5939_p4, %p63_p12 }
  0x72   : > { %s7845_s24 = scalar_select %p7191_p3, 1, 0 }
  0x73   : > { %s7847_s4 = scalar_select %p7196_p8, 1, 0 }
  0x74   : > { %7846 = sst [smem:[#allocation40_spill]] %s7845_s24  ;;  %s7795_s5 = sshll.u32 %s7189_s17, 2 }
  0x75   : > { %s7796_s25 = sshll.u32 %s6911_s30, 6  ;;  %s7848_s8 = sld [smem:[#allocation42_spill]] }
  0x76   : > { %s756_s16 = scalar_lea.vmem [#allocation5], %s7795_s5  ;;  %s7213_s29 = scalar_lea.sflag [#allocation6], %s752_s19 }
  0x77   : > { %s763_s27 = sshll.u32 %s756_s16, 4  ;;  %p7219_p5 = pneg %p7196_p8  ;;  %s7211_s27 = int_to_ptr.vmem [resolvable:$true] %s763_s27 }
  0x79   : > { %s7849_s24 = scalar_select %p7219_p5, 1, 0 }
  0x7b   : > { %s7207_s12 = scalar_lea.hbm %s7848_s8, %s7796_s25  ;;  %s6584_s5 = scalar_lea.hbm %s7848_s8, 128 }
  0x7c   : > { %s6579_s26 = scalar_lea.hbm %s7207_s12, 64  ;;  %p6585_p11 = scmp.lt.s32.totalorder %s7207_s12, %s7848_s8 }
  0x7d   : > { %p6580_p4 = scmp.ne.s32.totalorder %s7207_s12, %s6579_s26  ;;  %p6586_p12 = scmp.lt.s32.totalorder %s6584_s5, %s6579_s26 }
  0x7f   : > { %p6582_p9 = pnand %p7219_p5, %p6580_p4  ;;  %p6587_p2 = por %p6586_p12, %p6585_p11 }
  0x81   : > { %p6583_p10 = pneg %p6582_p9 }
  0x83   : > { %p6588_p1 = pnand %p6587_p2, %p6583_p10 }
  0x85   : > { %6591 = shalt.err (!%p6588_p1)
}
  0x86   : > { %s6592_s19 = scalar_lea.vmem %s7211_s27, 64  ;;  %s6924_s3 = smov [#allocation5]  }
  0x87   : > { %p6593_p3 = scmp.ne.s32.totalorder %s7211_s27, %s6592_s19  ;;  %s6597_s15 = sshll.u32 %s6924_s3, 4  ;;  %s6598_s15 = int_to_ptr.vmem [resolvable:$false] %s6597_s15 }
  0x88   : > { %s6599_s21 = scalar_lea.vmem %s6598_s15, 128  ;;  %p6600_p0 = scmp.lt.s32.totalorder %s7211_s27, %s6598_s15 }
  0x89   : > { %p6595_p4 = pnand %p6593_p3, %p7219_p5  ;;  %p6601_p13 = scmp.lt.s32.totalorder %s6599_s21, %s6592_s19 }
  0x8b   : > { %p6596_p9 = pneg %p6595_p4  ;;  %p6602_p6 = por %p6601_p13, %p6600_p0 }
  0x8d   : > { %p6603_p7 = pnand %p6602_p6, %p6596_p9 }
  0x8f   : > { %6606 = shalt.err (!%p6603_p7)
}
  0x90   : > { %s6925_s5 = smov 16   ;;  %s6926_s25 = smov 1  }
  0x91   : > { %5920 = dma.hbm_to_vmem [thread:$0]  (!%p7196_p8), %s7207_s12, 64, %s7211_s27, %s7213_s29, %s6925_s5, %s6925_s5, %s6926_s25  }
  0x92   : > { %s6927_s26 = smov [#allocation10]   ;;  %s6928_s3 = smov [#allocation13]  }
  0x93   : > { %s584_s16 = sshll.u32 %s6927_s26, 4  ;;  %s608_s8 = sshll.u32 %s6928_s3, 4  ;;  %s585_s16 = int_to_ptr.vmem [resolvable:$true] %s584_s16  ;;  %s609_s8 = int_to_ptr.vmem [resolvable:$true] %s608_s8 }
  0x94   : > { %s6618_s22 = scalar_lea.vmem %s585_s16, 32  ;;  %p7850_p3 = scmp.ne.s32.totalorder %s7834_s2, 0 }
  0x95   : > { %p6619_p1 = scmp.ne.s32.totalorder %s585_s16, %s6618_s22  ;;  %p6626_p7 = scmp.lt.s32.totalorder %s585_s16, %s585_s16 }
  0x96   : > { %p6627_p0 = scmp.lt.s32.totalorder %s6618_s22, %s6618_s22 }
  0x97   : > { %p6621_p13 = pnand %p6619_p1, %p7850_p3 }
  0x98   : > { %p6628_p10 = por %p6627_p0, %p6626_p7 }
  0x99   : > { %p6622_p6 = pneg %p6621_p13 }
  0x9b   : > { %p6629_p11 = pnand %p6628_p10, %p6622_p6 }
  0x9d   : > { %6632 = shalt.err (!%p6629_p11)
}
  0x9e   : > { %p7851_p12 = scmp.ne.s32.totalorder %s7833_s6, 0  ;;  %s7852_s12 = sld [smem:[#allocation46_spill]] }
  0x9f   : > { %s6644_s27 = scalar_lea.vmem %s609_s8, 32  ;;  %p6652_p1 = scmp.lt.s32.totalorder %s609_s8, %s609_s8 }
  0xa0   : > { %p6645_p2 = scmp.ne.s32.totalorder %s609_s8, %s6644_s27  ;;  %p6653_p13 = scmp.lt.s32.totalorder %s6644_s27, %s6644_s27 }
  0xa2   : > { %p6647_p4 = pnand %p6645_p2, %p7850_p3  ;;  %p6654_p8 = por %p6653_p13, %p6652_p1 }
  0xa4   : > { %5886 = dma.hbm_to_vmem [thread:$0]  (!%p7851_p12), %s7852_s12, 32, %s585_s16, [#allocation9]  }
  0xa5   : > { %p6648_p9 = pneg %p6647_p4 }
  0xa7   : > { %p6655_p5 = pnand %p6654_p8, %p6648_p9 }
  0xa9   : > { %6658 = shalt.err (!%p6655_p5)
}
  0xaa   : > { %s7853_s7 = sld [smem:[#allocation48_spill]]  ;;  %s6929_s5 = smov [#allocation16]  }
  0xab   : > { %s637_s25 = sshll.u32 %s6929_s5, 4  ;;  %s6930_s26 = smov [#allocation19]   ;;  %s638_s25 = int_to_ptr.vmem [resolvable:$true] %s637_s25 }
  0xac   : > { %s666_s16 = sshll.u32 %s6930_s26, 4  ;;  %s6670_s3 = scalar_lea.vmem %s638_s25, 6144  ;;  %s667_s16 = int_to_ptr.vmem [resolvable:$true] %s666_s16 }
  0xad   : > { %p6671_p6 = scmp.ne.s32.totalorder %s638_s25, %s6670_s3  ;;  %p6678_p10 = scmp.lt.s32.totalorder %s638_s25, %s638_s25 }
  0xae   : > { %p6679_p8 = scmp.lt.s32.totalorder %s6670_s3, %s6670_s3 }
  0xaf   : > { %p6673_p7 = pnand %p6671_p6, %p7850_p3 }
  0xb0   : > { %5892 = dma.hbm_to_vmem [thread:$0]  (!%p7851_p12), %s7853_s7, 32, %s609_s8, [#allocation12]  }
  0xb1   : > { %p6674_p0 = pneg %p6673_p7  ;;  %p6680_p5 = por %p6679_p8, %p6678_p10 }
  0xb3   : > { %p6681_p11 = pnand %p6680_p5, %p6674_p0 }
  0xb5   : > { %6684 = shalt.err (!%p6681_p11)
}
  0xb6   : > { %s7854_s19 = smov 24   ;;  %s7855_s15 = smov 384  }
  0xb7   : > { %s7856_s11 = sld [smem:[#allocation50_spill]]  ;;  %s6696_s27 = scalar_lea.vmem %s667_s16, 18432 }
  0xb8   : > { %p6697_p2 = scmp.ne.s32.totalorder %s667_s16, %s6696_s27  ;;  %p6704_p1 = scmp.lt.s32.totalorder %s667_s16, %s667_s16 }
  0xb9   : > { %p6705_p13 = scmp.lt.s32.totalorder %s6696_s27, %s6696_s27 }
  0xba   : > { %p6699_p4 = pnand %p6697_p2, %p7850_p3 }
  0xbb   : > { %p6706_p6 = por %p6705_p13, %p6704_p1 }
  0xbc   : > { %p6700_p9 = pneg %p6699_p4 }
  0xbd   : > { %5898 = dma.hbm_to_vmem [thread:$0]  (!%p7851_p12), %s7856_s11, 6144, %s638_s25, [#allocation15], %s7855_s15, %s7855_s15, %s7854_s19  }
  0xbe   : > { %p6707_p7 = pnand %p6706_p6, %p6700_p9 }
  0xc0   : > { %6710 = shalt.err (!%p6707_p7)
}
  0xc1   : > { %s6931_s22 = smov 192   ;;  %s6932_s21 = smov 12  }
  0xc2   : > { %5904 = dma.hbm_to_vmem [thread:$0]  (!%p7851_p12), %s7768_s14, 18432, %s667_s16, [#allocation18], %s6931_s22, %s6931_s22, %s6932_s21  }
  0xc3   : > { %s6933_s25 = smov [#allocation22]   ;;  %s6934_s19 = smov [#allocation23]  }
  0xc4   : > { %s698_s3 = sshll.u32 %s6933_s25, 4  ;;  %s714_s15 = sshll.u32 %s6934_s19, 4  ;;  %s699_s3 = int_to_ptr.vmem [resolvable:$true] %s698_s3  ;;  %s715_s15 = int_to_ptr.vmem [resolvable:$true] %s714_s15 }
  0xc5   : > { %s6722_s8 = scalar_lea.vmem %s699_s3, 1024  ;;  %p6730_p5 = scmp.lt.s32.totalorder %s699_s3, %s699_s3 }
  0xc6   : > { %p6723_p0 = scmp.ne.s32.totalorder %s699_s3, %s6722_s8  ;;  %p6731_p11 = scmp.lt.s32.totalorder %s6722_s8, %s6722_s8 }
  0xc8   : > { %p6725_p10 = pnand %p6723_p0, %p7850_p3  ;;  %p6732_p2 = por %p6731_p11, %p6730_p5 }
  0xca   : > { %p6726_p8 = pneg %p6725_p10 }
  0xcc   : > { %p6733_p4 = pnand %p6732_p2, %p6726_p8 }
  0xce   : > { %6736 = shalt.err (!%p6733_p4)
}
  0xcf   : > { %s7857_s12 = smov 4   ;;  %s7858_s27 = smov 64  }
  0xd0   : > { %5910 = dma.hbm_to_vmem [thread:$0]  (!%p7851_p12), %s7772_s18, 1024, %s699_s3, [#allocation21], %s7858_s27, %s7858_s27, %s7857_s12  }
  0xd1   : > { %s6748_s21 = scalar_lea.vmem %s715_s15, 1024  ;;  %p6756_p6 = scmp.lt.s32.totalorder %s715_s15, %s715_s15 }
  0xd2   : > { %p6749_p9 = scmp.ne.s32.totalorder %s715_s15, %s6748_s21  ;;  %p6757_p7 = scmp.lt.s32.totalorder %s6748_s21, %s6748_s21 }
  0xd4   : > { %p6751_p1 = pnand %p6749_p9, %p7850_p3  ;;  %p6758_p0 = por %p6757_p7, %p6756_p6 }
  0xd6   : > { %p6752_p13 = pneg %p6751_p1 }
  0xd8   : > { %p6759_p10 = pnand %p6758_p0, %p6752_p13 }
  0xda   : > { %6762 = shalt.err (!%p6759_p10)
}
  0xdb   : > { %5913 = dma.hbm_to_vmem [thread:$0]  (!%p7851_p12), %s7774_s20, 1024, %s715_s15, [#allocation24], %s7858_s27, %s7858_s27, %s7857_s12  }
  0xdc   : > { %s5072_s2 = sshll.u32 %s7189_s17, 5  ;;  %s5428_s25 = sshll.u32 %s6911_s30, 9 }
  0xdd   : > { %s7859_s8 = sld [smem:[#allocation41_spill]]  ;;  %s735_s6 = scalar_lea.vmem [#allocation2], %s5072_s2 }
  0xde   : > { %s742_s22 = sshll.u32 %s735_s6, 4  ;;  %s7860_s21 = sshll.u32 %s6911_s30, 6  ;;  %s7300_s22 = int_to_ptr.vmem [resolvable:$true] %s742_s22 }
  0xdf   : > { %s7861_s7 = sld [smem:[#allocation43_spill]]  ;;  %s732_s15 = scalar_lea.sflag [#allocation3], %s7189_s17 }
  0xe0   : > { %p7862_p12 = scmp.ne.s32.totalorder %s7849_s24, 0 }
  0xe3   : > { %s7298_s16 = scalar_lea.hbm %s7859_s8, %s5428_s25  ;;  %s6768_s3 = scalar_lea.hbm %s7859_s8, 1024 }
  0xe4   : > { %s6763_s12 = scalar_lea.hbm %s7298_s16, 512  ;;  %p6769_p11 = scmp.lt.s32.totalorder %s7298_s16, %s7859_s8 }
  0xe5   : > { %s7307_s11 = scalar_lea.hbm %s7861_s7, %s7860_s21  ;;  %p6764_p3 = scmp.ne.s32.totalorder %s7298_s16, %s6763_s12 }
  0xe6   : > { %p6770_p2 = scmp.lt.s32.totalorder %s6768_s3, %s6763_s12 }
  0xe7   : > { %p6766_p8 = pnand %p6764_p3, %p7862_p12 }
  0xe8   : > { %p6771_p4 = por %p6770_p2, %p6769_p11 }
  0xe9   : > { %p6767_p5 = pneg %p6766_p8 }
  0xeb   : > { %p6772_p9 = pnand %p6771_p4, %p6767_p5 }
  0xed   : > { %6775 = shalt.err (!%p6772_p9)
}
  0xee   : > { %s6776_s6 = scalar_lea.vmem %s7300_s22, 512  ;;  %s6935_s21 = smov [#allocation2]  }
  0xef   : > { %p6777_p1 = scmp.ne.s32.totalorder %s7300_s22, %s6776_s6  ;;  %s6781_s5 = sshll.u32 %s6935_s21, 4  ;;  %s6782_s5 = int_to_ptr.vmem [resolvable:$false] %s6781_s5 }
  0xf0   : > { %s6783_s26 = scalar_lea.vmem %s6782_s5, 1024  ;;  %p6784_p7 = scmp.lt.s32.totalorder %s7300_s22, %s6782_s5 }
  0xf1   : > { %p6779_p13 = pnand %p6777_p1, %p7862_p12  ;;  %p6785_p0 = scmp.lt.s32.totalorder %s6783_s26, %s6776_s6 }
  0xf3   : > { %p6780_p6 = pneg %p6779_p13  ;;  %p6786_p10 = por %p6785_p0, %p6784_p7 }
  0xf5   : > { %p6787_p3 = pnand %p6786_p10, %p6780_p6 }
  0xf7   : > { %6790 = shalt.err (!%p6787_p3)
}
  0xf8   : > { %p7863_p8 = scmp.ne.s32.totalorder %s7847_s4, 0  ;;  %s7864_s12 = smov 8  }
  0xf9   : > { %s7865_s27 = smov 128   ;;  %s7866_s25 = sshll.u32 %s7189_s17, 2 }
  0xfa   : > { %5917 = dma.hbm_to_vmem [thread:$0]  (!%p7863_p8), %s7298_s16, 512, %s7300_s22, %s732_s15, %s7865_s27, %s7865_s27, %s7864_s12  }
  0xfb   : > { %s777_s3 = scalar_lea.vmem [#allocation7], %s7866_s25  ;;  %s6791_s19 = scalar_lea.hbm %s7307_s11, 64 }
  0xfc   : > { %s784_s2 = sshll.u32 %s777_s3, 4  ;;  %p6792_p5 = scmp.ne.s32.totalorder %s7307_s11, %s6791_s19  ;;  %s785_s2 = int_to_ptr.vmem [resolvable:$true] %s784_s2 }
  0xfd   : > { %s6796_s5 = scalar_lea.hbm %s7861_s7, 128  ;;  %p6797_p4 = scmp.lt.s32.totalorder %s7307_s11, %s7861_s7 }
  0xfe   : > { %p6794_p11 = pnand %p6792_p5, %p7862_p12  ;;  %p6798_p9 = scmp.lt.s32.totalorder %s6796_s5, %s6791_s19 }
 0x100   : > { %p6795_p2 = pneg %p6794_p11  ;;  %p6799_p1 = por %p6798_p9, %p6797_p4 }
 0x102   : > { %p6800_p13 = pnand %p6799_p1, %p6795_p2 }
 0x104   : > { %6803 = shalt.err (!%p6800_p13)
}
 0x105   : > { %s6804_s17 = scalar_lea.vmem %s785_s2, 64  ;;  %s6936_s16 = smov [#allocation7]  }
 0x106   : > { %p6805_p6 = scmp.ne.s32.totalorder %s785_s2, %s6804_s17  ;;  %s6809_s22 = sshll.u32 %s6936_s16, 4  ;;  %s6810_s22 = int_to_ptr.vmem [resolvable:$false] %s6809_s22 }
 0x107   : > { %s6811_s15 = scalar_lea.vmem %s6810_s22, 128  ;;  %p6812_p10 = scmp.lt.s32.totalorder %s785_s2, %s6810_s22 }
 0x108   : > { %p6807_p7 = pnand %p6805_p6, %p7862_p12  ;;  %p6813_p3 = scmp.lt.s32.totalorder %s6811_s15, %s6804_s17 }
 0x10a   : > { %p6808_p0 = pneg %p6807_p7  ;;  %p6814_p5 = por %p6813_p3, %p6812_p10 }
 0x10c   : > { %p6815_p11 = pnand %p6814_p5, %p6808_p0 }
 0x10e   : > { %6818 = shalt.err (!%p6815_p11)
}
 0x10f   : > { %5923 = dma.hbm_to_vmem [thread:$0]  (!%p7863_p8), %s7307_s11, 64, %s785_s2, %s7213_s29  }
 0x110   : > { %p7867_p2 = scmp.ne.s32.totalorder %s7832_s1, 0 }
 0x111   : > { %s7355_s24 = sand.u32 (!%p7867_p2), 1, %s6903_s28   ;;  %p7868_p12 = scmp.ne.s32.totalorder (!%p7867_p2), %s7842_s0, 0 }
 0x112   : > { %793 = sbr.rel (%p7867_p2) target bundleno = 3878 (0xf26), region = 108  ;;  %s5081_s8 = sshll.u32 (!%p7867_p2), %s7355_s24, 5 }
 0x113   : > { %s796_s12 = scalar_lea.sflag (!%p7867_p2), [#allocation3], %s7355_s24  ;;  %s7359_s27 = scalar_lea.vmem (!%p7867_p2), [#allocation2], %s5081_s8 }
 0x117   : > { %6862 = dma.done.wait (%p7868_p12), %s796_s12, 512  }
 0x118   : > { %6864 = vsyncadd (%p7868_p12), %s796_s12, 4294966784  ;;  %s804_s11 = sand.u32 1, %s7077_s23   ;;  %s7367_s29 = sshll.u32 %s7355_s24, 2 }
 0x119   : > { %s805_s1 = scalar_lea.sflag [#allocation6], %s804_s11  ;;  %s7370_s4 = scalar_lea.vmem [#allocation5], %s7367_s29 }
 0x11a   : > { %6866 = dma.done.wait (%p7868_p12), %s805_s1, 128  }
 0x11b   : > { %6868 = vsyncadd (%p7868_p12), %s805_s1, 4294967168  ;;  %s817_s25 = scalar_lea.vmem [#allocation7], %s7367_s29  ;;  %p7869_p8 = scmp.eq.s32.totalorder %s7077_s23, 0 }
 0x11d   : > { %6870 = dma.done.wait (%p7869_p8), [#allocation9], 4128   ;;  %p7870_p4 = pmov %p7869_p8 }
 0x11f   : > { %6872 = vsyncadd (%p7870_p4), [#allocation9], 4294963168  ;;  %p7871_p9 = pmov %p7870_p4 }
 0x120   : > { %p7872_p1 = pmov %p7870_p4 }
 0x121   : > { %6874 = dma.done.wait (%p7871_p9), [#allocation12], 2080  }
 0x122   : > { %6876 = vsyncadd (%p7872_p1), [#allocation12], 4294965216  ;;  %p7873_p13 = pmov %p7872_p1 }
 0x123   : > { %p7874_p6 = pmov %p7872_p1 }
 0x124   : > { %6878 = dma.done.wait (%p7873_p13), [#allocation15], 8192  }
 0x125   : > { %6880 = vsyncadd (%p7874_p6), [#allocation15], 4294959104  ;;  %p7875_p7 = pmov %p7872_p1 }
 0x126   : > { %p7876_p0 = pmov %p7872_p1 }
 0x127   : > { %6882 = dma.done.wait (%p7875_p7), [#allocation18], 19200  }
 0x128   : > { %6884 = vsyncadd (%p7876_p0), [#allocation18], 4294948096  ;;  %p7877_p10 = pmov %p7876_p0 }
 0x129   : > { %p7878_p3 = pmov %p7876_p0 }
 0x12a   : > { %6886 = dma.done.wait (%p7877_p10), [#allocation21], 4096  }
 0x12b   : > { %6888 = vsyncadd (%p7878_p3), [#allocation21], 4294963200  ;;  %p7879_p5 = pmov %p7876_p0 }
 0x12c   : > { %p7880_p11 = pmov %p7876_p0 }
 0x12d   : > { %6890 = dma.done.wait (%p7879_p5), [#allocation24], 1024  }
 0x12e   : > { %6892 = vsyncadd (%p7880_p11), [#allocation24], 4294966272  ;;  %v6008_v0 = vld [vmem:[#allocation8 + $0x78] sm:$0xff]   ;;  %v6010_v2 = vld [vmem:[#allocation8 + $0x70] sm:$0xff]   ;;  %v6937_v22 = vmov 0.0   ;;  %vm6938_vm0 = vmmov 0  }
 0x12f   : > { %v6009_v1 = vld [vmem:[#allocation8 + $0x38] sm:$0xff]   ;;  %5652 = vmatprep.subr.bf16.mxu1 %v6008_v0  ;;  %v6011_v3 = vld [vmem:[#allocation8 + $0x30] sm:$0xff]   ;;  %v6012_v4 = vld [vmem:[#allocation8 + $0x68] sm:$0xff]   ;;  %s7881_s2 = sld [smem:[#allocation45_spill]]  ;;  %vm1495_vm1 = vcmask 64512   ;;  %vm1547_vm2 = vcmask 1043456  }
 0x130   : > { %5632 = vmatprep.subr.bf16.mxu0 %v6009_v1  ;;  %5653 = vmatpush3.bf16.msra.mxu1 %v6008_v0  ;;  %v6013_v5 = vld [vmem:[#allocation8 + $0x28] sm:$0xff]   ;;  %v6014_v6 = vld [vmem:[#allocation8 + $0x60] sm:$0xff]   ;;  %v6016_v8 = vld [vmem:[#allocation8 + $0x58] sm:$0xff]   ;;  %vm2417_vm4 = vcmask 261120   ;;  %vm2548_vm5 = vcmask 130048   ;;  %s7882_s0 = sld [smem:[#allocation52_spill]] }
 0x131   : > { %5633 = vmatpush3.bf16.msra.mxu0 %v6009_v1  ;;  %5654 = vmatprep.subr.bf16.mxu1 %v6010_v2  ;;  %v6015_v7 = vld [vmem:[#allocation8 + $0x20] sm:$0xff]   ;;  %v6017_v9 = vld [vmem:[#allocation8 + $0x18] sm:$0xff]   ;;  %v6018_v10 = vld [vmem:[#allocation8 + $0x50] sm:$0xff]   ;;  %s7883_s6 = sld [smem:[#allocation54_spill]]  ;;  %s5425_s8 = sshll.u32 %s7077_s23, 6 }
 0x132   : > { %5634 = vmatprep.subr.bf16.mxu0 %v6011_v3  ;;  %v933_v11 = vld [vmem:[%s7359_s27] sm:$0xff]  ;;  %v934_v12 = vld [vmem:[%s7359_s27 + $0x8] sm:$0xff]  ;;  %v6020_v15 = vld [vmem:[#allocation8 + $0x48] sm:$0xff]   ;;  %s7884_s26 = sld [smem:[#allocation55_spill]]  ;;  %s931_s12 = scalar_lea.vmem [#allocation25], %s7367_s29 }
 0x133   : > { %v6019_v13 = vld [vmem:[#allocation8 + $0x10] sm:$0xff]   ;;  %v941_v14 = vpack.c.bf16 %v934_v12, %v933_v11  ;;  %v6021_v16 = vld [vmem:[#allocation8 + $0x8] sm:$0xff]   ;;  %v6022_v17 = vld [vmem:[#allocation8 + $0x40] sm:$0xff]   ;;  %s7885_s22 = sld [smem:[#allocation56_spill]]  ;;  %s6940_s19 = smov [#allocation25]  }
 0x134   : > { %5655 = vmatpush3.bf16.msra.mxu1 %v6010_v2  ;;  %v6023_v18 = vld [vmem:[#allocation8] sm:$0xff]   ;;  %v936_v20 = vld [vmem:[%s7359_s27 + $0x18] sm:$0xff]  ;;  %v6024_v49 = vld [vmem:[#allocation8 + $0xb8] sm:$0xff]   ;;  %s7886_s15 = sld [smem:[#allocation39_spill]] }
 0x135   : > { %5635 = vmatpush3.bf16.msra.mxu0 %v6011_v3  ;;  %5656 = vmatprep.subr.bf16.mxu1 %v6012_v4  ;;  %v935_v19 = vld [vmem:[%s7359_s27 + $0x10] sm:$0xff]  ;;  %v5105_v25 = vld [vmem:[%s7881_s2 + $0x1] ss:$0 sm:$0xff]  ;;  %v5096_v29 = vld [vmem:[%s7881_s2] ss:$0 sm:$0xff] }
 0x136   : > { %5636 = vmatprep.subr.bf16.mxu0 %v6013_v5  ;;  %5668 = vmatprep.mubr.bf16.mxu1 %v941_v14  ;;  %v7405_v21 = vpack.c.bf16 %v936_v20, %v935_v19  ;;  %v6025_v50 = vld [vmem:[#allocation8 + $0xb0] sm:$0xff]   ;;  %v6026_v51 = vld [vmem:[#allocation8 + $0xa8] sm:$0xff]   ;;  %v6027_v52 = vld [vmem:[#allocation8 + $0xa0] sm:$0xff]  }
 0x137   : > { %5648 = vmatprep.mubr.bf16.mxu0 %v941_v14  ;;  %v6028_v53 = vld [vmem:[#allocation8 + $0x98] sm:$0xff]   ;;  %v6029_v54 = vld [vmem:[#allocation8 + $0x90] sm:$0xff]   ;;  %v6030_v55 = vld [vmem:[#allocation8 + $0x88] sm:$0xff]  }
 0x138   : > { %5657 = vmatpush3.bf16.msra.mxu1 %v6012_v4  ;;  %v6031_v56 = vld [vmem:[#allocation8 + $0x80] sm:$0xff]   ;;  %v5123_v57 = vld [vmem:[%s7370_s4] ss:$0 sm:$0xff]  ;;  %v5124_v0 = vld [vmem:[%s7370_s4 + $0x1] ss:$0 sm:$0xff] }
 0x139   : > { %5637 = vmatpush3.bf16.msra.mxu0 %v6013_v5  ;;  %5658 = vmatprep.subr.bf16.mxu1 %v6014_v6 }
 0x13a   : > { %5638 = vmatprep.subr.bf16.mxu0 %v6015_v7  ;;  %p7888_p12 = scmp.ne.s32.totalorder %s7886_s15, 0 }
 0x13c   : > { %5659 = vmatpush3.bf16.msra.mxu1 %v6014_v6 }
 0x13d   : > { %5639 = vmatpush3.bf16.msra.mxu0 %v6015_v7  ;;  %5660 = vmatprep.subr.bf16.mxu1 %v6016_v8  ;;  %v5125_v7 = vld [vmem:[%s7370_s4 + $0x2] ss:$0 sm:$0xff] }
 0x13e   : > { %5640 = vmatprep.subr.bf16.mxu0 %v6017_v9 }
 0x140   : > { %5661 = vmatpush3.bf16.msra.mxu1 %v6016_v8 }
 0x141   : > { %5641 = vmatpush3.bf16.msra.mxu0 %v6017_v9  ;;  %5662 = vmatprep.subr.bf16.mxu1 %v6018_v10 }
 0x142   : > { %5642 = vmatprep.subr.bf16.mxu0 %v6019_v13 }
 0x144   : > { %5663 = vmatpush3.bf16.msra.mxu1 %v6018_v10 }
 0x145   : > { %5643 = vmatpush3.bf16.msra.mxu0 %v6019_v13  ;;  %5664 = vmatprep.subr.bf16.mxu1 %v6020_v15 }
 0x146   : > { %5644 = vmatprep.subr.bf16.mxu0 %v6021_v16 }
 0x148   : > { %5665 = vmatpush3.bf16.msra.mxu1 %v6020_v15 }
 0x149   : > { %5645 = vmatpush3.bf16.msra.mxu0 %v6021_v16  ;;  %5666 = vmatprep.subr.bf16.mxu1 %v6022_v17 }
 0x14a   : > { %5646 = vmatprep.subr.bf16.mxu0 %v6023_v18 }
 0x14c   : > { %5667 = vmatpush3.bf16.msra.mxu1 %v6022_v17 }
 0x14d   : > { %5647 = vmatpush3.bf16.msra.mxu0 %v6023_v18  ;;  %5692 = vmatprep.subr.bf16.mxu1 %v6937_v22 }
 0x14e   : > { %5672 = vmatprep.subr.bf16.mxu0 %v6024_v49 }
 0x14f   : > { %5669 = vmatmul.mubr.bf16.vlgmr.msra.gmra.mxu1 %v7405_v21 }
 0x150   : > { %5649 = vmatmul.mubr.bf16.vlgmr.msra.gmra.mxu0 %v7405_v21  ;;  %5694 = vmatprep.mubr.msk.bf16.mxu1 %vm6938_vm0, %v6937_v22 }
 0x151   : > { %5688 = vmatprep.mubr.bf16.mxu0 %v941_v14  ;;  %5673 = vmatpush3.bf16.msra.mxu0 %v6024_v49  ;;  %v5126_v14 = vld [vmem:[%s7370_s4 + $0x3] ss:$0 sm:$0xff]  ;;  %s7887_s4 = sld [smem:[#allocation57_spill]] }
 0x152   : > { %5674 = vmatprep.subr.bf16.mxu0 %v6025_v50 }
 0x155   : > { %5675 = vmatpush3.bf16.msra.mxu0 %v6025_v50 }
 0x156   : > { %5676 = vmatprep.subr.bf16.mxu0 %v6026_v51 }
 0x159   : > { %5677 = vmatpush3.bf16.msra.mxu0 %v6026_v51 }
 0x15a   : > { %5678 = vmatprep.subr.bf16.mxu0 %v6027_v52 }
 0x15d   : > { %5679 = vmatpush3.bf16.msra.mxu0 %v6027_v52 }
 0x15e   : > { %5680 = vmatprep.subr.bf16.mxu0 %v6028_v53 }
 0x161   : > { %5681 = vmatpush3.bf16.msra.mxu0 %v6028_v53 }
 0x162   : > { %5682 = vmatprep.subr.bf16.mxu0 %v6029_v54 }
 0x165   : > { %5683 = vmatpush3.bf16.msra.mxu0 %v6029_v54 }
 0x166   : > { %5684 = vmatprep.subr.bf16.mxu0 %v6030_v55 }
 0x169   : > { %5685 = vmatpush3.bf16.msra.mxu0 %v6030_v55 }
 0x16a   : > { %5686 = vmatprep.subr.bf16.mxu0 %v6031_v56 }
 0x16d   : > { %5687 = vmatpush3.bf16.msra.mxu0 %v6031_v56 }
 0x16e   : > { %5716 = vmatprep.subr.bf16.mxu0 %v6937_v22 }
 0x170   : > { %5689 = vmatmul.mubr.bf16.vlgmr.msra.gmra.mxu0 %v7405_v21 }
 0x171   : > { %5718 = vmatprep.mubr.msk.bf16.mxu0 %vm6938_vm0, %v6937_v22 }
 0x20f   : > { %v5670_v23 = vpop.f32.mrf.mxu1 }
 0x210   : > { %v5650_v24 = vpop.f32.mrf.mxu0  ;;  %v1174_v40 = vadd.f32 %v5670_v23, %v5105_v25 }
 0x211   : > { %v1165_v26 = vpop.f32.mrf.mxu1  ;;  %v1055_v43 = vadd.f32 %v5650_v24, %v5096_v29 }
 0x212   : > { %v1166_v27 = vadd.f32 %v5105_v25, %v1165_v26  ;;  %v1046_v31 = vpop.f32.mrf.mxu0  ;;  %v1305_v42 = vpack.c.bf16 %v1174_v40, %v1174_v40 }
 0x213   : > { %v5671_v28 = vpop.f32.mrf.mxu1  ;;  %v1047_v33 = vadd.f32 %v5096_v29, %v1046_v31  ;;  %v1301_v45 = vpack.c.bf16 %v1055_v43, %v1055_v43 }
 0x214   : > { %v1303_v30 = vpack.c.bf16 %v1166_v27, %v1166_v27  ;;  %v5651_v34 = vpop.f32.mrf.mxu0  ;;  %v1177_v44 = vadd.f32 %v5671_v28, %v5105_v25 }
 0x215   : > { %v1168_v32 = vpop.f32.mrf.mxu1  ;;  %v1299_v36 = vpack.c.bf16 %v1047_v33, %v1047_v33  ;;  %v1058_v47 = vadd.f32 %v5651_v34, %v5096_v29 }
 0x216   : > { %5693 = vmatpush3.bf16.xpose.msra.mxu1 %v1303_v30  ;;  %v1169_v35 = vadd.f32 %v5105_v25, %v1168_v32  ;;  %v1049_v38 = vpop.f32.mrf.mxu0  ;;  %v1306_v46 = vpack.c.bf16 %v1177_v44, %v1177_v44 }
 0x217   : > { %5698 = vmatprep.subr.bf16.mxu1 %v6937_v22  ;;  %v1050_v39 = vadd.f32 %v5096_v29, %v1049_v38  ;;  %v1302_v48 = vpack.c.bf16 %v1058_v47, %v1058_v47 }
 0x218   : > { %v1304_v37 = vpack.c.bf16 %v1169_v35, %v1169_v35 }
 0x219   : > { %v1300_v41 = vpack.c.bf16 %v1050_v39, %v1050_v39  ;;  %v5114_v39 = vld [vmem:[%s7881_s2 + $0x2] ss:$0 sm:$0xff] }
 0x21d   : > { %5695 = vmatmul.mubr.bf16.vlgmr.msra.gmra.mxu1 %v1299_v36 }
 0x21e   : > { %5699 = vmatpush3.bf16.xpose.msra.mxu1 %v1304_v37  ;;  %5700 = vmatprep.mubr.msk.bf16.mxu1 %vm6938_vm0, %v6937_v22 }
 0x21f   : > { %5704 = vmatprep.subr.bf16.mxu1 %v6937_v22 }
 0x225   : > { %5701 = vmatmul.mubr.bf16.vlgmr.msra.gmra.mxu1 %v1300_v41 }
 0x226   : > { %5705 = vmatpush3.bf16.xpose.msra.mxu1 %v1305_v42  ;;  %5706 = vmatprep.mubr.msk.bf16.mxu1 %vm6938_vm0, %v6937_v22 }
 0x227   : > { %5710 = vmatprep.subr.bf16.mxu1 %v6937_v22 }
 0x22d   : > { %5707 = vmatmul.mubr.bf16.vlgmr.msra.gmra.mxu1 %v1301_v45 }
 0x22e   : > { %5711 = vmatpush3.bf16.xpose.msra.mxu1 %v1306_v46  ;;  %5712 = vmatprep.mubr.msk.bf16.mxu1 %vm6938_vm0, %v6937_v22 }
 0x22f   : > { %5722 = vmatprep.subr.bf16.mxu1 %v6937_v22 }
 0x230   : > { %v5690_v38 = vpop.f32.mrf.mxu0 }
 0x231   : > { %v1293_v40 = vadd.f32 %v5690_v38, %v5114_v39 }
 0x232   : > { %v1284_v45 = vpop.f32.mrf.mxu0 }
 0x233   : > { %v1309_v41 = vpack.c.bf16 %v1293_v40, %v1293_v40  ;;  %v1285_v46 = vadd.f32 %v5114_v39, %v1284_v45 }
 0x234   : > { %v5691_v47 = vpop.f32.mrf.mxu0 }
 0x235   : > { %5713 = vmatmul.mubr.bf16.vlgmr.msra.gmra.mxu1 %v1302_v48  ;;  %v1641_v44 = vsel %vm1547_vm2, %v1309_v41, 0  ;;  %v1307_v48 = vpack.c.bf16 %v1285_v46, %v1285_v46  ;;  %v1296_v49 = vadd.f32 %v5691_v47, %v5114_v39 }
 0x236   : > { %5724 = vmatprep.mubr.msk.bf16.mxu1 %vm6938_vm0, %v6937_v22  ;;  %v1287_v55 = vpop.f32.mrf.mxu0 }
 0x237   : > { %v1549_v52 = vsel %vm1547_vm2, %v1307_v48, 0  ;;  %v1310_v53 = vpack.c.bf16 %v1296_v49, %v1296_v49  ;;  %v1288_v56 = vadd.f32 %v5114_v39, %v1287_v55  ;;  %v5131_v39 = vld [vmem:[%s7881_s2 + $0x3] ss:$0 sm:$0xff]  ;;  %v6446_v49 = vld [vmem:[%s7359_s27 + $0x8] sm:$0xff] }
 0x238   : > { %5717 = vmatpush3.bf16.msra.mxu0 %v1549_v52  ;;  %v6040_v55 = vld [vmem:[#allocation11 + $0x70] ss:$8 sps:$4 sm:$0xff]  }
 0x239   : > { %v1687_v54 = vsel %vm1547_vm2, %v1310_v53, 0  ;;  %5728 = vmatprep.subr.bf16.mxu0 %v6937_v22  ;;  %v6448_v53 = vld [vmem:[%s7359_s27 + $0x18] sm:$0xff] }
 0x2dd   : > { %v1369_v58 = vpop.f32.mrf.mxu1 }
 0x2de   : > { %v1370_v59 = vadd.f32 %v5123_v57, %v1369_v58  ;;  %v1308_v57 = vpack.c.bf16 %v1288_v56, %v1288_v56  ;;  %v6042_v56 = vld [vmem:[#allocation11 + $0x74] ss:$8 sps:$4 sm:$0xff]  }
 0x2df   : > { %v5696_v60 = vpop.f32.mrf.mxu1 }
 0x2e0   : > { %v1496_v61 = vsel %vm1495_vm1, %v1370_v59, -inf  ;;  %v1595_v58 = vsel %vm1547_vm2, %v1308_v57, 0 }
 0x2e1   : > { %1497 = vmax.xlane.f32.xlu0 %v1496_v61  ;;  %v1372_v62 = vpop.f32.mrf.mxu1  ;;  %5723 = vmatpush3.bf16.msra.mxu1 %v1595_v58 }
 0x2e2   : > { %5734 = vmatprep.subr.bf16.mxu1 %v6937_v22 }
 0x2e3   : > { %v5697_v63 = vpop.f32.mrf.mxu1 }
 0x2e5   : > { %v1409_v1 = vpop.f32.mrf.mxu1 }
 0x2e6   : > { %v1410_v2 = vadd.f32 %v5124_v0, %v1409_v1  ;;  %v6032_v1 = vld [vmem:[#allocation8 + $0xf8] sm:$0xff]  }
 0x2e7   : > { %v5702_v3 = vpop.f32.mrf.mxu1 }
 0x2e8   : > { %v1499_v4 = vsel %vm1495_vm1, %v1410_v2, -inf }
 0x2e9   : > { %1500 = vmax.xlane.f32.xlu0 %v1499_v4  ;;  %v1412_v5 = vpop.f32.mrf.mxu1 }
 0x2eb   : > { %v5703_v6 = vpop.f32.mrf.mxu1 }
 0x2ed   : > { %v1449_v8 = vpop.f32.mrf.mxu1 }
 0x2ee   : > { %v1450_v9 = vadd.f32 %v5125_v7, %v1449_v8 }
 0x2ef   : > { %v5708_v10 = vpop.f32.mrf.mxu1 }
 0x2f0   : > { %v1502_v11 = vsel %vm1495_vm1, %v1450_v9, -inf }
 0x2f1   : > { %1503 = vmax.xlane.f32.xlu1 %v1502_v11  ;;  %v1452_v12 = vpop.f32.mrf.mxu1 }
 0x2f3   : > { %v5709_v13 = vpop.f32.mrf.mxu1 }
 0x2f4   : > { %v6034_v13 = vld [vmem:[#allocation8 + $0xe8] sm:$0xff]  }
 0x2f5   : > { %v1489_v15 = vpop.f32.mrf.mxu1 }
 0x2f6   : > { %v1490_v16 = vadd.f32 %v5126_v14, %v1489_v15  ;;  %v6035_v14 = vld [vmem:[#allocation8 + $0xe0] sm:$0xff]   ;;  %v6036_v15 = vld [vmem:[#allocation8 + $0xd8] sm:$0xff]  }
 0x2f7   : > { %v5714_v17 = vpop.f32.mrf.mxu1 }
 0x2f8   : > { %v1505_v18 = vsel %vm1495_vm1, %v1490_v16, -inf  ;;  %v6038_v17 = vld [vmem:[#allocation8 + $0xc8] sm:$0xff]  }
 0x2f9   : > { %1506 = vmax.xlane.f32.xlu1 %v1505_v18  ;;  %v1492_v19 = vpop.f32.mrf.mxu1  ;;  %v6039_v18 = vld [vmem:[#allocation8 + $0xc0] sm:$0xff]  }
 0x2fb   : > { %v5715_v20 = vpop.f32.mrf.mxu1 }
 0x36a   : > { %v1498_v21 = vpop.xlane.xlu0 %1497 }
 0x36b   : > { %v1508_v23 = vsub.f32 %v1370_v59, %v1498_v21 }
 0x36d   : > { %v1512_v24 = vmul.f32 1.442695, %v1508_v23 }
 0x36f   : > { %6393 = vpow2.f32 %v1512_v24 }
 0x372   : > { %v1501_v25 = vpop.xlane.xlu0 %1500 }
 0x373   : > { %v1509_v26 = vsub.f32 %v1410_v2, %v1501_v25 }
 0x375   : > { %v1514_v27 = vmul.f32 1.442695, %v1509_v26 }
 0x377   : > { %6395 = vpow2.f32 %v1514_v27 }
 0x37a   : > { %v1504_v28 = vpop.xlane.xlu1 %1503 }
 0x37b   : > { %v1510_v29 = vsub.f32 %v1450_v9, %v1504_v28  ;;  %v6033_v9 = vld [vmem:[#allocation8 + $0xf0] sm:$0xff]  }
 0x37c   : > { %v6394_v30 = vpop.eup %6393 }
 0x37d   : > { %v1516_v31 = vmul.f32 1.442695, %v1510_v29  ;;  %v1520_v32 = vsel %vm1495_vm1, %v6394_v30, 0.0 }
 0x37e   : > { %1521 = vadd.xlane.f32.xlu0 %v1520_v32 }
 0x37f   : > { %6397 = vpow2.f32 %v1516_v31 }
 0x382   : > { %v1507_v33 = vpop.xlane.xlu1 %1506 }
 0x383   : > { %v1511_v34 = vsub.f32 %v1490_v16, %v1507_v33  ;;  %v6037_v16 = vld [vmem:[#allocation8 + $0xd0] sm:$0xff]  }
 0x384   : > { %v6396_v35 = vpop.eup %6395 }
 0x385   : > { %v1518_v36 = vmul.f32 1.442695, %v1511_v34  ;;  %v1523_v37 = vsel %vm1495_vm1, %v6396_v35, 0.0 }
 0x386   : > { %1524 = vadd.xlane.f32.xlu1 %v1523_v37 }
 0x387   : > { %6399 = vpow2.f32 %v1518_v36 }
 0x38c   : > { %v6398_v42 = vpop.eup %6397 }
 0x38d   : > { %v1526_v43 = vsel %vm1495_vm1, %v6398_v42, 0.0 }
 0x38e   : > { %1527 = vadd.xlane.f32.xlu0 %v1526_v43 }
 0x394   : > { %v6400_v50 = vpop.eup %6399 }
 0x395   : > { %v1529_v51 = vsel %vm1495_vm1, %v6400_v50, 0.0 }
 0x396   : > { %1530 = vadd.xlane.f32.xlu1 %v1529_v51  ;;  %v6447_v51 = vld [vmem:[%s7359_s27 + $0x10] sm:$0xff] }
 0x407   : > { %v1522_v59 = vpop.xlane.xlu0 %1521 }
 0x408   : > { %6401 = vrcp.f32 %v1522_v59 }
 0x40f   : > { %v1525_v60 = vpop.xlane.xlu1 %1524 }
 0x410   : > { %6403 = vrcp.f32 %v1525_v60 }
 0x415   : > { %v6402_v61 = vpop.eup %6401 }
 0x416   : > { %v1533_v62 = vmul.f32 %v6402_v61, %v6394_v30 }
 0x417   : > { %v1528_v63 = vpop.xlane.xlu0 %1527 }
 0x418   : > { %6405 = vrcp.f32 %v1528_v63  ;;  %v1540_v0 = vpack.c.bf16 %v1533_v62, %v1533_v62 }
 0x41a   : > { %5719 = vmatmul.mubr.msk.bf16.vlgmr.msra.gmra.mxu0 %vm1495_vm1, %v1540_v0 }
 0x41b   : > { %5729 = vmatpush3.bf16.msra.mxu0 %v1641_v44  ;;  %5730 = vmatprep.mubr.msk.bf16.mxu0 %vm6938_vm0, %v6937_v22  ;;  %v6445_v44 = vld [vmem:[%s7359_s27] sm:$0xff]  ;;  %s4840_s27 = sshll.u32 %s931_s12, 4  ;;  %s4841_s27 = int_to_ptr.vmem [resolvable:$true] %s4840_s27 }
 0x41c   : > { %5740 = vmatprep.subr.bf16.mxu0 %v6032_v1  ;;  %s6819_s3 = scalar_lea.vmem %s4841_s27, 64 }
 0x41d   : > { %v6404_v2 = vpop.eup %6403  ;;  %p6820_p2 = scmp.ne.s32.totalorder %s4841_s27, %s6819_s3 }
 0x41e   : > { %v1535_v3 = vmul.f32 %v6404_v2, %v6396_v35 }
 0x41f   : > { %v1531_v4 = vpop.xlane.xlu1 %1530  ;;  %p6821_p8 = pnand %p6820_p2, %p7888_p12 }
 0x420   : > { %6407 = vrcp.f32 %v1531_v4  ;;  %v1541_v5 = vpack.c.bf16 %v1535_v3, %v1535_v3 }
 0x421   : > { %p6822_p4 = pneg %p6821_p8 }
 0x422   : > { %5725 = vmatmul.mubr.msk.bf16.vlgmr.msra.gmra.mxu1 %vm1495_vm1, %v1541_v5 }
 0x423   : > { %5735 = vmatpush3.bf16.msra.mxu1 %v1687_v54  ;;  %5736 = vmatprep.mubr.msk.bf16.mxu1 %vm6938_vm0, %v6937_v22 }
 0x424   : > { %2027 = vmatprep.subr.bf16.mxu1 %v6042_v56 }
 0x425   : > { %v6406_v6 = vpop.eup %6405 }
 0x426   : > { %v1537_v7 = vmul.f32 %v6406_v6, %v6398_v42 }
 0x428   : > { %v1542_v8 = vpack.c.bf16 %v1537_v7, %v1537_v7 }
 0x42a   : > { %5731 = vmatmul.mubr.msk.bf16.vlgmr.msra.gmra.mxu0 %vm1495_vm1, %v1542_v8 }
 0x42b   : > { %5741 = vmatpush3.bf16.msra.mxu0 %v6032_v1 }
 0x42c   : > { %5742 = vmatprep.subr.bf16.mxu0 %v6033_v9 }
 0x42d   : > { %v6408_v10 = vpop.eup %6407 }
 0x42e   : > { %v1539_v11 = vmul.f32 %v6408_v10, %v6400_v50  ;;  %v6043_v10 = vld [vmem:[#allocation11 + $0x60] ss:$8 sps:$4 sm:$0xff]  }
 0x42f   : > { %5743 = vmatpush3.bf16.msra.mxu0 %v6033_v9  ;;  %v6045_v9 = vld [vmem:[#allocation11 + $0x64] ss:$8 sps:$4 sm:$0xff]  }
 0x430   : > { %v1543_v12 = vpack.c.bf16 %v1539_v11, %v1539_v11  ;;  %5744 = vmatprep.subr.bf16.mxu0 %v6034_v13  ;;  %v6048_v11 = vld [vmem:[#allocation11 + $0x54] ss:$8 sps:$4 sm:$0xff]  }
 0x432   : > { %5737 = vmatmul.mubr.msk.bf16.vlgmr.msra.gmra.mxu1 %vm1495_vm1, %v1543_v12  ;;  %v6046_v12 = vld [vmem:[#allocation11 + $0x50] ss:$8 sps:$4 sm:$0xff]  }
 0x433   : > { %5745 = vmatpush3.bf16.msra.mxu0 %v6034_v13  ;;  %2028 = vmatpush1.bf16.msra.mxu1 %v6040_v55  ;;  %v6051_v13 = vld [vmem:[#allocation11 + $0x44] ss:$8 sps:$4 sm:$0xff]  }
 0x434   : > { %5746 = vmatprep.subr.bf16.mxu0 %v6035_v14  ;;  %2029 = vmatprep.subr.bf16.mxu1 %v6045_v9  ;;  %v1937_v9 = vlaneseq }
 0x437   : > { %5747 = vmatpush3.bf16.msra.mxu0 %v6035_v14  ;;  %2030 = vmatpush1.bf16.msra.mxu1 %v6043_v10  ;;  %v6049_v14 = vld [vmem:[#allocation11 + $0x40] ss:$8 sps:$4 sm:$0xff]   ;;  %v7508_v10 = vshrl.u32 %v1937_v9, 7 }
 0x438   : > { %5748 = vmatprep.subr.bf16.mxu0 %v6036_v15  ;;  %2031 = vmatprep.subr.bf16.mxu1 %v6048_v11 }
 0x439   : > { %v7511_v11 = vsub.s32 0, %v7508_v10 }
 0x43b   : > { %5749 = vmatpush3.bf16.msra.mxu0 %v6036_v15  ;;  %2032 = vmatpush1.bf16.msra.mxu1 %v6046_v12  ;;  %v6052_v15 = vld [vmem:[#allocation11 + $0x30] ss:$8 sps:$4 sm:$0xff]   ;;  %v1935_v12 = vld [vmem:[#allocation13] sm:$0x3] }
 0x43c   : > { %5750 = vmatprep.subr.bf16.mxu0 %v6037_v16  ;;  %2033 = vmatprep.subr.bf16.mxu1 %v6051_v13  ;;  %v7514_v13 = vsub.s32 1, %v7508_v10 }
 0x43f   : > { %5751 = vmatpush3.bf16.msra.mxu0 %v6037_v16  ;;  %2034 = vmatpush1.bf16.msra.mxu1 %v6049_v14  ;;  %v6054_v16 = vld [vmem:[#allocation11 + $0x34] ss:$8 sps:$4 sm:$0xff]   ;;  %v1940_v14 = vrot.slane %v1935_v12, %v7511_v11 }
 0x440   : > { %5752 = vmatprep.subr.bf16.mxu0 %v6038_v17  ;;  %2035 = vmatprep.subr.bf16.mxu1 %v6054_v16 }
 0x443   : > { %5753 = vmatpush3.bf16.msra.mxu0 %v6038_v17  ;;  %v6057_v17 = vld [vmem:[#allocation11 + $0x24] ss:$8 sps:$4 sm:$0xff]   ;;  %2036 = vmatpush1.bf16.msra.mxu1 %v6052_v15  ;;  %v1944_v15 = vrot.slane %v1935_v12, %v7514_v13 }
 0x444   : > { %5754 = vmatprep.subr.bf16.mxu0 %v6039_v18  ;;  %2037 = vmatprep.subr.bf16.mxu1 %v6057_v17 }
 0x447   : > { %5755 = vmatpush3.bf16.msra.mxu0 %v6039_v18  ;;  %v6939_v18 = vmov 0  }
 0x448   : > { %2059 = vmatprep.mubr.bf16.mxu1 %v6939_v18 }
 0x4da   : > { %v1585_v19 = vpop.f32.mrf.mxu0 }
 0x4dc   : > { %v5720_v20 = vpop.f32.mrf.mxu0 }
 0x4dd   : > { %v6060_v20 = vld [vmem:[#allocation11 + $0x14] ss:$8 sps:$4 sm:$0xff]  }
 0x4de   : > { %v1588_v21 = vpop.f32.mrf.mxu0 }
 0x4df   : > { %v6058_v21 = vld [vmem:[#allocation11 + $0x10] ss:$8 sps:$4 sm:$0xff]  }
 0x4e0   : > { %v5721_v23 = vpop.f32.mrf.mxu0 }
 0x4e1   : > { %v6063_v23 = vld [vmem:[#allocation11 + $0x4] ss:$8 sps:$4 sm:$0xff]  }
 0x4e2   : > { %v1631_v24 = vpop.f32.mrf.mxu1 }
 0x4e3   : > { %v1729_v25 = vpack.c.bf16 %v1631_v24, %v1585_v19  ;;  %v6055_v19 = vld [vmem:[#allocation11 + $0x20] ss:$8 sps:$4 sm:$0xff]  }
 0x4e4   : > { %v5726_v26 = vpop.f32.mrf.mxu1  ;;  %2038 = vmatpush1.bf16.msra.mxu1 %v6055_v19  ;;  %v6061_v24 = vld [vmem:[#allocation11] ss:$8 sps:$4 sm:$0xff]  }
 0x4e5   : > { %5756 = vmatprep.mubr.bf16.mxu0 %v1729_v25  ;;  %2039 = vmatprep.subr.bf16.mxu1 %v6060_v20 }
 0x4e6   : > { %v1634_v27 = vpop.f32.mrf.mxu1 }
 0x4e8   : > { %v5727_v28 = vpop.f32.mrf.mxu1  ;;  %2040 = vmatpush1.bf16.msra.mxu1 %v6058_v21 }
 0x4e9   : > { %2041 = vmatprep.subr.bf16.mxu1 %v6063_v23 }
 0x4ea   : > { %v1677_v29 = vpop.f32.mrf.mxu0 }
 0x4ec   : > { %v5732_v30 = vpop.f32.mrf.mxu0  ;;  %2042 = vmatpush1.bf16.msra.mxu1 %v6061_v24 }
 0x4ed   : > { %5760 = vmatprep.subr.bf16.mxu1 %v6937_v22 }
 0x4ee   : > { %v1680_v31 = vpop.f32.mrf.mxu0 }
 0x4f0   : > { %v5733_v32 = vpop.f32.mrf.mxu0 }
 0x4f2   : > { %v1723_v33 = vpop.f32.mrf.mxu1 }
 0x4f3   : > { %v1730_v34 = vpack.c.bf16 %v1723_v33, %v1677_v29 }
 0x4f4   : > { %v5738_v35 = vpop.f32.mrf.mxu1 }
 0x4f5   : > { %5757 = vmatmul.mubr.bf16.vlgmr.msra.gmra.mxu0 %v1730_v34 }
 0x4f6   : > { %v1726_v36 = vpop.f32.mrf.mxu1 }
 0x4f8   : > { %v5739_v37 = vpop.f32.mrf.mxu1 }
 0x5b5   : > { %v5758_v38 = vpop.f32.mrf.mxu0 }
 0x5b6   : > { %v1844_v43 = vadd.f32 %v5758_v38, %v5131_v39 }
 0x5b7   : > { %v1835_v40 = vpop.f32.mrf.mxu0 }
 0x5b8   : > { %v1836_v41 = vadd.f32 %v5131_v39, %v1835_v40  ;;  %v1852_v52 = vadd.f32 %v6447_v51, %v1844_v43 }
 0x5b9   : > { %v5759_v42 = vpop.f32.mrf.mxu0 }
 0x5ba   : > { %v1850_v45 = vadd.f32 %v6445_v44, %v1836_v41  ;;  %v1847_v48 = vadd.f32 %v5759_v42, %v5131_v39  ;;  %v5141_v44 = vld [vmem:[#allocation10 + $0x1] ss:$0 sm:$0xff] }
 0x5bb   : > { %v1838_v46 = vpop.f32.mrf.mxu0 }
 0x5bc   : > { %v1839_v47 = vadd.f32 %v5131_v39, %v1838_v46  ;;  %1856 = vadd.xlane.f32.xlu0 %v1850_v45  ;;  %v1853_v54 = vadd.f32 %v6448_v53, %v1847_v48  ;;  %v5140_v39 = vld [vmem:[#allocation10] ss:$0 sm:$0xff] }
 0x5be   : > { %v1851_v50 = vadd.f32 %v6446_v49, %v1839_v47 }
 0x5c0   : > { %1858 = vadd.xlane.f32.xlu1 %v1851_v50  ;;  %1860 = vadd.xlane.f32.xlu0 %v1852_v52 }
 0x5c4   : > { %1862 = vadd.xlane.f32.xlu1 %v1853_v54 }
 0x645   : > { %v1857_v57 = vpop.xlane.xlu0 %1856 }
 0x646   : > { %v1865_v58 = vmul.f32 0.0078125, %v1857_v57  ;;  %v6064_v57 = vld [vmem:[#allocation14 + $0x78] sm:$0xff]  }
 0x647   : > { %5486 = vmatprep.subr.bf16.mxu0 %v6064_v57 }
 0x648   : > { %v7470_v59 = vsub.f32 %v1850_v45, %v1865_v58  ;;  %v6065_v58 = vld [vmem:[#allocation14 + $0x38] sm:$0xff]  }
 0x649   : > { %v1859_v60 = vpop.xlane.xlu1 %1858  ;;  %v1861_v61 = vpop.xlane.xlu0 %1860  ;;  %5487 = vmatpush3.bf16.msra.mxu0 %v6065_v58 }
 0x64a   : > { %v1866_v62 = vmul.f32 0.0078125, %v1859_v60  ;;  %v1867_v63 = vmul.f32 0.0078125, %v1861_v61  ;;  %v1873_v0 = vmul.f32 %v7470_v59, %v7470_v59  ;;  %v6067_v60 = vld [vmem:[#allocation14 + $0x30] sm:$0xff]   ;;  %v6068_v61 = vld [vmem:[#allocation14 + $0x68] sm:$0xff]  }
 0x64c   : > { %v7474_v1 = vsub.f32 %v1851_v50, %v1866_v62  ;;  %v7476_v2 = vsub.f32 %v1852_v52, %v1867_v63  ;;  %1877 = vadd.xlane.f32.xlu0 %v1873_v0  ;;  %v6069_v62 = vld [vmem:[#allocation14 + $0x28] sm:$0xff]   ;;  %v6070_v63 = vld [vmem:[#allocation14 + $0x60] sm:$0xff]  }
 0x64d   : > { %v1863_v3 = vpop.xlane.xlu1 %1862  ;;  %v6071_v0 = vld [vmem:[#allocation14 + $0x20] sm:$0xff]  }
 0x64e   : > { %v1868_v4 = vmul.f32 0.0078125, %v1863_v3  ;;  %v1874_v5 = vmul.f32 %v7474_v1, %v7474_v1  ;;  %v1875_v6 = vmul.f32 %v7476_v2, %v7476_v2  ;;  %v6074_v3 = vld [vmem:[#allocation14 + $0x50] sm:$0xff]  }
 0x650   : > { %v7482_v7 = vsub.f32 %v1853_v54, %v1868_v4  ;;  %1879 = vadd.xlane.f32.xlu1 %v1874_v5  ;;  %1881 = vadd.xlane.f32.xlu0 %v1875_v6  ;;  %v6075_v4 = vld [vmem:[#allocation14 + $0x10] sm:$0xff]   ;;  %v6076_v5 = vld [vmem:[#allocation14 + $0x48] sm:$0xff]  }
 0x651   : > { %v6077_v6 = vld [vmem:[#allocation14 + $0x8] sm:$0xff]  }
 0x652   : > { %v1876_v8 = vmul.f32 %v7482_v7, %v7482_v7 }
 0x654   : > { %1883 = vadd.xlane.f32.xlu1 %v1876_v8  ;;  %v6079_v8 = vld [vmem:[#allocation14] sm:$0xff]  }
 0x6d5   : > { %v1878_v25 = vpop.xlane.xlu0 %1877 }
 0x6d6   : > { %v1885_v26 = vmul.f32 0.0078125, %v1878_v25 }
 0x6d8   : > { %v1889_v27 = vadd.f32 1e-12, %v1885_v26 }
 0x6d9   : > { %v1880_v28 = vpop.xlane.xlu1 %1879  ;;  %v1882_v29 = vpop.xlane.xlu0 %1881 }
 0x6da   : > { %6409 = vrsqrt.f32 %v1889_v27  ;;  %v1886_v30 = vmul.f32 0.0078125, %v1880_v28  ;;  %v1887_v31 = vmul.f32 0.0078125, %v1882_v29 }
 0x6dc   : > { %v1890_v32 = vadd.f32 1e-12, %v1886_v30  ;;  %v1891_v33 = vadd.f32 1e-12, %v1887_v31 }
 0x6dd   : > { %v1884_v34 = vpop.xlane.xlu1 %1883 }
 0x6de   : > { %6411 = vrsqrt.f32 %v1890_v32  ;;  %v1888_v35 = vmul.f32 0.0078125, %v1884_v34 }
 0x6df   : > { %6413 = vrsqrt.f32 %v1891_v33 }
 0x6e0   : > { %v1892_v36 = vadd.f32 1e-12, %v1888_v35 }
 0x6e2   : > { %6415 = vrsqrt.f32 %v1892_v36 }
 0x6e7   : > { %v6410_v37 = vpop.eup %6409 }
 0x6e8   : > { %v1897_v38 = vmul.f32 %v6410_v37, %v7470_v59  ;;  %v6066_v59 = vld [vmem:[#allocation14 + $0x70] sm:$0xff]  }
 0x6e9   : > { %5488 = vmatprep.subr.bf16.mxu0 %v6066_v59 }
 0x6ea   : > { %v1905_v42 = vmul.f32 %v5140_v39, %v1897_v38  ;;  %5489 = vmatpush3.bf16.msra.mxu0 %v6067_v60 }
 0x6eb   : > { %v6412_v40 = vpop.eup %6411  ;;  %5490 = vmatprep.subr.bf16.mxu0 %v6068_v61 }
 0x6ec   : > { %v1898_v41 = vmul.f32 %v6412_v40, %v7474_v1  ;;  %v6414_v43 = vpop.eup %6413  ;;  %v7490_v47 = vadd.f32 %v5141_v44, %v1905_v42  ;;  %v6072_v1 = vld [vmem:[#allocation14 + $0x58] sm:$0xff]  }
 0x6ed   : > { %v1899_v49 = vmul.f32 %v6414_v43, %v7476_v2  ;;  %v6073_v2 = vld [vmem:[#allocation14 + $0x18] sm:$0xff]  }
 0x6ee   : > { %v1906_v45 = vmul.f32 %v5140_v39, %v1898_v41  ;;  %5491 = vmatpush3.bf16.msra.mxu0 %v6069_v62 }
 0x6ef   : > { %v6416_v46 = vpop.eup %6415  ;;  %v1907_v53 = vmul.f32 %v5140_v39, %v1899_v49  ;;  %5492 = vmatprep.subr.bf16.mxu0 %v6070_v63 }
 0x6f0   : > { %v7492_v48 = vadd.f32 %v5141_v44, %v1906_v45  ;;  %v1900_v50 = vmul.f32 %v6416_v46, %v7482_v7  ;;  %v6078_v7 = vld [vmem:[#allocation14 + $0x40] sm:$0xff]  }
 0x6f1   : > { %v7501_v55 = vadd.f32 %v5141_v44, %v1907_v53 }
 0x6f2   : > { %v1917_v51 = vpack.c.bf16 %v7492_v48, %v7490_v47  ;;  %v1908_v52 = vmul.f32 %v5140_v39, %v1900_v50  ;;  %5493 = vmatpush3.bf16.msra.mxu0 %v6071_v0 }
 0x6f3   : > { %5494 = vmatprep.subr.bf16.mxu0 %v6072_v1 }
 0x6f4   : > { %2060 = vmatmul.mubr.bf16.vlgmr.msra.gmra.mxu1 %v1917_v51  ;;  %v7499_v54 = vadd.f32 %v5141_v44, %v1908_v52 }
 0x6f5   : > { %2069 = vmatprep.mubr.bf16.mxu1 %v6939_v18 }
 0x6f6   : > { %v1918_v56 = vpack.c.bf16 %v7499_v54, %v7501_v55  ;;  %5495 = vmatpush3.bf16.msra.mxu0 %v6073_v2 }
 0x6f7   : > { %5496 = vmatprep.subr.bf16.mxu0 %v6074_v3 }
 0x6fa   : > { %5497 = vmatpush3.bf16.msra.mxu0 %v6075_v4 }
 0x6fb   : > { %5498 = vmatprep.subr.bf16.mxu0 %v6076_v5 }
 0x6fc   : > { %2070 = vmatmul.mubr.bf16.gmra.mxu1 %v1918_v56 }
 0x6fd   : > { %5764 = vmatprep.mubr.msk.bf16.mxu1 %vm6938_vm0, %v6937_v22 }
 0x6fe   : > { %5499 = vmatpush3.bf16.msra.mxu0 %v6077_v6 }
 0x6ff   : > { %5500 = vmatprep.subr.bf16.mxu0 %v6078_v7 }
 0x702   : > { %5501 = vmatpush3.bf16.msra.mxu0 %v6079_v8 }
 0x7b4   : > { %v2061_v16 = vpop.f32.mrf.mxu1 }
 0x7b5   : > { %v7518_v17 = vadd.f32 %v2061_v16, %v1940_v14 }
 0x7b6   : > { %v2063_v19 = vpop.f32.mrf.mxu1 }
 0x7b7   : > { %v2080_v20 = vmul.f32 %v7518_v17, %v7518_v17  ;;  %v7522_v21 = vadd.f32 %v2063_v19, %v1944_v15 }
 0x7b8   : > { %v2065_v23 = vpop.f32.mrf.mxu1 }
 0x7b9   : > { %v2088_v24 = vmul.f32 %v2080_v20, %v7518_v17  ;;  %v2081_v25 = vmul.f32 %v7522_v21, %v7522_v21  ;;  %v7527_v26 = vadd.f32 %v2065_v23, %v1940_v14 }
 0x7ba   : > { %v2067_v27 = vpop.f32.mrf.mxu1 }
 0x7bb   : > { %v2096_v28 = vmul.f32 0.044715, %v2088_v24  ;;  %v2089_v29 = vmul.f32 %v2081_v25, %v7522_v21  ;;  %v2082_v30 = vmul.f32 %v7527_v26, %v7527_v26  ;;  %v7532_v31 = vadd.f32 %v2067_v27, %v1944_v15 }
 0x7bc   : > { %v2071_v32 = vpop.f32.mrf.mxu1 }
 0x7bd   : > { %v2104_v33 = vadd.f32 %v2096_v28, %v7518_v17  ;;  %v2097_v34 = vmul.f32 0.044715, %v2089_v29  ;;  %v2090_v35 = vmul.f32 %v2082_v30, %v7527_v26  ;;  %v2083_v36 = vmul.f32 %v7532_v31, %v7532_v31 }
 0x7be   : > { %v7538_v37 = vadd.f32 %v2071_v32, %v1940_v14  ;;  %v2073_v38 = vpop.f32.mrf.mxu1 }
 0x7bf   : > { %v2112_v39 = vmul.f32 0.7978846, %v2104_v33  ;;  %v2105_v40 = vadd.f32 %v2097_v34, %v7522_v21  ;;  %v2098_v41 = vmul.f32 0.044715, %v2090_v35  ;;  %v2091_v42 = vmul.f32 %v2083_v36, %v7532_v31 }
 0x7c0   : > { %v2084_v43 = vmul.f32 %v7538_v37, %v7538_v37  ;;  %v7544_v44 = vadd.f32 %v2073_v38, %v1944_v15  ;;  %v2075_v45 = vpop.f32.mrf.mxu1 }
 0x7c1   : > { %v2113_v46 = vmul.f32 0.7978846, %v2105_v40  ;;  %v2106_v49 = vadd.f32 %v2098_v41, %v7527_v26  ;;  %v2099_v50 = vmul.f32 0.044715, %v2091_v42  ;;  %6417 = vtanh.f32 %v2112_v39 }
 0x7c2   : > { %v2092_v51 = vmul.f32 %v2084_v43, %v7538_v37  ;;  %v2085_v52 = vmul.f32 %v7544_v44, %v7544_v44  ;;  %v2076_v53 = vadd.f32 %v2075_v45, %v1940_v14  ;;  %v2077_v56 = vpop.f32.mrf.mxu1 }
 0x7c3   : > { %6419 = vtanh.f32 %v2113_v46  ;;  %v2114_v57 = vmul.f32 0.7978846, %v2106_v49  ;;  %v2107_v58 = vadd.f32 %v2099_v50, %v7532_v31  ;;  %v2078_v59 = vadd.f32 %v2077_v56, %v1944_v15 }
 0x7c4   : > { %v2100_v60 = vmul.f32 0.044715, %v2092_v51  ;;  %v2093_v61 = vmul.f32 %v2085_v52, %v7544_v44  ;;  %v2086_v62 = vmul.f32 %v2076_v53, %v2076_v53 }
 0x7c5   : > { %6421 = vtanh.f32 %v2114_v57  ;;  %v2115_v63 = vmul.f32 0.7978846, %v2107_v58  ;;  %v2087_v0 = vmul.f32 %v2078_v59, %v2078_v59 }
 0x7c6   : > { %v2108_v1 = vadd.f32 %v2100_v60, %v7538_v37  ;;  %v2101_v2 = vmul.f32 0.044715, %v2093_v61  ;;  %v2094_v3 = vmul.f32 %v2086_v62, %v2076_v53 }
 0x7c7   : > { %6423 = vtanh.f32 %v2115_v63  ;;  %v2095_v4 = vmul.f32 %v2087_v0, %v2078_v59 }
 0x7c8   : > { %v2116_v5 = vmul.f32 0.7978846, %v2108_v1  ;;  %v2109_v6 = vadd.f32 %v2101_v2, %v7544_v44  ;;  %v2102_v7 = vmul.f32 0.044715, %v2094_v3 }
 0x7c9   : > { %v2103_v8 = vmul.f32 0.044715, %v2095_v4 }
 0x7ca   : > { %6425 = vtanh.f32 %v2116_v5  ;;  %v2117_v12 = vmul.f32 0.7978846, %v2109_v6  ;;  %v2110_v14 = vadd.f32 %v2102_v7, %v2076_v53 }
 0x7cb   : > { %v2111_v15 = vadd.f32 %v2103_v8, %v2078_v59 }
 0x7cc   : > { %6427 = vtanh.f32 %v2117_v12  ;;  %v2118_v16 = vmul.f32 0.7978846, %v2110_v14 }
 0x7cd   : > { %v2119_v19 = vmul.f32 0.7978846, %v2111_v15 }
 0x7ce   : > { %6429 = vtanh.f32 %v2118_v16  ;;  %v6418_v20 = vpop.eup %6417 }
 0x7cf   : > { %6431 = vtanh.f32 %v2119_v19  ;;  %v2128_v27 = vadd.f32 1.0, %v6418_v20 }
 0x7d0   : > { %v6420_v23 = vpop.eup %6419 }
 0x7d1   : > { %v2129_v24 = vadd.f32 1.0, %v6420_v23  ;;  %v2136_v34 = vmul.f32 0.5, %v2128_v27 }
 0x7d2   : > { %v6422_v25 = vpop.eup %6421 }
 0x7d3   : > { %v2130_v28 = vadd.f32 1.0, %v6422_v25  ;;  %v2137_v33 = vmul.f32 0.5, %v2129_v24  ;;  %v2144_v42 = vmul.f32 %v2136_v34, %v7518_v17 }
 0x7d4   : > { %v6424_v29 = vpop.eup %6423 }
 0x7d5   : > { %v2138_v30 = vmul.f32 0.5, %v2130_v28  ;;  %v2131_v32 = vadd.f32 1.0, %v6424_v29  ;;  %v2145_v40 = vmul.f32 %v2137_v33, %v7522_v21 }
 0x7d7   : > { %v6426_v35 = vpop.eup %6425  ;;  %v2139_v36 = vmul.f32 0.5, %v2131_v32  ;;  %v2146_v38 = vmul.f32 %v2138_v30, %v7527_v26 }
 0x7d8   : > { %v2132_v45 = vadd.f32 1.0, %v6426_v35 }
 0x7d9   : > { %v6428_v39 = vpop.eup %6427  ;;  %v2147_v41 = vmul.f32 %v2139_v36, %v7532_v31  ;;  %v2152_v51 = vpack.c.bf16 %v2146_v38, %v2144_v42  ;;  %v6095_v42 = vld [vmem:[#allocation16 + $0x120] ss:$24 sps:$4 sm:$0xff]  }
 0x7da   : > { %v2133_v43 = vadd.f32 1.0, %v6428_v39  ;;  %v2140_v58 = vmul.f32 0.5, %v2132_v45  ;;  %v6101_v45 = vld [vmem:[#allocation16 + $0xf0] ss:$24 sps:$4 sm:$0xff]  }
 0x7db   : > { %v6430_v46 = vpop.eup %6429  ;;  %v2153_v49 = vpack.c.bf16 %v2147_v41, %v2145_v40  ;;  %v6089_v40 = vld [vmem:[#allocation16 + $0x150] ss:$24 sps:$4 sm:$0xff]   ;;  %v6091_v41 = vld [vmem:[#allocation16 + $0x154] ss:$24 sps:$4 sm:$0xff]  }
 0x7dc   : > { %v6432_v50 = vpop.eup %6431  ;;  %v2134_v52 = vadd.f32 1.0, %v6430_v46  ;;  %v2141_v57 = vmul.f32 0.5, %v2133_v43  ;;  %v2148_v17 = vmul.f32 %v2140_v58, %v7538_v37  ;;  %2915 = vmatprep.subr.bf16.mxu0 %v6091_v41  ;;  %v6097_v43 = vld [vmem:[#allocation16 + $0x124] ss:$24 sps:$4 sm:$0xff]   ;;  %v6103_v46 = vld [vmem:[#allocation16 + $0xf4] ss:$24 sps:$4 sm:$0xff]  }
 0x7dd   : > { %2323 = vmatprep.mubr.bf16.mxu0 %v2153_v49  ;;  %v2135_v56 = vadd.f32 1.0, %v6432_v50  ;;  %v6107_v49 = vld [vmem:[#allocation16 + $0xc0] ss:$24 sps:$4 sm:$0xff]   ;;  %v6109_v50 = vld [vmem:[#allocation16 + $0xc4] ss:$24 sps:$4 sm:$0xff]  }
 0x7de   : > { %2324 = vmatmul.mubr.bf16.vlgmr.msra.gmra.mxu0 %v2152_v51  ;;  %v2142_v26 = vmul.f32 0.5, %v2134_v52  ;;  %v2149_v21 = vmul.f32 %v2141_v57, %v7544_v44  ;;  %v5158_v44 = vld [vmem:[%s7763_s9] ss:$0 sm:$0xff]  ;;  %v6113_v51 = vld [vmem:[#allocation16 + $0x90] ss:$24 sps:$4 sm:$0xff]  }
 0x7df   : > { %v2143_v60 = vmul.f32 0.5, %v2135_v56  ;;  %2916 = vmatpush1.bf16.msra.mxu0 %v6089_v40  ;;  %v6115_v52 = vld [vmem:[#allocation16 + $0x94] ss:$24 sps:$4 sm:$0xff]   ;;  %v6119_v56 = vld [vmem:[#allocation16 + $0x60] ss:$24 sps:$4 sm:$0xff]  }
 0x7e0   : > { %v2150_v61 = vmul.f32 %v2142_v26, %v2076_v53  ;;  %2917 = vmatprep.subr.bf16.mxu0 %v6097_v43  ;;  %v6121_v57 = vld [vmem:[#allocation16 + $0x64] ss:$24 sps:$4 sm:$0xff]   ;;  %v6125_v58 = vld [vmem:[#allocation16 + $0x30] ss:$24 sps:$4 sm:$0xff]   ;;  %v6127_v26 = vld [vmem:[#allocation16 + $0x34] ss:$24 sps:$4 sm:$0xff]  }
 0x7e1   : > { %v2151_v31 = vmul.f32 %v2143_v60, %v2078_v59  ;;  %v6131_v60 = vld [vmem:[#allocation16] ss:$24 sps:$4 sm:$0xff]   ;;  %v6086_v40 = vld [vmem:[#allocation17 + $0x10] ss:$24 sps:$4 sm:$0xff]   ;;  %v6094_v41 = vld [vmem:[#allocation16 + $0x15c] ss:$24 sps:$4 sm:$0xff]  }
 0x7e2   : > { %v2154_v63 = vpack.c.bf16 %v2150_v61, %v2148_v17  ;;  %v6133_v61 = vld [vmem:[#allocation16 + $0x4] ss:$24 sps:$4 sm:$0xff]  }
 0x7e3   : > { %v2155_v62 = vpack.c.bf16 %v2151_v31, %v2149_v21  ;;  %2918 = vmatpush1.bf16.msra.mxu0 %v6095_v42  ;;  %v6092_v42 = vld [vmem:[#allocation16 + $0x158] ss:$24 sps:$4 sm:$0xff]   ;;  %v6100_v43 = vld [vmem:[#allocation16 + $0x12c] ss:$24 sps:$4 sm:$0xff]  }
 0x7e4   : > { %2919 = vmatprep.subr.bf16.mxu0 %v6103_v46  ;;  %v6106_v46 = vld [vmem:[#allocation16 + $0xfc] ss:$24 sps:$4 sm:$0xff]  }
 0x7e5   : > { %2331 = vmatprep.mubr.bf16.mxu0 %v2155_v62 }
 0x7e6   : > { %2332 = vmatmul.mubr.bf16.gmra.mxu0 %v2154_v63 }
 0x7e7   : > { %2947 = vmatprep.mubr.bf16.mxu0 %v6939_v18  ;;  %2920 = vmatpush1.bf16.msra.mxu0 %v6101_v45  ;;  %v6098_v45 = vld [vmem:[#allocation16 + $0x128] ss:$24 sps:$4 sm:$0xff]  }
 0x7e8   : > { %2921 = vmatprep.subr.bf16.mxu0 %v6109_v50  ;;  %v6112_v50 = vld [vmem:[#allocation16 + $0xcc] ss:$24 sps:$4 sm:$0xff]  }
 0x7eb   : > { %2922 = vmatpush1.bf16.msra.mxu0 %v6107_v49  ;;  %v6104_v49 = vld [vmem:[#allocation16 + $0xf8] ss:$24 sps:$4 sm:$0xff]  }
 0x7ec   : > { %2923 = vmatprep.subr.bf16.mxu0 %v6115_v52  ;;  %v6118_v52 = vld [vmem:[#allocation16 + $0x9c] ss:$24 sps:$4 sm:$0xff]  }
 0x7ef   : > { %2924 = vmatpush1.bf16.msra.mxu0 %v6113_v51  ;;  %v6110_v51 = vld [vmem:[#allocation16 + $0xc8] ss:$24 sps:$4 sm:$0xff]  }
 0x7f0   : > { %2925 = vmatprep.subr.bf16.mxu0 %v6121_v57  ;;  %v6124_v57 = vld [vmem:[#allocation16 + $0x6c] ss:$24 sps:$4 sm:$0xff]  }
 0x7f3   : > { %2926 = vmatpush1.bf16.msra.mxu0 %v6119_v56  ;;  %v6116_v56 = vld [vmem:[#allocation16 + $0x98] ss:$24 sps:$4 sm:$0xff]  }
 0x7f4   : > { %2927 = vmatprep.subr.bf16.mxu0 %v6127_v26  ;;  %v6130_v26 = vld [vmem:[#allocation16 + $0x3c] ss:$24 sps:$4 sm:$0xff]  }
 0x7f7   : > { %2928 = vmatpush1.bf16.msra.mxu0 %v6125_v58  ;;  %v6122_v58 = vld [vmem:[#allocation16 + $0x68] ss:$24 sps:$4 sm:$0xff]  }
 0x7f8   : > { %2929 = vmatprep.subr.bf16.mxu0 %v6133_v61  ;;  %v6136_v61 = vld [vmem:[#allocation16 + $0xc] ss:$24 sps:$4 sm:$0xff]  }
 0x7fb   : > { %2930 = vmatpush1.bf16.msra.mxu0 %v6131_v60  ;;  %v6128_v60 = vld [vmem:[#allocation16 + $0x38] ss:$24 sps:$4 sm:$0xff]  }
 0x89e   : > { %v5502_v0 = vpop.f32.mrf.mxu0 }
 0x8a0   : > { %v5503_v1 = vpop.f32.mrf.mxu0 }
 0x8a1   : > { %v5504_v6 = vadd.f32 %v5503_v1, %v5502_v0 }
 0x8a2   : > { %v5505_v2 = vpop.f32.mrf.mxu0 }
 0x8a3   : > { %v2326_v8 = vadd.f32 %v5504_v6, %v5158_v44 }
 0x8a4   : > { %v5506_v3 = vpop.f32.mrf.mxu0 }
 0x8a5   : > { %v5507_v12 = vadd.f32 %v5506_v3, %v5505_v2  ;;  %v2340_v23 = vadd.f32 %v2326_v8, %v7490_v47 }
 0x8a6   : > { %v5508_v4 = vpop.f32.mrf.mxu0 }
 0x8a7   : > { %v2329_v19 = vadd.f32 %v5507_v12, %v5158_v44 }
 0x8a8   : > { %v5509_v5 = vpop.f32.mrf.mxu0 }
 0x8a9   : > { %v5510_v7 = vadd.f32 %v5509_v5, %v5508_v4  ;;  %v2341_v24 = vadd.f32 %v2329_v19, %v7492_v48  ;;  %v2410_v19 = vmul.u32 8, %v7508_v10 }
 0x8aa   : > { %v5511_v53 = vpop.f32.mrf.mxu0 }
 0x8ab   : > { %v2334_v37 = vadd.f32 %v5510_v7, %v5158_v44 }
 0x8ac   : > { %v5512_v59 = vpop.f32.mrf.mxu0 }
 0x8ad   : > { %v5513_v14 = vadd.f32 %v5512_v59, %v5511_v53  ;;  %v2342_v15 = vadd.f32 %v2334_v37, %v7501_v55  ;;  %v5175_v53 = vld [vmem:[%s7764_s10] ss:$0 sm:$0xff] }
 0x8af   : > { %v2337_v16 = vadd.f32 %v5513_v14, %v5158_v44  ;;  %2350 = vadd.xlane.f32.xlu0 %v2342_v15  ;;  %v5176_v14 = vld [vmem:[%s7764_s10 + $0x1] ss:$0 sm:$0xff] }
 0x8b1   : > { %v2343_v20 = vadd.f32 %v2337_v16, %v7499_v54  ;;  %v2409_v16 = vand.u32 127, %v1937_v9  ;;  %v6082_v9 = vld [vmem:[#allocation17 + $0x4] ss:$24 sps:$4 sm:$0xff]  }
 0x8b3   : > { %2352 = vadd.xlane.f32.xlu1 %v2343_v20  ;;  %2346 = vadd.xlane.f32.xlu0 %v2340_v23  ;;  %vm2411_vm3 = vcmp.eq.s32.totalorder %v2409_v16, %v2410_v19 }
 0x8b7   : > { %2348 = vadd.xlane.f32.xlu1 %v2341_v24 }
 0x938   : > { %v2351_v25 = vpop.xlane.xlu0 %2350 }
 0x939   : > { %v2356_v27 = vmul.f32 0.0078125, %v2351_v25 }
 0x93b   : > { %v7568_v28 = vsub.f32 %v2342_v15, %v2356_v27 }
 0x93c   : > { %v2353_v29 = vpop.xlane.xlu1 %2352  ;;  %v2347_v30 = vpop.xlane.xlu0 %2346 }
 0x93d   : > { %v2357_v32 = vmul.f32 0.0078125, %v2353_v29  ;;  %v2354_v55 = vmul.f32 0.0078125, %v2347_v30  ;;  %v2364_v33 = vmul.f32 %v7568_v28, %v7568_v28 }
 0x93f   : > { %v7572_v34 = vsub.f32 %v2343_v20, %v2357_v32  ;;  %v7574_v54 = vsub.f32 %v2340_v23, %v2354_v55  ;;  %2370 = vadd.xlane.f32.xlu0 %v2364_v33  ;;  %v5177_v33 = vsel %vm2411_vm3, 1.0, %v6937_v22 }
 0x940   : > { %v2349_v47 = vpop.xlane.xlu1 %2348 }
 0x941   : > { %v2355_v35 = vmul.f32 0.0078125, %v2349_v47  ;;  %v2365_v48 = vmul.f32 %v7572_v34, %v7572_v34  ;;  %v2362_v36 = vmul.f32 %v7574_v54, %v7574_v54  ;;  %v6080_v47 = vld [vmem:[#allocation17] ss:$24 sps:$4 sm:$0xff]  }
 0x943   : > { %v7580_v38 = vsub.f32 %v2341_v24, %v2355_v35  ;;  %2372 = vadd.xlane.f32.xlu1 %v2365_v48  ;;  %2366 = vadd.xlane.f32.xlu0 %v2362_v36  ;;  %v6085_v35 = vld [vmem:[#allocation17 + $0xc] ss:$24 sps:$4 sm:$0xff]   ;;  %v2461_v48 = vld [vmem:[%s817_s25] sm:$0xf]  ;;  %s7717_s25 = scalar_lea.hbm %s7887_s4, %s5425_s8 }
 0x944   : > { %v2462_v36 = vpack.c.bf16 %v2461_v48, %v2461_v48  ;;  %v6155_v48 = vld [vmem:[#allocation16 + $0x40] ss:$24 sps:$4 sm:$0xff]  }
 0x945   : > { %v2363_v39 = vmul.f32 %v7580_v38, %v7580_v38 }
 0x947   : > { %2368 = vadd.xlane.f32.xlu1 %v2363_v39  ;;  %v6088_v39 = vld [vmem:[#allocation17 + $0x14] ss:$24 sps:$4 sm:$0xff]  }
 0x9c8   : > { %v2371_v21 = vpop.xlane.xlu0 %2370 }
 0x9c9   : > { %v2376_v31 = vmul.f32 0.0078125, %v2371_v21  ;;  %v6134_v21 = vld [vmem:[#allocation16 + $0x8] ss:$24 sps:$4 sm:$0xff]  }
 0x9cb   : > { %v2380_v17 = vadd.f32 1e-12, %v2376_v31  ;;  %v6139_v31 = vld [vmem:[#allocation16 + $0x164] ss:$24 sps:$4 sm:$0xff]  }
 0x9cc   : > { %v2373_v62 = vpop.xlane.xlu1 %2372  ;;  %v2367_v63 = vpop.xlane.xlu0 %2366  ;;  %2997 = vmatprep.subr.bf16.mxu0 %v6139_v31  ;;  %v6184_v31 = vld [vmem:[#allocation19 + $0x1e4] ss:$12 sps:$4 sm:$0xff]  }
 0x9cd   : > { %6433 = vrsqrt.f32 %v2380_v17  ;;  %v2377_v0 = vmul.f32 0.0078125, %v2373_v62  ;;  %v2374_v1 = vmul.f32 0.0078125, %v2367_v63  ;;  %v6163_v17 = vld [vmem:[#allocation19 + $0xac] ss:$12 sps:$4 sm:$0xff]   ;;  %v6137_v63 = vld [vmem:[#allocation16 + $0x160] ss:$24 sps:$4 sm:$0xff]  }
 0x9cf   : > { %v2381_v2 = vadd.f32 1e-12, %v2377_v0  ;;  %v2378_v3 = vadd.f32 1e-12, %v2374_v1  ;;  %v6142_v1 = vld [vmem:[#allocation16 + $0x134] ss:$24 sps:$4 sm:$0xff]  }
 0x9d0   : > { %v2369_v4 = vpop.xlane.xlu1 %2368 }
 0x9d1   : > { %6435 = vrsqrt.f32 %v2381_v2  ;;  %v2375_v5 = vmul.f32 0.0078125, %v2369_v4  ;;  %v6161_v2 = vld [vmem:[#allocation19 + $0xa8] ss:$12 sps:$4 sm:$0xff]  }
 0x9d2   : > { %6437 = vrsqrt.f32 %v2378_v3  ;;  %v6169_v4 = vld [vmem:[#allocation19 + $0x94] ss:$12 sps:$4 sm:$0xff]  }
 0x9d3   : > { %v2379_v6 = vadd.f32 1e-12, %v2375_v5  ;;  %v6140_v5 = vld [vmem:[#allocation16 + $0x130] ss:$24 sps:$4 sm:$0xff]  }
 0x9d5   : > { %6439 = vrsqrt.f32 %v2379_v6 }
 0x9da   : > { %v6434_v7 = vpop.eup %6433 }
 0x9db   : > { %v2388_v44 = vmul.f32 %v6434_v7, %v7568_v28  ;;  %v6145_v7 = vld [vmem:[#allocation16 + $0x104] ss:$24 sps:$4 sm:$0xff]  }
 0x9dd   : > { %v2396_v12 = vmul.f32 %v5175_v53, %v2388_v44  ;;  %v6167_v44 = vld [vmem:[#allocation19 + $0x90] ss:$12 sps:$4 sm:$0xff]  }
 0x9de   : > { %v6436_v37 = vpop.eup %6435 }
 0x9df   : > { %v6438_v59 = vpop.eup %6437  ;;  %v2389_v8 = vmul.f32 %v6436_v37, %v7572_v34  ;;  %v2404_v24 = vadd.f32 %v5176_v14, %v2396_v12  ;;  %v6175_v37 = vld [vmem:[#allocation19 + $0x7c] ss:$12 sps:$4 sm:$0xff]  }
 0x9e0   : > { %v2386_v15 = vmul.f32 %v6438_v59, %v7574_v54  ;;  %v2414_v54 = vpack.c.bf16 %v5177_v33, %v5177_v33  ;;  %v6143_v59 = vld [vmem:[#allocation16 + $0x100] ss:$24 sps:$4 sm:$0xff]   ;;  %v6148_v12 = vld [vmem:[#allocation16 + $0xd4] ss:$24 sps:$4 sm:$0xff]   ;;  %v6152_v33 = vld [vmem:[#allocation16 + $0x70] ss:$24 sps:$4 sm:$0xff]  }
 0x9e1   : > { %v2397_v20 = vmul.f32 %v5175_v53, %v2389_v8 }
 0x9e2   : > { %v6440_v23 = vpop.eup %6439  ;;  %v2394_v28 = vmul.f32 %v5175_v53, %v2386_v15  ;;  %v6181_v15 = vld [vmem:[#allocation19 + $0x64] ss:$12 sps:$4 sm:$0xff]  }
 0x9e3   : > { %v2405_v25 = vadd.f32 %v5176_v14, %v2397_v20  ;;  %v2387_v27 = vmul.f32 %v6440_v23, %v7580_v38  ;;  %v6083_v38 = vld [vmem:[#allocation17 + $0x8] ss:$24 sps:$4 sm:$0xff]   ;;  %v6151_v20 = vld [vmem:[#allocation16 + $0xa4] ss:$24 sps:$4 sm:$0xff]  }
 0x9e4   : > { %v2402_v32 = vadd.f32 %v5176_v14, %v2394_v28  ;;  %v6179_v23 = vld [vmem:[#allocation19 + $0x60] ss:$12 sps:$4 sm:$0xff]  }
 0x9e5   : > { %v2416_v29 = vpack.c.bf16 %v2405_v25, %v2404_v24  ;;  %v2395_v30 = vmul.f32 %v5175_v53, %v2387_v27  ;;  %v6187_v24 = vld [vmem:[#allocation19 + $0x4c] ss:$12 sps:$4 sm:$0xff]   ;;  %v6149_v27 = vld [vmem:[#allocation16 + $0xa0] ss:$24 sps:$4 sm:$0xff]  }
 0x9e7   : > { %5761 = vmatpush3.bf16.msra.mxu1 %v2416_v29  ;;  %v2403_v55 = vadd.f32 %v5176_v14, %v2395_v30  ;;  %v6173_v14 = vld [vmem:[#allocation19 + $0x78] ss:$12 sps:$4 sm:$0xff]   ;;  %v6185_v30 = vld [vmem:[#allocation19 + $0x48] ss:$12 sps:$4 sm:$0xff]  }
 0x9e8   : > { %5762 = vmatprep.subr.bf16.mxu1 %v6937_v22  ;;  %v6154_v29 = vld [vmem:[#allocation16 + $0x74] ss:$24 sps:$4 sm:$0xff]  }
 0x9e9   : > { %v2415_v34 = vpack.c.bf16 %v2403_v55, %v2402_v32  ;;  %v6193_v32 = vld [vmem:[#allocation19 + $0x34] ss:$12 sps:$4 sm:$0xff]  }
 0x9eb   : > { %5763 = vmatpush3.bf16.msra.mxu1 %v2415_v34  ;;  %v6157_v34 = vld [vmem:[#allocation16 + $0x44] ss:$24 sps:$4 sm:$0xff]  }
 0x9ec   : > { %2566 = vmatprep.subr.bf16.mxu1 %v6082_v9 }
 0x9ee   : > { %5765 = vmatmul.mubr.msk.bf16.vlgmr.msra.gmra.mxu1 %vm2417_vm4, %v2414_v54  ;;  %v6191_v54 = vld [vmem:[#allocation19 + $0x30] ss:$12 sps:$4 sm:$0xff]  }
 0x9ef   : > { %2567 = vmatpush1.bf16.msra.mxu1 %v6080_v47  ;;  %2584 = vmatprep.mubr.bf16.mxu1 %v6939_v18  ;;  %v6199_v47 = vld [vmem:[#allocation19 + $0x1c] ss:$12 sps:$4 sm:$0xff]  }
 0x9f0   : > { %2607 = vmatprep.subr.bf16.mxu1 %v6085_v35 }
 0x9f6   : > { %5185 = vmatmul.mubr.msk.bf16.vlgmr.msra.gmra.mxu1 %vm2548_vm5, %v2462_v36 }
 0x9f7   : > { %2608 = vmatpush1.bf16.msra.mxu1 %v6083_v38  ;;  %2625 = vmatprep.mubr.bf16.mxu1 %v6939_v18  ;;  %v6160_v38 = vld [vmem:[#allocation16 + $0x14] ss:$24 sps:$4 sm:$0xff]  }
 0x9f8   : > { %2648 = vmatprep.subr.bf16.mxu1 %v6088_v39  ;;  %v6197_v39 = vld [vmem:[#allocation19 + $0x18] ss:$12 sps:$4 sm:$0xff]  }
 0x9fe   : > { %5186 = vmatmul.mubr.msk.bf16.vlgmr.msra.gmra.mxu1 %vm2548_vm5, %v2462_v36 }
 0x9ff   : > { %2649 = vmatpush1.bf16.msra.mxu1 %v6086_v40  ;;  %2666 = vmatprep.mubr.bf16.mxu1 %v6939_v18  ;;  %v6205_v40 = vld [vmem:[#allocation19 + $0x4] ss:$12 sps:$4 sm:$0xff]  }
 0xa00   : > { %2956 = vmatprep.subr.bf16.mxu1 %v6094_v41 }
 0xa06   : > { %5187 = vmatmul.mubr.msk.bf16.vlgmr.msra.gmra.mxu1 %vm2548_vm5, %v2462_v36 }
 0xa07   : > { %2957 = vmatpush1.bf16.msra.mxu1 %v6092_v42  ;;  %2988 = vmatprep.mubr.bf16.mxu1 %v6939_v18  ;;  %v6158_v42 = vld [vmem:[#allocation16 + $0x10] ss:$24 sps:$4 sm:$0xff]  }
 0xa08   : > { %2958 = vmatprep.subr.bf16.mxu1 %v6100_v43 }
 0xa0b   : > { %2959 = vmatpush1.bf16.msra.mxu1 %v6098_v45  ;;  %v6166_v45 = vld [vmem:[#allocation19 + $0x22c] ss:$12 sps:$4 sm:$0xff]  }
 0xa0c   : > { %2960 = vmatprep.subr.bf16.mxu1 %v6106_v46  ;;  %v6203_v46 = vld [vmem:[#allocation19] ss:$12 sps:$4 sm:$0xff]  }
 0xa0f   : > { %2961 = vmatpush1.bf16.msra.mxu1 %v6104_v49  ;;  %v6211_v49 = vld [vmem:[#allocation19 + $0x16c] ss:$12 sps:$4 sm:$0xff]  }
 0xa10   : > { %2962 = vmatprep.subr.bf16.mxu1 %v6112_v50 }
 0xa13   : > { %2963 = vmatpush1.bf16.msra.mxu1 %v6110_v51  ;;  %v6164_v51 = vld [vmem:[#allocation19 + $0x228] ss:$12 sps:$4 sm:$0xff]  }
 0xa14   : > { %2964 = vmatprep.subr.bf16.mxu1 %v6118_v52  ;;  %v6172_v52 = vld [vmem:[#allocation19 + $0x214] ss:$12 sps:$4 sm:$0xff]  }
 0xa17   : > { %2965 = vmatpush1.bf16.msra.mxu1 %v6116_v56  ;;  %v6209_v56 = vld [vmem:[#allocation19 + $0x168] ss:$12 sps:$4 sm:$0xff]  }
 0xa18   : > { %2966 = vmatprep.subr.bf16.mxu1 %v6124_v57  ;;  %v6217_v57 = vld [vmem:[#allocation19 + $0x154] ss:$12 sps:$4 sm:$0xff]  }
 0xa1b   : > { %2967 = vmatpush1.bf16.msra.mxu1 %v6122_v58  ;;  %v6170_v58 = vld [vmem:[#allocation19 + $0x210] ss:$12 sps:$4 sm:$0xff]  }
 0xa1c   : > { %2968 = vmatprep.subr.bf16.mxu1 %v6130_v26  ;;  %v6178_v26 = vld [vmem:[#allocation19 + $0x1fc] ss:$12 sps:$4 sm:$0xff]  }
 0xa1f   : > { %2969 = vmatpush1.bf16.msra.mxu1 %v6128_v60  ;;  %v6215_v60 = vld [vmem:[#allocation19 + $0x150] ss:$12 sps:$4 sm:$0xff]  }
 0xa20   : > { %2970 = vmatprep.subr.bf16.mxu1 %v6136_v61  ;;  %v6223_v61 = vld [vmem:[#allocation19 + $0x13c] ss:$12 sps:$4 sm:$0xff]  }
 0xa23   : > { %2971 = vmatpush1.bf16.msra.mxu1 %v6134_v21  ;;  %v6176_v21 = vld [vmem:[#allocation19 + $0x1f8] ss:$12 sps:$4 sm:$0xff]  }
 0xa24   : > { %4065 = vmatprep.subr.bf16.mxu1 %v6163_v17  ;;  %v6221_v17 = vld [vmem:[#allocation19 + $0x138] ss:$12 sps:$4 sm:$0xff]  }
 0xaae   : > { %v2455_v62 = vpop.f32.mrf.mxu1 }
 0xaaf   : > { %v7604_v0 = vpack.c.bf16 %v2455_v62, %v2455_v62  ;;  %v6229_v62 = vld [vmem:[#allocation19 + $0x124] ss:$12 sps:$4 sm:$0xff]  }
 0xab0   : > { %v5766_v3 = vpop.f32.mrf.mxu1 }
 0xab1   : > { %2948 = vmatmul.mubr.bf16.vlgmr.msra.gmra.mxu0 %v7604_v0  ;;  %2989 = vmatmul.mubr.bf16.vlgmr.msra.gmra.mxu1 %v7604_v0  ;;  %v6188_v3 = vld [vmem:[#allocation19 + $0x1c8] ss:$12 sps:$4 sm:$0xff]  }
 0xab2   : > { %2998 = vmatpush1.bf16.msra.mxu0 %v6137_v63  ;;  %v2458_v6 = vpop.f32.mrf.mxu1  ;;  %3029 = vmatprep.mubr.bf16.mxu0 %v6939_v18  ;;  %v6146_v18 = vld [vmem:[#allocation16 + $0xd0] ss:$24 sps:$4 sm:$0xff]  }
 0xab3   : > { %2999 = vmatprep.subr.bf16.mxu0 %v6142_v1  ;;  %4066 = vmatpush1.bf16.msra.mxu1 %v6161_v2  ;;  %v6182_v63 = vld [vmem:[#allocation19 + $0x1e0] ss:$12 sps:$4 sm:$0xff]  }
 0xab4   : > { %v5767_v53 = vpop.f32.mrf.mxu1  ;;  %4067 = vmatprep.subr.bf16.mxu1 %v6169_v4  ;;  %v6227_v1 = vld [vmem:[#allocation19 + $0x120] ss:$12 sps:$4 sm:$0xff]  }
 0xab5   : > { %v6235_v2 = vld [vmem:[#allocation19 + $0x10c] ss:$12 sps:$4 sm:$0xff]   ;;  %v6196_v4 = vld [vmem:[#allocation19 + $0x1b4] ss:$12 sps:$4 sm:$0xff]   ;;  %v6239_v53 = vld [vmem:[#allocation19 + $0xf0] ss:$12 sps:$4 sm:$0xff]  }
 0xab6   : > { %3000 = vmatpush1.bf16.msra.mxu0 %v6140_v5  ;;  %v7609_v8 = vpop.f32.mrf.mxu1  ;;  %v6233_v5 = vld [vmem:[#allocation19 + $0x108] ss:$12 sps:$4 sm:$0xff]  }
 0xab7   : > { %3001 = vmatprep.subr.bf16.mxu0 %v6145_v7  ;;  %4068 = vmatpush1.bf16.msra.mxu1 %v6167_v44  ;;  %v6241_v6 = vld [vmem:[#allocation19 + $0xf4] ss:$12 sps:$4 sm:$0xff]   ;;  %v6194_v7 = vld [vmem:[#allocation19 + $0x1b0] ss:$12 sps:$4 sm:$0xff]  }
 0xab8   : > { %4069 = vmatprep.subr.bf16.mxu1 %v6175_v37  ;;  %v7611_v16 = vpop.f32.mrf.mxu1  ;;  %v6202_v44 = vld [vmem:[#allocation19 + $0x19c] ss:$12 sps:$4 sm:$0xff]   ;;  %v6200_v37 = vld [vmem:[#allocation19 + $0x198] ss:$12 sps:$4 sm:$0xff]  }
 0xaba   : > { %3002 = vmatpush1.bf16.msra.mxu0 %v6143_v59  ;;  %v2590_v19 = vpop.f32.mrf.mxu1  ;;  %v6208_v59 = vld [vmem:[#allocation19 + $0x184] ss:$12 sps:$4 sm:$0xff]  }
 0xabb   : > { %3003 = vmatprep.subr.bf16.mxu0 %v6148_v12  ;;  %4070 = vmatpush1.bf16.msra.mxu1 %v6173_v14  ;;  %v6206_v12 = vld [vmem:[#allocation19 + $0x180] ss:$12 sps:$4 sm:$0xff]   ;;  %v6218_v19 = vld [vmem:[#allocation19 + $0x2d0] ss:$12 sps:$4 sm:$0xff]  }
 0xabc   : > { %4071 = vmatprep.subr.bf16.mxu1 %v6181_v15  ;;  %v2591_v25 = vpop.f32.mrf.mxu1  ;;  %v6214_v14 = vld [vmem:[#allocation19 + $0x2ec] ss:$12 sps:$4 sm:$0xff]   ;;  %v6212_v15 = vld [vmem:[#allocation19 + $0x2e8] ss:$12 sps:$4 sm:$0xff]  }
 0xabd   : > { %v6224_v25 = vld [vmem:[#allocation19 + $0x2b8] ss:$12 sps:$4 sm:$0xff]  }
 0xabe   : > { %3004 = vmatpush1.bf16.msra.mxu0 %v6146_v18  ;;  %v7613_v28 = vpop.f32.mrf.mxu1  ;;  %v6220_v18 = vld [vmem:[#allocation19 + $0x2d4] ss:$12 sps:$4 sm:$0xff]  }
 0xabf   : > { %3005 = vmatprep.subr.bf16.mxu0 %v6151_v20  ;;  %4072 = vmatpush1.bf16.msra.mxu1 %v6179_v23  ;;  %v6226_v20 = vld [vmem:[#allocation19 + $0x2bc] ss:$12 sps:$4 sm:$0xff]  }
 0xac0   : > { %4073 = vmatprep.subr.bf16.mxu1 %v6187_v24  ;;  %v7615_v55 = vpop.f32.mrf.mxu1  ;;  %v6247_v23 = vld [vmem:[#allocation19 + $0xdc] ss:$12 sps:$4 sm:$0xff]   ;;  %v6245_v24 = vld [vmem:[#allocation19 + $0xd8] ss:$12 sps:$4 sm:$0xff]  }
 0xac2   : > { %3006 = vmatpush1.bf16.msra.mxu0 %v6149_v27  ;;  %v2631_v9 = vpop.f32.mrf.mxu1  ;;  %v6232_v27 = vld [vmem:[#allocation19 + $0x2a4] ss:$12 sps:$4 sm:$0xff]  }
 0xac3   : > { %3007 = vmatprep.subr.bf16.mxu0 %v6154_v29  ;;  %4074 = vmatpush1.bf16.msra.mxu1 %v6185_v30  ;;  %v6253_v29 = vld [vmem:[#allocation19 + $0xc4] ss:$12 sps:$4 sm:$0xff]   ;;  %v6251_v30 = vld [vmem:[#allocation19 + $0xc0] ss:$12 sps:$4 sm:$0xff]  }
 0xac4   : > { %4075 = vmatprep.subr.bf16.mxu1 %v6193_v32  ;;  %v2632_v35 = vpop.f32.mrf.mxu1  ;;  %v6230_v32 = vld [vmem:[#allocation19 + $0x2a0] ss:$12 sps:$4 sm:$0xff]  }
 0xac5   : > { %v6259_v9 = vld [vmem:[#allocation19 + $0x3ac] ss:$12 sps:$4 sm:$0xff]   ;;  %v6250_v35 = vld [vmem:[#allocation19 + $0x25c] ss:$12 sps:$4 sm:$0xff]  }
 0xac6   : > { %3008 = vmatpush1.bf16.msra.mxu0 %v6152_v33  ;;  %v7617_v36 = vpop.f32.mrf.mxu1  ;;  %v6238_v33 = vld [vmem:[#allocation19 + $0x28c] ss:$12 sps:$4 sm:$0xff]  }
 0xac7   : > { %3009 = vmatprep.subr.bf16.mxu0 %v6157_v34  ;;  %4076 = vmatpush1.bf16.msra.mxu1 %v6191_v54  ;;  %v6236_v34 = vld [vmem:[#allocation19 + $0x288] ss:$12 sps:$4 sm:$0xff]  }
 0xac8   : > { %4077 = vmatprep.subr.bf16.mxu1 %v6199_v47  ;;  %v7619_v41 = vpop.f32.mrf.mxu1  ;;  %v6244_v54 = vld [vmem:[#allocation19 + $0x274] ss:$12 sps:$4 sm:$0xff]   ;;  %v6242_v47 = vld [vmem:[#allocation19 + $0x270] ss:$12 sps:$4 sm:$0xff]  }
 0xaca   : > { %3010 = vmatpush1.bf16.msra.mxu0 %v6155_v48  ;;  %v2672_v43 = vpop.f32.mrf.mxu1  ;;  %v6248_v48 = vld [vmem:[#allocation19 + $0x258] ss:$12 sps:$4 sm:$0xff]  }
 0xacb   : > { %3011 = vmatprep.subr.bf16.mxu0 %v6160_v38  ;;  %4078 = vmatpush1.bf16.msra.mxu1 %v6197_v39  ;;  %v6256_v38 = vld [vmem:[#allocation19 + $0x244] ss:$12 sps:$4 sm:$0xff]   ;;  %v6254_v39 = vld [vmem:[#allocation19 + $0x240] ss:$12 sps:$4 sm:$0xff]  }
 0xacc   : > { %4079 = vmatprep.subr.bf16.mxu1 %v6205_v40  ;;  %v2673_v50 = vpop.f32.mrf.mxu1  ;;  %v6260_v40 = vld [vmem:[#allocation19 + $0x170] ss:$12 sps:$4 sm:$0xff]  }
 0xacd   : > { %v7626_v43 = vld [vmem:[%s7767_s13] sm:$0x3f] }
 0xace   : > { %3012 = vmatpush1.bf16.msra.mxu0 %v6158_v42  ;;  %v3050_v42 = vsub.s32 2, %v7508_v10 }
 0xacf   : > { %4106 = vmatprep.subr.bf16.mxu0 %v6166_v45  ;;  %4080 = vmatpush1.bf16.msra.mxu1 %v6203_v46  ;;  %v3054_v45 = vsub.s32 3, %v7508_v10  ;;  %v3043_v46 = vrot.slane %v7626_v43, %v7511_v11 }
 0xad0   : > { %4081 = vmatprep.subr.bf16.mxu1 %v6211_v49  ;;  %v3051_v49 = vrot.slane %v7626_v43, %v3050_v42 }
 0xad1   : > { %3030 = vmatmul.mubr.bf16.vlgmr.msra.gmra.mxu0 %v7604_v0  ;;  %v6190_v0 = vld [vmem:[#allocation19 + $0x1cc] ss:$12 sps:$4 sm:$0xff]  }
 0xad2   : > { %4107 = vmatpush1.bf16.msra.mxu0 %v6164_v51 }
 0xad3   : > { %4108 = vmatprep.subr.bf16.mxu0 %v6172_v52  ;;  %4082 = vmatpush2.bf16.msra.mxu1 %v6209_v56 }
 0xad4   : > { %4083 = vmatprep.subr.bf16.mxu1 %v6217_v57  ;;  %v3047_v57 = vrot.slane %v7626_v43, %v7514_v13 }
 0xad6   : > { %4109 = vmatpush1.bf16.msra.mxu0 %v6170_v58  ;;  %v3055_v58 = vrot.slane %v7626_v43, %v3054_v45  ;;  %v6287_v45 = vld [vmem:[#allocation19 + $0x318] ss:$12 sps:$4 sm:$0xff]  }
 0xad7   : > { %4110 = vmatprep.subr.bf16.mxu0 %v6178_v26  ;;  %4084 = vmatpush2.bf16.msra.mxu1 %v6215_v60 }
 0xad8   : > { %4085 = vmatprep.subr.bf16.mxu1 %v6223_v61 }
 0xada   : > { %4111 = vmatpush1.bf16.msra.mxu0 %v6176_v21 }
 0xadb   : > { %4112 = vmatprep.subr.bf16.mxu0 %v6184_v31  ;;  %4086 = vmatpush2.bf16.msra.mxu1 %v6221_v17 }
 0xadc   : > { %4087 = vmatprep.subr.bf16.mxu1 %v6229_v62 }
 0xade   : > { %4113 = vmatpush1.bf16.msra.mxu0 %v6182_v63 }
 0xadf   : > { %4114 = vmatprep.subr.bf16.mxu0 %v6190_v0  ;;  %4088 = vmatpush2.bf16.msra.mxu1 %v6227_v1 }
 0xae0   : > { %4089 = vmatprep.subr.bf16.mxu1 %v6235_v2 }
 0xae2   : > { %4115 = vmatpush1.bf16.msra.mxu0 %v6188_v3 }
 0xae3   : > { %4116 = vmatprep.subr.bf16.mxu0 %v6196_v4  ;;  %4090 = vmatpush2.bf16.msra.mxu1 %v6233_v5 }
 0xae4   : > { %4091 = vmatprep.subr.bf16.mxu1 %v6241_v6 }
 0xae6   : > { %4117 = vmatpush1.bf16.msra.mxu0 %v6194_v7 }
 0xae7   : > { %4118 = vmatprep.subr.bf16.mxu0 %v6202_v44  ;;  %4092 = vmatpush2.bf16.msra.mxu1 %v6239_v53  ;;  %v6257_v44 = vld [vmem:[#allocation19 + $0x3a8] ss:$12 sps:$4 sm:$0xff]   ;;  %v6261_v53 = vld [vmem:[#allocation19 + $0xb0] ss:$12 sps:$4 sm:$0xff]  }
 0xae8   : > { %4093 = vmatprep.subr.bf16.mxu1 %v6247_v23  ;;  %v6274_v23 = vld [vmem:[#allocation19 + $0x364] ss:$12 sps:$4 sm:$0xff]  }
 0xaea   : > { %4119 = vmatpush1.bf16.msra.mxu0 %v6200_v37 }
 0xaeb   : > { %4120 = vmatprep.subr.bf16.mxu0 %v6208_v59  ;;  %4094 = vmatpush2.bf16.msra.mxu1 %v6245_v24  ;;  %v6265_v59 = vld [vmem:[#allocation19 + $0x158] ss:$12 sps:$4 sm:$0xff]   ;;  %v6275_v24 = vld [vmem:[#allocation19 + $0x128] ss:$12 sps:$4 sm:$0xff]  }
 0xaec   : > { %4095 = vmatprep.subr.bf16.mxu1 %v6253_v29  ;;  %v6279_v29 = vld [vmem:[#allocation19 + $0x34c] ss:$12 sps:$4 sm:$0xff]  }
 0xaee   : > { %4121 = vmatpush1.bf16.msra.mxu0 %v6206_v12  ;;  %v6262_v12 = vld [vmem:[#allocation19 + $0x390] ss:$12 sps:$4 sm:$0xff]  }
 0xaef   : > { %4122 = vmatprep.subr.bf16.mxu0 %v6214_v14  ;;  %4096 = vmatpush2.bf16.msra.mxu1 %v6251_v30  ;;  %v6266_v14 = vld [vmem:[#allocation19 + $0x98] ss:$12 sps:$4 sm:$0xff]   ;;  %v6280_v30 = vld [vmem:[#allocation19 + $0x110] ss:$12 sps:$4 sm:$0xff]  }
 0xaf0   : > { %4147 = vmatprep.subr.bf16.mxu1 %v6259_v9  ;;  %v6284_v9 = vld [vmem:[#allocation19 + $0x334] ss:$12 sps:$4 sm:$0xff]  }
 0xaf2   : > { %4123 = vmatpush2.bf16.msra.mxu0 %v6212_v15  ;;  %v6269_v15 = vld [vmem:[#allocation19 + $0x37c] ss:$12 sps:$4 sm:$0xff]  }
 0xaf3   : > { %4124 = vmatprep.subr.bf16.mxu0 %v6220_v18  ;;  %v6270_v18 = vld [vmem:[#allocation19 + $0x140] ss:$12 sps:$4 sm:$0xff]  }
 0xaf6   : > { %4125 = vmatpush2.bf16.msra.mxu0 %v6218_v19  ;;  %v6267_v19 = vld [vmem:[#allocation19 + $0x378] ss:$12 sps:$4 sm:$0xff]  }
 0xaf7   : > { %4126 = vmatprep.subr.bf16.mxu0 %v6226_v20  ;;  %v6271_v20 = vld [vmem:[#allocation19 + $0x80] ss:$12 sps:$4 sm:$0xff]  }
 0xafa   : > { %4127 = vmatpush2.bf16.msra.mxu0 %v6224_v25  ;;  %v6272_v25 = vld [vmem:[#allocation19 + $0x360] ss:$12 sps:$4 sm:$0xff]  }
 0xafb   : > { %4128 = vmatprep.subr.bf16.mxu0 %v6232_v27  ;;  %v6276_v27 = vld [vmem:[#allocation19 + $0x68] ss:$12 sps:$4 sm:$0xff]  }
 0xafe   : > { %4129 = vmatpush2.bf16.msra.mxu0 %v6230_v32  ;;  %v6277_v32 = vld [vmem:[#allocation19 + $0x348] ss:$12 sps:$4 sm:$0xff]  }
 0xaff   : > { %4130 = vmatprep.subr.bf16.mxu0 %v6238_v33  ;;  %v6281_v33 = vld [vmem:[#allocation19 + $0x50] ss:$12 sps:$4 sm:$0xff]  }
 0xb02   : > { %4131 = vmatpush2.bf16.msra.mxu0 %v6236_v34  ;;  %v6285_v34 = vld [vmem:[#allocation19 + $0xf8] ss:$12 sps:$4 sm:$0xff]  }
 0xb03   : > { %4132 = vmatprep.subr.bf16.mxu0 %v6244_v54  ;;  %v6282_v54 = vld [vmem:[#allocation19 + $0x330] ss:$12 sps:$4 sm:$0xff]  }
 0xb06   : > { %4133 = vmatpush2.bf16.msra.mxu0 %v6242_v47  ;;  %v6286_v47 = vld [vmem:[#allocation19 + $0x38] ss:$12 sps:$4 sm:$0xff]  }
 0xb07   : > { %4134 = vmatprep.subr.bf16.mxu0 %v6250_v35  ;;  %v3062_v35 = vsub.s32 5, %v7508_v10 }
 0xb0a   : > { %4135 = vmatpush2.bf16.msra.mxu0 %v6248_v48  ;;  %v6289_v48 = vld [vmem:[#allocation19 + $0x31c] ss:$12 sps:$4 sm:$0xff]  }
 0xb0b   : > { %4136 = vmatprep.subr.bf16.mxu0 %v6256_v38  ;;  %v6290_v38 = vld [vmem:[#allocation19 + $0xe0] ss:$12 sps:$4 sm:$0xff]  }
 0xb0e   : > { %4137 = vmatpush2.bf16.msra.mxu0 %v6254_v39 }
 0xb0f   : > { %5517 = vmatprep.subr.bf16.mxu0 %v6260_v40  ;;  %v3063_v40 = vrot.slane %v7626_v43, %v3062_v35  ;;  %v6339_v35 = vld [vmem:[#allocation19 + $0x458] ss:$12 sps:$4 sm:$0xff]  }
 0xb71   : > { %v2949_v50 = vpop.f32.mrf.mxu0  ;;  %v2990_v51 = vpop.f32.mrf.mxu1 }
 0xb72   : > { %v2950_v52 = vadd.f32 %v2949_v50, %v7609_v8  ;;  %v2991_v56 = vadd.f32 %v2990_v51, %v7613_v28  ;;  %v6294_v50 = vld [vmem:[#allocation19 + $0x304] ss:$12 sps:$4 sm:$0xff]   ;;  %v6295_v51 = vld [vmem:[#allocation19 + $0xc8] ss:$12 sps:$4 sm:$0xff]  }
 0xb73   : > { %v2951_v26 = vpop.f32.mrf.mxu0  ;;  %v2992_v60 = vpop.f32.mrf.mxu1 }
 0xb74   : > { %v3070_v61 = vadd.f32 %v3043_v46, %v2950_v52  ;;  %v3072_v21 = vadd.f32 %v3051_v49, %v2991_v56  ;;  %v2952_v31 = vadd.f32 %v2951_v26, %v7611_v16  ;;  %v2993_v17 = vadd.f32 %v2992_v60, %v7615_v55  ;;  %v6264_v55 = vld [vmem:[#allocation19 + $0x394] ss:$12 sps:$4 sm:$0xff]  }
 0xb75   : > { %v2953_v62 = vpop.f32.mrf.mxu0  ;;  %v2994_v63 = vpop.f32.mrf.mxu1  ;;  %v6291_v46 = vld [vmem:[#allocation19 + $0x20] ss:$12 sps:$4 sm:$0xff]   ;;  %v6296_v26 = vld [vmem:[#allocation19 + $0x8] ss:$12 sps:$4 sm:$0xff]  }
 0xb76   : > { %v3071_v0 = vadd.f32 %v3047_v57, %v2952_v31  ;;  %v3073_v1 = vadd.f32 %v3055_v58, %v2993_v17  ;;  %v3076_v8 = vmax.f32 %v3070_v61, 0.0  ;;  %v3078_v2 = vmax.f32 %v3072_v21, 0.0  ;;  %v6292_v58 = vld [vmem:[#allocation19 + $0x300] ss:$12 sps:$4 sm:$0xff]   ;;  %v6300_v21 = vld [vmem:[#allocation19 + $0x2f0] ss:$12 sps:$4 sm:$0xff]  }
 0xb77   : > { %v2954_v28 = vpop.f32.mrf.mxu0  ;;  %v2995_v3 = vpop.f32.mrf.mxu1  ;;  %v6299_v61 = vld [vmem:[#allocation19 + $0x46c] ss:$12 sps:$4 sm:$0xff]   ;;  %v6297_v62 = vld [vmem:[#allocation19 + $0x468] ss:$12 sps:$4 sm:$0xff]   ;;  %v6301_v63 = vld [vmem:[#allocation19 + $0x230] ss:$12 sps:$4 sm:$0xff]  }
 0xb78   : > { %v3077_v4 = vmax.f32 %v3071_v0, 0.0  ;;  %v3079_v5 = vmax.f32 %v3073_v1, 0.0  ;;  %v7643_v37 = vpack.c.bf16 %v3076_v8, %v3076_v8  ;;  %v7645_v16 = vpack.c.bf16 %v3078_v2, %v3078_v2  ;;  %v6305_v0 = vld [vmem:[#allocation19 + $0x2d8] ss:$12 sps:$4 sm:$0xff]   ;;  %v6302_v1 = vld [vmem:[#allocation19 + $0x450] ss:$12 sps:$4 sm:$0xff]  }
 0xb79   : > { %v6306_v8 = vld [vmem:[#allocation19 + $0x218] ss:$12 sps:$4 sm:$0xff]   ;;  %v6309_v2 = vld [vmem:[#allocation19 + $0x43c] ss:$12 sps:$4 sm:$0xff]   ;;  %v6310_v28 = vld [vmem:[#allocation19 + $0x2c0] ss:$12 sps:$4 sm:$0xff]  }
 0xb7a   : > { %v3083_v6 = vpack.c.bf16 %v3077_v4, %v3077_v4  ;;  %v7641_v7 = vpack.c.bf16 %v3079_v5, %v3079_v5  ;;  %v6307_v3 = vld [vmem:[#allocation19 + $0x438] ss:$12 sps:$4 sm:$0xff]   ;;  %v6311_v4 = vld [vmem:[#allocation19 + $0x200] ss:$12 sps:$4 sm:$0xff]  }
 0xb7b   : > { %v6314_v5 = vld [vmem:[#allocation19 + $0x424] ss:$12 sps:$4 sm:$0xff]  }
 0xb7c   : > { %4097 = vmatprep.mubr.bf16.mxu1 %v3083_v6  ;;  %4138 = vmatprep.mubr.bf16.mxu0 %v7641_v7 }
 0xb7d   : > { %4098 = vmatmul.mubr.bf16.vlgmr.msra.gmra.mxu1 %v7643_v37  ;;  %4139 = vmatmul.mubr.bf16.vlgmr.msra.gmra.mxu0 %v7645_v16 }
 0xb7e   : > { %4148 = vmatpush1.bf16.msra.mxu1 %v6257_v44  ;;  %5518 = vmatpush3.bf16.msra.mxu0 %v6261_v53  ;;  %v6312_v44 = vld [vmem:[#allocation19 + $0x420] ss:$12 sps:$4 sm:$0xff]   ;;  %v6316_v53 = vld [vmem:[#allocation19 + $0x1e8] ss:$12 sps:$4 sm:$0xff]  }
 0xb7f   : > { %4220 = vmatprep.mubr.bf16.mxu0 %v3083_v6  ;;  %4149 = vmatprep.subr.bf16.mxu1 %v6264_v55  ;;  %v6315_v6 = vld [vmem:[#allocation19 + $0x2a8] ss:$12 sps:$4 sm:$0xff]  }
 0xb80   : > { %5519 = vmatprep.subr.bf16.mxu0 %v6265_v59  ;;  %v6317_v55 = vld [vmem:[#allocation19 + $0x408] ss:$12 sps:$4 sm:$0xff]   ;;  %v6321_v59 = vld [vmem:[#allocation19 + $0x1d0] ss:$12 sps:$4 sm:$0xff]  }
 0xb82   : > { %4150 = vmatpush1.bf16.msra.mxu1 %v6262_v12  ;;  %5520 = vmatpush3.bf16.msra.mxu0 %v6266_v14  ;;  %v3058_v12 = vsub.s32 4, %v7508_v10  ;;  %v6324_v14 = vld [vmem:[#allocation19 + $0x3f4] ss:$12 sps:$4 sm:$0xff]  }
 0xb83   : > { %4151 = vmatprep.subr.bf16.mxu1 %v6269_v15  ;;  %5521 = vmatprep.subr.bf16.mxu0 %v6270_v18  ;;  %v6325_v15 = vld [vmem:[#allocation19 + $0x278] ss:$12 sps:$4 sm:$0xff]   ;;  %v6322_v18 = vld [vmem:[#allocation19 + $0x3f0] ss:$12 sps:$4 sm:$0xff]  }
 0xb84   : > { %v6378_v10 = vld [vmem:[#allocation22 + $0x30] sm:$0xff]  }
 0xb86   : > { %4152 = vmatpush1.bf16.msra.mxu1 %v6267_v19  ;;  %5522 = vmatpush3.bf16.msra.mxu0 %v6271_v20  ;;  %v6326_v19 = vld [vmem:[#allocation19 + $0x1b8] ss:$12 sps:$4 sm:$0xff]  }
 0xb87   : > { %4153 = vmatprep.subr.bf16.mxu1 %v6274_v23  ;;  %5523 = vmatprep.subr.bf16.mxu0 %v6275_v24  ;;  %v3059_v23 = vrot.slane %v7626_v43, %v3058_v12  ;;  %v6329_v24 = vld [vmem:[#allocation19 + $0x3dc] ss:$12 sps:$4 sm:$0xff]  }
 0xb88   : > { %v6337_v43 = vld [vmem:[#allocation19 + $0x470] ss:$12 sps:$4 sm:$0xff]  }
 0xb8a   : > { %4154 = vmatpush1.bf16.msra.mxu1 %v6272_v25  ;;  %5524 = vmatpush3.bf16.msra.mxu0 %v6276_v27  ;;  %v6330_v25 = vld [vmem:[#allocation19 + $0x260] ss:$12 sps:$4 sm:$0xff]   ;;  %v6327_v27 = vld [vmem:[#allocation19 + $0x3d8] ss:$12 sps:$4 sm:$0xff]  }
 0xb8b   : > { %4155 = vmatprep.subr.bf16.mxu1 %v6279_v29  ;;  %5525 = vmatprep.subr.bf16.mxu0 %v6280_v30  ;;  %v6331_v29 = vld [vmem:[#allocation19 + $0x1a0] ss:$12 sps:$4 sm:$0xff]  }
 0xb8e   : > { %4156 = vmatpush1.bf16.msra.mxu1 %v6277_v32  ;;  %5526 = vmatpush3.bf16.msra.mxu0 %v6281_v33  ;;  %v6334_v32 = vld [vmem:[#allocation19 + $0x3c4] ss:$12 sps:$4 sm:$0xff]   ;;  %v6335_v33 = vld [vmem:[#allocation19 + $0x248] ss:$12 sps:$4 sm:$0xff]  }
 0xb8f   : > { %4157 = vmatprep.subr.bf16.mxu1 %v6284_v9  ;;  %5527 = vmatprep.subr.bf16.mxu0 %v6285_v34  ;;  %v6332_v9 = vld [vmem:[#allocation19 + $0x3c0] ss:$12 sps:$4 sm:$0xff]   ;;  %v6336_v34 = vld [vmem:[#allocation19 + $0x188] ss:$12 sps:$4 sm:$0xff]  }
 0xb91   : > { %v7651_v39 = vpop.f32.mrf.mxu0 }
 0xb92   : > { %4158 = vmatpush1.bf16.msra.mxu1 %v6282_v54  ;;  %5528 = vmatpush3.bf16.msra.mxu0 %v6286_v47  ;;  %v3032_v20 = vadd.f32 %v7651_v39, %v7617_v36  ;;  %v6338_v54 = vld [vmem:[#allocation19 + $0x3b0] ss:$12 sps:$4 sm:$0xff]   ;;  %v6342_v39 = vld [vmem:[#allocation19 + $0x380] ss:$12 sps:$4 sm:$0xff]  }
 0xb93   : > { %v3033_v49 = vpop.f32.mrf.mxu0  ;;  %4159 = vmatprep.subr.bf16.mxu1 %v6289_v48  ;;  %5529 = vmatprep.subr.bf16.mxu0 %v6290_v38  ;;  %v6340_v48 = vld [vmem:[#allocation19 + $0x398] ss:$12 sps:$4 sm:$0xff]   ;;  %v6341_v38 = vld [vmem:[#allocation19 + $0x440] ss:$12 sps:$4 sm:$0xff]  }
 0xb94   : > { %v3034_v52 = vadd.f32 %v3033_v49, %v7619_v41  ;;  %v6304_v41 = vld [vmem:[#allocation19 + $0x454] ss:$12 sps:$4 sm:$0xff]   ;;  %v3074_v30 = vadd.f32 %v3059_v23, %v3032_v20  ;;  %v6346_v49 = vld [vmem:[#allocation19 + $0x350] ss:$12 sps:$4 sm:$0xff]  }
 0xb95   : > { %v3035_v56 = vpop.f32.mrf.mxu0 }
 0xb96   : > { %v3075_v57 = vadd.f32 %v3063_v40, %v3034_v52  ;;  %4160 = vmatpush1.bf16.msra.mxu1 %v6287_v45  ;;  %5530 = vmatpush3.bf16.msra.mxu0 %v6291_v46  ;;  %v3080_v36 = vmax.f32 %v3074_v30, 0.0  ;;  %v6343_v40 = vld [vmem:[#allocation19 + $0x428] ss:$12 sps:$4 sm:$0xff]   ;;  %v6345_v46 = vld [vmem:[#allocation19 + $0x410] ss:$12 sps:$4 sm:$0xff]  }
 0xb97   : > { %v3036_v60 = vpop.f32.mrf.mxu0  ;;  %4161 = vmatprep.subr.bf16.mxu1 %v6294_v50  ;;  %5531 = vmatprep.subr.bf16.mxu0 %v6295_v51  ;;  %v6344_v45 = vld [vmem:[#allocation19 + $0x368] ss:$12 sps:$4 sm:$0xff]   ;;  %v6347_v50 = vld [vmem:[#allocation19 + $0x3f8] ss:$12 sps:$4 sm:$0xff]   ;;  %v6349_v51 = vld [vmem:[#allocation19 + $0x3e0] ss:$12 sps:$4 sm:$0xff]  }
 0xb98   : > { %v3081_v31 = vmax.f32 %v3075_v57, 0.0  ;;  %v3086_v47 = vpack.c.bf16 %v3080_v36, %v3080_v36  ;;  %v6350_v52 = vld [vmem:[#allocation19 + $0x320] ss:$12 sps:$4 sm:$0xff]   ;;  %v6351_v56 = vld [vmem:[#allocation19 + $0x3c8] ss:$12 sps:$4 sm:$0xff]  }
 0xb99   : > { %v6352_v57 = vld [vmem:[#allocation19 + $0x308] ss:$12 sps:$4 sm:$0xff]   ;;  %v3280_v30 = vld [vmem:[%s7882_s0] sm:$0x7]  ;;  %s4827_s0 = scalar_lea.sflag [#allocation4], %s7355_s24 }
 0xb9a   : > { %v7655_v17 = vpack.c.bf16 %v3081_v31, %v3081_v31  ;;  %4162 = vmatpush1.bf16.msra.mxu1 %v6292_v58  ;;  %5532 = vmatpush3.bf16.msra.mxu0 %v6296_v26  ;;  %v6353_v58 = vld [vmem:[#allocation20 + $0x78] sm:$0xff]   ;;  %v6355_v60 = vld [vmem:[#allocation20 + $0x70] sm:$0xff]   ;;  %v6358_v31 = vld [vmem:[#allocation20 + $0x28] sm:$0xff]  }
 0xb9b   : > { %4163 = vmatprep.subr.bf16.mxu1 %v6299_v61  ;;  %5539 = vmatprep.subr.bf16.mxu0 %v6300_v21  ;;  %v6354_v26 = vld [vmem:[#allocation20 + $0x38] sm:$0xff]   ;;  %v6356_v61 = vld [vmem:[#allocation20 + $0x30] sm:$0xff]   ;;  %v6357_v21 = vld [vmem:[#allocation20 + $0x68] sm:$0xff]  }
 0xb9c   : > { %4179 = vmatprep.mubr.bf16.mxu1 %v7655_v17 }
 0xb9d   : > { %4221 = vmatmul.mubr.bf16.vlgmr.msra.gmra.mxu0 %v7643_v37  ;;  %v6319_v37 = vld [vmem:[#allocation19 + $0x40c] ss:$12 sps:$4 sm:$0xff]  }
 0xb9e   : > { %4164 = vmatpush2.bf16.msra.mxu1 %v6297_v62  ;;  %5540 = vmatpush3.bf16.msra.mxu0 %v6301_v63  ;;  %v6360_v62 = vld [vmem:[#allocation20 + $0x20] sm:$0xff]   ;;  %v6361_v63 = vld [vmem:[#allocation20 + $0x58] sm:$0xff]  }
 0xb9f   : > { %4260 = vmatprep.mubr.bf16.mxu0 %v7641_v7  ;;  %4165 = vmatprep.subr.bf16.mxu1 %v6304_v41  ;;  %v6320_v7 = vld [vmem:[#allocation19 + $0x290] ss:$12 sps:$4 sm:$0xff]  }
 0xba0   : > { %5541 = vmatprep.subr.bf16.mxu0 %v6305_v0  ;;  %v6362_v41 = vld [vmem:[#allocation20 + $0x18] sm:$0xff]   ;;  %v6363_v0 = vld [vmem:[#allocation20 + $0x50] sm:$0xff]  }
 0xba2   : > { %4166 = vmatpush2.bf16.msra.mxu1 %v6302_v1  ;;  %5542 = vmatpush3.bf16.msra.mxu0 %v6306_v8  ;;  %v6364_v1 = vld [vmem:[#allocation20 + $0x10] sm:$0xff]   ;;  %v6365_v8 = vld [vmem:[#allocation20 + $0x48] sm:$0xff]  }
 0xba3   : > { %4167 = vmatprep.subr.bf16.mxu1 %v6309_v2  ;;  %5543 = vmatprep.subr.bf16.mxu0 %v6310_v28  ;;  %v6366_v2 = vld [vmem:[#allocation20 + $0x8] sm:$0xff]   ;;  %v6367_v28 = vld [vmem:[#allocation20 + $0x40] sm:$0xff]  }
 0xba6   : > { %4168 = vmatpush2.bf16.msra.mxu1 %v6307_v3  ;;  %5544 = vmatpush3.bf16.msra.mxu0 %v6311_v4  ;;  %v6368_v3 = vld [vmem:[#allocation20] sm:$0xff]   ;;  %v6369_v4 = vld [vmem:[#allocation20 + $0xb8] sm:$0xff]  }
 0xba7   : > { %4169 = vmatprep.subr.bf16.mxu1 %v6314_v5  ;;  %5545 = vmatprep.subr.bf16.mxu0 %v6315_v6  ;;  %v6370_v5 = vld [vmem:[#allocation20 + $0xb0] sm:$0xff]   ;;  %v6371_v6 = vld [vmem:[#allocation20 + $0xa8] sm:$0xff]  }
 0xbaa   : > { %4170 = vmatpush2.bf16.msra.mxu1 %v6312_v44  ;;  %5546 = vmatpush3.bf16.msra.mxu0 %v6316_v53  ;;  %v6372_v44 = vld [vmem:[#allocation20 + $0xa0] sm:$0xff]   ;;  %v6373_v53 = vld [vmem:[#allocation20 + $0x98] sm:$0xff]  }
 0xbab   : > { %4171 = vmatprep.subr.bf16.mxu1 %v6319_v37  ;;  %5547 = vmatprep.subr.bf16.mxu0 %v6320_v7  ;;  %v6374_v37 = vld [vmem:[#allocation20 + $0x90] sm:$0xff]   ;;  %v6375_v7 = vld [vmem:[#allocation20 + $0x88] sm:$0xff]  }
 0xbae   : > { %4172 = vmatpush2.bf16.msra.mxu1 %v6317_v55  ;;  %5548 = vmatpush3.bf16.msra.mxu0 %v6321_v59  ;;  %v6376_v55 = vld [vmem:[#allocation20 + $0x80] sm:$0xff]  }
 0xbaf   : > { %4173 = vmatprep.subr.bf16.mxu1 %v6324_v14  ;;  %5549 = vmatprep.subr.bf16.mxu0 %v6325_v15 }
 0xbb2   : > { %4174 = vmatpush2.bf16.msra.mxu1 %v6322_v18  ;;  %5550 = vmatpush3.bf16.msra.mxu0 %v6326_v19 }
 0xbb3   : > { %4175 = vmatprep.subr.bf16.mxu1 %v6329_v24  ;;  %5551 = vmatprep.subr.bf16.mxu0 %v6330_v25 }
 0xbb6   : > { %4176 = vmatpush2.bf16.msra.mxu1 %v6327_v27  ;;  %5552 = vmatpush3.bf16.msra.mxu0 %v6331_v29 }
 0xbb7   : > { %4177 = vmatprep.subr.bf16.mxu1 %v6334_v32  ;;  %5553 = vmatprep.subr.bf16.mxu0 %v6335_v33  ;;  %v3285_v32 = vrot.slane %v3280_v30, %v7511_v11  ;;  %v3289_v33 = vrot.slane %v3280_v30, %v7514_v13  ;;  %v3293_v13 = vrot.slane %v3280_v30, %v3050_v42  ;;  %v6379_v42 = vld [vmem:[#allocation22 + $0x28] sm:$0xff]   ;;  %v6392_v30 = vld [vmem:[#allocation23] sm:$0xff]  }
 0xbba   : > { %4178 = vmatpush2.bf16.msra.mxu1 %v6332_v9  ;;  %5554 = vmatpush3.bf16.msra.mxu0 %v6336_v34 }
 0xbbb   : > { %5561 = vmatprep.subr.bf16.mxu1 %v6337_v43  ;;  %5583 = vmatprep.subr.bf16.mxu0 %v6353_v58 }
 0xbbd   : > { %4180 = vmatmul.mubr.bf16.vlgmr.msra.gmra.mxu1 %v3086_v47  ;;  %4261 = vmatmul.mubr.bf16.vlgmr.msra.gmra.mxu0 %v7645_v16  ;;  %v6348_v16 = vld [vmem:[#allocation19 + $0x338] ss:$12 sps:$4 sm:$0xff]  }
 0xbbe   : > { %5562 = vmatpush3.bf16.msra.mxu1 %v6338_v54  ;;  %4300 = vmatprep.mubr.bf16.mxu1 %v7655_v17  ;;  %v6359_v17 = vld [vmem:[#allocation20 + $0x60] sm:$0xff]  }
 0xbbf   : > { %5563 = vmatprep.subr.bf16.mxu1 %v6339_v35  ;;  %5584 = vmatpush3.bf16.msra.mxu0 %v6354_v26 }
 0xbc0   : > { %5585 = vmatprep.subr.bf16.mxu0 %v6355_v60 }
 0xbc2   : > { %5564 = vmatpush3.bf16.msra.mxu1 %v6340_v48 }
 0xbc3   : > { %5565 = vmatprep.subr.bf16.mxu1 %v6341_v38  ;;  %5586 = vmatpush3.bf16.msra.mxu0 %v6356_v61 }
 0xbc4   : > { %5587 = vmatprep.subr.bf16.mxu0 %v6357_v21 }
 0xbc6   : > { %5566 = vmatpush3.bf16.msra.mxu1 %v6342_v39 }
 0xbc7   : > { %5567 = vmatprep.subr.bf16.mxu1 %v6343_v40  ;;  %5588 = vmatpush3.bf16.msra.mxu0 %v6358_v31 }
 0xbc8   : > { %5589 = vmatprep.subr.bf16.mxu0 %v6359_v17 }
 0xbca   : > { %5568 = vmatpush3.bf16.msra.mxu1 %v6344_v45 }
 0xbcb   : > { %5569 = vmatprep.subr.bf16.mxu1 %v6345_v46  ;;  %5590 = vmatpush3.bf16.msra.mxu0 %v6360_v62 }
 0xbcc   : > { %5591 = vmatprep.subr.bf16.mxu0 %v6361_v63 }
 0xbce   : > { %5570 = vmatpush3.bf16.msra.mxu1 %v6346_v49 }
 0xbcf   : > { %5571 = vmatprep.subr.bf16.mxu1 %v6347_v50  ;;  %5592 = vmatpush3.bf16.msra.mxu0 %v6362_v41  ;;  %v6377_v41 = vld [vmem:[#allocation22 + $0x38] sm:$0xff]  }
 0xbd0   : > { %5593 = vmatprep.subr.bf16.mxu0 %v6363_v0  ;;  %v6380_v0 = vld [vmem:[#allocation22 + $0x20] sm:$0xff]  }
 0xbd2   : > { %5572 = vmatpush3.bf16.msra.mxu1 %v6348_v16 }
 0xbd3   : > { %5573 = vmatprep.subr.bf16.mxu1 %v6349_v51  ;;  %5594 = vmatpush3.bf16.msra.mxu0 %v6364_v1  ;;  %v6381_v1 = vld [vmem:[#allocation22 + $0x18] sm:$0xff]  }
 0xbd4   : > { %5595 = vmatprep.subr.bf16.mxu0 %v6365_v8  ;;  %v6382_v8 = vld [vmem:[#allocation22 + $0x10] sm:$0xff]  }
 0xbd6   : > { %5574 = vmatpush3.bf16.msra.mxu1 %v6350_v52 }
 0xbd7   : > { %5575 = vmatprep.subr.bf16.mxu1 %v6351_v56  ;;  %5596 = vmatpush3.bf16.msra.mxu0 %v6366_v2  ;;  %v6383_v2 = vld [vmem:[#allocation22 + $0x8] sm:$0xff]  }
 0xbd8   : > { %5597 = vmatprep.subr.bf16.mxu0 %v6367_v28  ;;  %v6384_v28 = vld [vmem:[#allocation22] sm:$0xff]  }
 0xbda   : > { %5576 = vmatpush3.bf16.msra.mxu1 %v6352_v57 }
 0xbdb   : > { %5768 = vmatprep.subr.bf16.mxu1 %v6937_v22  ;;  %5598 = vmatpush3.bf16.msra.mxu0 %v6368_v3  ;;  %v6385_v3 = vld [vmem:[#allocation23 + $0x38] sm:$0xff]  }
 0xbdc   : > { %5788 = vmatprep.subr.bf16.mxu0 %v6937_v22 }
 0xbdd   : > { %4301 = vmatmul.mubr.bf16.vlgmr.msra.gmra.mxu1 %v3086_v47 }
 0xbde   : > { %5784 = vmatprep.mubr.msk.bf16.mxu1 %vm6938_vm0, %v6937_v22  ;;  %5769 = vmatpush3.bf16.msra.mxu1 %v6369_v4  ;;  %v6386_v4 = vld [vmem:[#allocation23 + $0x30] sm:$0xff]  }
 0xbdf   : > { %5770 = vmatprep.subr.bf16.mxu1 %v6937_v22 }
 0xbe2   : > { %5771 = vmatpush3.bf16.msra.mxu1 %v6370_v5  ;;  %v6387_v5 = vld [vmem:[#allocation23 + $0x28] sm:$0xff]  }
 0xbe3   : > { %5772 = vmatprep.subr.bf16.mxu1 %v6937_v22 }
 0xbe6   : > { %5773 = vmatpush3.bf16.msra.mxu1 %v6371_v6  ;;  %v6388_v6 = vld [vmem:[#allocation23 + $0x20] sm:$0xff]  }
 0xbe7   : > { %5774 = vmatprep.subr.bf16.mxu1 %v6937_v22 }
 0xbea   : > { %5775 = vmatpush3.bf16.msra.mxu1 %v6372_v44  ;;  %v6389_v44 = vld [vmem:[#allocation23 + $0x18] sm:$0xff]  }
 0xbeb   : > { %5776 = vmatprep.subr.bf16.mxu1 %v6937_v22 }
 0xbee   : > { %5777 = vmatpush3.bf16.msra.mxu1 %v6373_v53  ;;  %v6390_v53 = vld [vmem:[#allocation23 + $0x10] sm:$0xff]  }
 0xbef   : > { %5778 = vmatprep.subr.bf16.mxu1 %v6937_v22 }
 0xbf2   : > { %5779 = vmatpush3.bf16.msra.mxu1 %v6374_v37 }
 0xbf3   : > { %5780 = vmatprep.subr.bf16.mxu1 %v6937_v22 }
 0xbf6   : > { %5781 = vmatpush3.bf16.msra.mxu1 %v6375_v7 }
 0xbf7   : > { %5782 = vmatprep.subr.bf16.mxu1 %v6937_v22 }
 0xbfa   : > { %5783 = vmatpush3.bf16.msra.mxu1 %v6376_v55 }
 0xbfb   : > { %5808 = vmatprep.subr.bf16.mxu1 %v6937_v22 }
 0xc3d   : > { %v4099_v59 = vpop.f32.mrf.mxu1  ;;  %v4140_v12 = vpop.f32.mrf.mxu0 }
 0xc3e   : > { %v4100_v9 = vadd.f32 %v4099_v59, %v3285_v32  ;;  %v5405_v32 = vld [vmem:[%s7884_s26] ss:$0 sm:$0xff] }
 0xc3f   : > { %v4101_v14 = vpop.f32.mrf.mxu1  ;;  %v4142_v15 = vpop.f32.mrf.mxu0 }
 0xc40   : > { %v4102_v34 = vadd.f32 %v4101_v14, %v3289_v33  ;;  %v4141_v36 = vadd.f32 %v4140_v12, %v4100_v9  ;;  %v5380_v14 = vld [vmem:[%s7883_s6] ss:$0 sm:$0xff]  ;;  %s6823_s6 = sshll.u32 %s6940_s19, 4  ;;  %s6824_s6 = int_to_ptr.vmem [resolvable:$false] %s6823_s6 }
 0xc41   : > { %v4103_v18 = vpop.f32.mrf.mxu1  ;;  %v4144_v19 = vpop.f32.mrf.mxu0  ;;  %s6825_s23 = scalar_lea.vmem %s6824_s6, 128  ;;  %p6826_p9 = scmp.lt.s32.totalorder %s4841_s27, %s6824_s6 }
 0xc42   : > { %v4143_v47 = vadd.f32 %v4142_v15, %v4102_v34  ;;  %p6827_p1 = scmp.lt.s32.totalorder %s6825_s23, %s6819_s3 }
 0xc43   : > { %v4104_v20 = vpop.f32.mrf.mxu1  ;;  %v4145_v23 = vpop.f32.mrf.mxu0 }
 0xc44   : > { %p6828_p13 = por %p6827_p1, %p6826_p9 }
 0xc46   : > { %p6829_p6 = pnand %p6828_p13, %p6822_p4 }
 0xc5d   : > { %v5533_v24 = vpop.f32.mrf.mxu0 }
 0xc5f   : > { %v5534_v25 = vpop.f32.mrf.mxu0 }
 0xc60   : > { %v5535_v52 = vadd.f32 %v5534_v25, %v5533_v24 }
 0xc61   : > { %v5536_v27 = vpop.f32.mrf.mxu0 }
 0xc62   : > { %v4223_v58 = vadd.f32 %v5535_v52, %v3293_v13 }
 0xc63   : > { %v5537_v29 = vpop.f32.mrf.mxu0 }
 0xc64   : > { %v6391_v29 = vld [vmem:[#allocation23 + $0x8] sm:$0xff]  }
 0xc7d   : > { %v4181_v43 = vpop.f32.mrf.mxu1  ;;  %v5555_v54 = vpop.f32.mrf.mxu0 }
 0xc7e   : > { %v4182_v35 = vadd.f32 %v4181_v43, %v4141_v36 }
 0xc7f   : > { %v4183_v48 = vpop.f32.mrf.mxu1  ;;  %v5556_v38 = vpop.f32.mrf.mxu0 }
 0xc80   : > { %v4184_v39 = vadd.f32 %v4183_v48, %v4143_v47  ;;  %v4308_v40 = vmax.f32 %v4182_v35, 0.0  ;;  %v5557_v56 = vadd.f32 %v5556_v38, %v5555_v54 }
 0xc81   : > { %v4185_v45 = vpop.f32.mrf.mxu1  ;;  %v5558_v46 = vpop.f32.mrf.mxu0 }
 0xc82   : > { %v4309_v49 = vmax.f32 %v4184_v39, 0.0  ;;  %v4311_v11 = vpack.c.bf16 %v4308_v40, %v4308_v40  ;;  %v4263_v60 = vadd.f32 %v5557_v56, %v4223_v58 }
 0xc83   : > { %v4186_v50 = vpop.f32.mrf.mxu1  ;;  %v5559_v16 = vpop.f32.mrf.mxu0 }
 0xc84   : > { %v4312_v51 = vpack.c.bf16 %v4309_v49, %v4309_v49 }
 0xc86   : > { %4545 = vmatprep.mubr.bf16.mxu0 %v4312_v51 }
 0xc87   : > { %4546 = vmatmul.mubr.bf16.vlgmr.msra.gmra.mxu0 %v4311_v11 }
 0xc88   : > { %5804 = vmatprep.mubr.msk.bf16.mxu0 %vm6938_vm0, %v6937_v22  ;;  %5789 = vmatpush3.bf16.msra.mxu0 %v6377_v41 }
 0xc89   : > { %5790 = vmatprep.subr.bf16.mxu0 %v6937_v22 }
 0xc8c   : > { %5791 = vmatpush3.bf16.msra.mxu0 %v6378_v10 }
 0xc8d   : > { %5792 = vmatprep.subr.bf16.mxu0 %v6937_v22 }
 0xc90   : > { %5793 = vmatpush3.bf16.msra.mxu0 %v6379_v42 }
 0xc91   : > { %5794 = vmatprep.subr.bf16.mxu0 %v6937_v22 }
 0xc94   : > { %5795 = vmatpush3.bf16.msra.mxu0 %v6380_v0 }
 0xc95   : > { %5796 = vmatprep.subr.bf16.mxu0 %v6937_v22 }
 0xc98   : > { %5797 = vmatpush3.bf16.msra.mxu0 %v6381_v1 }
 0xc99   : > { %5798 = vmatprep.subr.bf16.mxu0 %v6937_v22 }
 0xc9c   : > { %5799 = vmatpush3.bf16.msra.mxu0 %v6382_v8 }
 0xc9d   : > { %v5577_v57 = vpop.f32.mrf.mxu1  ;;  %5800 = vmatprep.subr.bf16.mxu0 %v6937_v22 }
 0xc9f   : > { %v5578_v26 = vpop.f32.mrf.mxu1 }
 0xca0   : > { %v5579_v61 = vadd.f32 %v5578_v26, %v5577_v57  ;;  %5801 = vmatpush3.bf16.msra.mxu0 %v6383_v2 }
 0xca1   : > { %v5580_v21 = vpop.f32.mrf.mxu1  ;;  %5802 = vmatprep.subr.bf16.mxu0 %v6937_v22 }
 0xca2   : > { %v4303_v31 = vadd.f32 %v5579_v61, %v4263_v60 }
 0xca3   : > { %v5581_v17 = vpop.f32.mrf.mxu1 }
 0xca4   : > { %v4310_v62 = vmax.f32 %v4303_v31, 0.0  ;;  %5803 = vmatpush3.bf16.msra.mxu0 %v6384_v28 }
 0xca6   : > { %v4313_v63 = vpack.c.bf16 %v4310_v62, %v4310_v62 }
 0xca8   : > { %5785 = vmatmul.mubr.bf16.vlgmr.msra.gmra.mxu1 %v4313_v63 }
 0xca9   : > { %5824 = vmatprep.mubr.msk.bf16.mxu1 %vm6938_vm0, %v6937_v22  ;;  %5809 = vmatpush3.bf16.msra.mxu1 %v6385_v3 }
 0xcaa   : > { %5810 = vmatprep.subr.bf16.mxu1 %v6937_v22 }
 0xcad   : > { %5811 = vmatpush3.bf16.msra.mxu1 %v6386_v4 }
 0xcae   : > { %5812 = vmatprep.subr.bf16.mxu1 %v6937_v22 }
 0xcb1   : > { %5813 = vmatpush3.bf16.msra.mxu1 %v6387_v5 }
 0xcb2   : > { %5814 = vmatprep.subr.bf16.mxu1 %v6937_v22 }
 0xcb5   : > { %5815 = vmatpush3.bf16.msra.mxu1 %v6388_v6 }
 0xcb6   : > { %5816 = vmatprep.subr.bf16.mxu1 %v6937_v22 }
 0xcb9   : > { %5817 = vmatpush3.bf16.msra.mxu1 %v6389_v44 }
 0xcba   : > { %5818 = vmatprep.subr.bf16.mxu1 %v6937_v22 }
 0xcbd   : > { %5819 = vmatpush3.bf16.msra.mxu1 %v6390_v53 }
 0xcbe   : > { %5820 = vmatprep.subr.bf16.mxu1 %v6937_v22 }
 0xcc1   : > { %5821 = vmatpush3.bf16.msra.mxu1 %v6391_v29 }
 0xcc2   : > { %5822 = vmatprep.subr.bf16.mxu1 %v6937_v22  ;;  %v5414_v22 = vld [vmem:[%s7885_s22] ss:$0 sm:$0xff] }
 0xcc5   : > { %5823 = vmatpush3.bf16.msra.mxu1 %v6392_v30 }
 0xd47   : > { %v5599_v37 = vpop.f32.mrf.mxu0 }
 0xd49   : > { %v5600_v7 = vpop.f32.mrf.mxu0 }
 0xd4a   : > { %v5601_v12 = vadd.f32 %v5600_v7, %v5599_v37 }
 0xd4b   : > { %v5602_v55 = vpop.f32.mrf.mxu0 }
 0xd4c   : > { %v4548_v15 = vadd.f32 %v5601_v12, %v5380_v14 }
 0xd4d   : > { %v5603_v59 = vpop.f32.mrf.mxu0 }
 0xd68   : > { %v4587_v18 = vpop.f32.mrf.mxu1 }
 0xd69   : > { %v4588_v19 = vadd.f32 %v4587_v18, %v4548_v15 }
 0xd6a   : > { %v5786_v20 = vpop.f32.mrf.mxu1 }
 0xd6b   : > { %v4593_v23 = vmax.f32 %v4588_v19, 0.0 }
 0xd6c   : > { %v4590_v24 = vpop.f32.mrf.mxu1 }
 0xd6d   : > { %v4594_v25 = vpack.c.bf16 %v4593_v23, %v4593_v23 }
 0xd6e   : > { %v5787_v27 = vpop.f32.mrf.mxu1 }
 0xd6f   : > { %5805 = vmatmul.mubr.bf16.vlgmr.msra.gmra.mxu0 %v4594_v25 }
 0xe2f   : > { %v4700_v33 = vpop.f32.mrf.mxu0 }
 0xe30   : > { %v4701_v9 = vadd.f32 %v5405_v32, %v4700_v33 }
 0xe31   : > { %v5806_v34 = vpop.f32.mrf.mxu0 }
 0xe32   : > { %v4706_v36 = vmax.f32 %v4701_v9, 0.0 }
 0xe33   : > { %v4703_v43 = vpop.f32.mrf.mxu0 }
 0xe34   : > { %v4707_v54 = vpack.c.bf16 %v4706_v36, %v4706_v36 }
 0xe35   : > { %v5807_v47 = vpop.f32.mrf.mxu0 }
 0xe36   : > { %5825 = vmatmul.mubr.bf16.vlgmr.msra.gmra.mxu1 %v4707_v54 }
 0xef6   : > { %v4813_v35 = vpop.f32.mrf.mxu1 }
 0xef7   : > { %v4814_v48 = vadd.f32 %v5414_v22, %v4813_v35 }
 0xef8   : > { %v5826_v38 = vpop.f32.mrf.mxu1 }
 0xef9   : > { %v5423_v39 = vmul.f32 -1.442695, %v4814_v48 }
 0xefa   : > { %v4816_v40 = vpop.f32.mrf.mxu1 }
 0xefb   : > { %6441 = vpow2.f32 %v5423_v39 }
 0xefc   : > { %v5827_v45 = vpop.f32.mrf.mxu1 }
 0xf08   : > { %v6442_v46 = vpop.eup %6441 }
 0xf09   : > { %v4822_v49 = vadd.f32 1.0, %v6442_v46 }
 0xf0b   : > { %6443 = vrcp.f32 %v4822_v49 }
 0xf18   : > { %v6444_v50 = vpop.eup %6443 }
 0xf19   : > { %4825 = vst [vmem:[%s931_s12] sm:$0xf] %v6444_v50 }
 0xf1a   : > { %6832 = shalt.err (!%p6829_p6)
}
 0xf1b   : > { %s6833_s29 = scalar_lea.hbm %s7717_s25, 64  ;;  %s6837_s5 = scalar_lea.hbm %s7887_s4, 128 }
 0xf1c   : > { %p6834_p7 = scmp.ne.s32.totalorder %s7717_s25, %s6833_s29  ;;  %p6838_p3 = scmp.lt.s32.totalorder %s7717_s25, %s7887_s4 }
 0xf1d   : > { %p6839_p5 = scmp.lt.s32.totalorder %s6837_s5, %s6833_s29 }
 0xf1e   : > { %p6835_p0 = pnand %p6834_p7, %p7888_p12 }
 0xf1f   : > { %p6840_p11 = por %p6839_p5, %p6838_p3 }
 0xf20   : > { %p6836_p10 = pneg %p6835_p0 }
 0xf22   : > { %p6841_p2 = pnand %p6840_p11, %p6836_p10 }
 0xf24   : > { %6844 = shalt.err (!%p6841_p2)
}
 0xf25   : > { %5878 = dma.vmem_to_hbm [thread:$0]  (%p7888_p12), %s4841_s27, 64, %s7717_s25, %s4827_s0  }
 0xf26 PF: > { %s7889_s16 = sld [smem:[#allocation35_spill]]  ;;  %p7892_p4 = scmp.ge.s32.totalorder %s6911_s30, 2 }
 0xf27   : > { %s7890_s22 = sld [smem:[#allocation40_spill]] }
 0xf2c   : > { %s4852_s8 = sand.u32 1, %s7889_s16  }
 0xf2d   : > { %p7891_p8 = scmp.ne.s32.totalorder %s7890_s22, 0  ;;  %s4853_s12 = scalar_lea.sflag [#allocation4], %s4852_s8 }
 0xf2f   : > { %p5925_p9 = pnand %p7892_p4, %p7891_p8 }
 0xf31   : > { %p5926_p1 = pneg %p5925_p9 }
 0xf33   : > { %6894 = dma.done.wait (%p5926_p1), %s4853_s12, 64  }
 0xf34   : > { %6896 = vsyncadd (%p5926_p1), %s4853_s12, 4294967232  ;;  %s7893_s30 = sld [smem:[#allocation37_spill]]  ;;  %s7896_s3 = smov %s6903_s28 }
 0xf35   : > { %s7894_s11 = sld [smem:[#allocation36_spill]] }
 0xf36   : > { %s7895_s29 = sld [smem:[#allocation38_spill]] }
 0xf3a   : > { %p44_p13 = scmp.ge.s32.totalorder %s7893_s30, 4  }
 0xf3b   : > { %s7897_s28 = smov %s7894_s11 }
 0xf3c   :  { %46 = sbr.rel (!%p44_p13) target bundleno = 31 (0x1f), region = 224 }
 0xf41   :  { %4858 = vsyncpa [#allocation3], 1 }
 0xf42   :  { %4860 = vsyncpa [#allocation3 + $0x1], 1 }
 0xf43   :  { %4861 = vsyncpa [#allocation6], 1 }
 0xf44   :  { %4863 = vsyncpa [#allocation6 + $0x1], 1 }
 0xf45   :  { %4864 = vsyncpa [#allocation9], 1 }
 0xf46   :  { %4865 = vsyncpa [#allocation12], 1 }
 0xf47   :  { %4866 = vsyncpa [#allocation15], 1 }
 0xf48   :  { %4867 = vsyncpa [#allocation18], 1 }
 0xf49   :  { %4868 = vsyncpa [#allocation21], 1 }
 0xf4a   :  { %4869 = vsyncpa [#allocation24], 1 }
 0xf4b   :  { %4870 = vsyncpa [#allocation4], 1 }
 0xf4c   :  { %4872 = vsyncpa [#allocation4 + $0x1], 1 }

</bundles_post_ra>
